<compile_context>
chip_gen: v6e
topology: v6e:2x2x1
jax: 0.10.0
libtpu: 0.0.40
codegen_flags: <defaults>
</compile_context>

<pallas_src>
import functools

import jax
import jax.numpy as jnp
from jax.experimental import pallas as pl
from jax.experimental.pallas import tpu as pltpu


HIDDEN1 = 256   # conv1 output width (already lane-dense)
HIDDEN2 = 32    # conv2 output width (padded to NW inside the kernel)
LANE = 128


def _round_up(x, m):
    return ((x + m - 1) // m) * m


def _pad2d(a, rows, cols, dtype):
    out = jnp.zeros((rows, cols), dtype)
    return out.at[: a.shape[0], : a.shape[1]].set(a.astype(dtype))


# --------------------------------------------------------------------------
# Fused Pallas kernel: 3 x ( A_hat @ (H @ W_l) + b_l ; ReLU on l < 2 )
# grid = (layer l, row tile i, reduction tile k)
# --------------------------------------------------------------------------
def _gcn_fused_kernel(xw1_ref, a_ref, w2_ref, w3_ref, b1_ref, b2_ref, b3_ref,
                      o_ref, h1_buf, h2_buf, xw_buf, acc_ref, *, a_resident):
    l = pl.program_id(0)
    i = pl.program_id(1)
    k = pl.program_id(2)
    nk = pl.num_programs(2)

    tile = acc_ref.shape[0]
    h1w = h1_buf.shape[1]                 # 256
    nw = xw_buf.shape[1]                  # narrow width for layers 1 / 2
    i_off = pl.multiple_of(i * tile, tile)
    k_off = pl.multiple_of(k * tile, tile)

    if a_resident:
        # A_hat pre-blocked to (nk, np, tile): leading-axis index picks the k
        # column-block, pl.ds picks the i row-block (sublane dim only).
        a_tile = a_ref[k, pl.ds(i_off, tile), :]
    else:
        a_tile = a_ref[...]               # streamed (tile, tile) block

    # ---- Feature transform XW_l = H_{l-1} @ W_l for layers 1 and 2 (layer 0
    #      uses the XLA-precomputed XW1 input).  Built one k-block at a time
    #      during the first row pass (i == 0), then kept resident in VMEM for
    #      every other row tile of this layer. ----
    @pl.when(i == 0)
    def _():
        @pl.when(l == 1)
        def _():
            xw_buf[pl.ds(k_off, tile), :] = jnp.dot(
                h1_buf[pl.ds(k_off, tile), :], w2_ref[...],
                preferred_element_type=jnp.float32).astype(xw_buf.dtype)

        @pl.when(l == 2)
        def _():
            xw_buf[pl.ds(k_off, tile), :] = jnp.dot(
                h2_buf[pl.ds(k_off, tile), :], w3_ref[...],
                preferred_element_type=jnp.float32).astype(xw_buf.dtype)

    # ---- Aggregation (k reduction): acc[i] += A_hat[i, k] @ XW_l[k] ----
    @pl.when(k == 0)
    def _():
        acc_ref[...] = jnp.zeros_like(acc_ref)

    @pl.when(l == 0)
    def _():
        acc_ref[:, :h1w] += jnp.dot(a_tile, xw1_ref[pl.ds(k_off, tile), :],
                                    preferred_element_type=jnp.float32)

    @pl.when(l > 0)
    def _():
        acc_ref[:, :nw] += jnp.dot(a_tile, xw_buf[pl.ds(k_off, tile), :],
                                   preferred_element_type=jnp.float32)

    # ---- Finalize this row block: bias (+ ReLU), route to the next layer ----
    @pl.when(k == nk - 1)
    def _():
        @pl.when(l == 0)
        def _():
            h = jnp.maximum(acc_ref[:, :h1w] + b1_ref[...], 0.0)
            # dropout (inference): identity.
            h1_buf[pl.ds(i_off, tile), :] = h.astype(h1_buf.dtype)
            o_ref[...] = jnp.zeros_like(o_ref)   # keep the HBM writeback defined

        @pl.when(l == 1)
        def _():
            h = jnp.maximum(acc_ref[:, :nw] + b2_ref[...], 0.0)
            # dropout (inference): identity.
            h2_buf[pl.ds(i_off, tile), :] = h.astype(h2_buf.dtype)
            o_ref[...] = jnp.zeros_like(o_ref)   # keep the HBM writeback defined

        @pl.when(l == 2)
        def _():
            o_ref[...] = (acc_ref[:, :nw] + b3_ref[...]).astype(o_ref.dtype)


# --------------------------------------------------------------------------
# Glue: normalized adjacency  A_hat = D^-1/2 (A + I) D^-1/2  (dense, f32)
# --------------------------------------------------------------------------
def build_normalized_adjacency(edge_index, num_nodes):
    src = edge_index[0]
    dst = edge_index[1]
    a = jnp.zeros((num_nodes, num_nodes), jnp.float32)
    a = a.at[dst, src].add(1.0)                    # message flows src -> dst
    a = jnp.minimum(a, 1.0)                        # dedupe multi-edges
    a = a + jnp.eye(num_nodes, dtype=jnp.float32)  # self-loops
    deg = a.sum(axis=1)
    d_inv_sqrt = jnp.where(deg > 0, 1.0 / jnp.sqrt(deg), 0.0)
    return d_inv_sqrt[:, None] * a * d_inv_sqrt[None, :]


def _vmem_capacity_bytes():
    try:
        return int(pltpu.get_tpu_info().vmem_capacity_bytes)
    except Exception:
        return 64 * 1024 * 1024        # conservative floor (v7x per-TC VMEM)


def _vmem_bytes_estimate(np_, tile, nw, a_resident):
    """Conservative footprint (assumes double-buffered inputs / outputs)."""
    acc_w = max(HIDDEN1, nw)
    scratch = (np_ * HIDDEN1 + 2 * np_ * nw) * 2 + tile * acc_w * 4
    consts = 2 * (np_ * HIDDEN1 * 2 + HIDDEN1 * nw * 2 + nw * nw * 2
                  + (HIDDEN1 + 2 * nw) * 4)
    out = 2 * tile * nw * 4
    a = (2 * np_ * np_ * 2) if a_resident else (2 * tile * tile * 2)
    return scratch + consts + out + a


# --------------------------------------------------------------------------
# Full GCN forward (wrapper: pad to lane-dense shapes, one fused pallas_call)
# --------------------------------------------------------------------------
def gcn_forward(x, edge_index, params, *, tile=None):
    n, _ = x.shape
    num_classes = params["w3"].shape[1]
    nw = _round_up(max(HIDDEN2, num_classes), LANE)   # width of layers 1 / 2

    # A_hat tile edge.  <=512 keeps the streamed fallback inside v7x's 64 MiB
    # and v5e's small default scoped VMEM; larger graphs amortize the per-step
    # overhead with 512.  (v6e could go to 1024; kept portable here.)
    if tile is None:
        tile = 128 if n <= 512 else (256 if n <= 4096 else 512)
    np_ = _round_up(n, tile)
    nk = np_ // tile

    # Dense normalized adjacency and the layer-1 feature transform, both in
    # plain XLA (overlapped by the compiler), handed to the kernel as bf16
    # MXU operands (f32 accumulation happens inside the kernel).
    a_hat = build_normalized_adjacency(edge_index, n)
    xw1 = jnp.dot(x, params["w1"], preferred_element_type=jnp.float32)

    xw1_p = _pad2d(xw1, np_, HIDDEN1, jnp.bfloat16)
    w2p = _pad2d(params["w2"], HIDDEN1, nw, jnp.bfloat16)
    w3p = _pad2d(params["w3"], nw, nw, jnp.bfloat16)
    b1p = _pad2d(params["b1"].reshape(1, -1), 1, HIDDEN1, jnp.float32)
    b2p = _pad2d(params["b2"].reshape(1, -1), 1, nw, jnp.float32)
    b3p = _pad2d(params["b3"].reshape(1, -1), 1, nw, jnp.float32)

    # Generation-aware VMEM budget: ~48 MiB on v7x (64 MiB physical), ~96 MiB
    # on v5e/v6e (128 MiB physical).  A_hat is held VMEM-resident (read from
    # HBM once, total) only if the conservative footprint fits.
    vmem_limit = (_vmem_capacity_bytes() * 3) // 4
    a_resident = (_vmem_bytes_estimate(np_, tile, nw, True) + (4 << 20)
                  <= vmem_limit)

    a_p = _pad2d(a_hat, np_, np_, jnp.bfloat16)
    if a_resident:
        # Pre-block A_hat to (nk, np_, tile): the kernel indexes the k block on
        # the leading axis and pl.ds-slices the rows, so the whole array is a
        # single constant-index block that is DMA'd exactly once.
        a_arg = a_p.reshape(np_, nk, tile).transpose(1, 0, 2)
        a_shape = (nk, np_, tile)
        a_index_map = lambda l, i, k: (0, 0, 0)
    else:
        a_arg = a_p
        a_shape = (tile, tile)
        a_index_map = lambda l, i, k: (i, k)

    grid = (3, np_ // tile, nk)         # (layer, row tile, reduction tile)
    out_shape = jax.ShapeDtypeStruct((np_, nw), jnp.float32)
    kernel = functools.partial(_gcn_fused_kernel, a_resident=a_resident)

    def _run(single_buffer_consts):
        def const_spec(shape):
            if single_buffer_consts:
                return pl.BlockSpec(shape, lambda l, i, k: (0, 0),
                                    pipeline_mode=pl.Buffered(1))
            return pl.BlockSpec(shape, lambda l, i, k: (0, 0))

        if single_buffer_consts and a_resident:
            a_spec = pl.BlockSpec(a_shape, a_index_map,
                                  pipeline_mode=pl.Buffered(1))
        else:
            a_spec = pl.BlockSpec(a_shape, a_index_map)

        return pl.pallas_call(
            kernel,
            out_shape=out_shape,
            grid_spec=pltpu.PrefetchScalarGridSpec(
                num_scalar_prefetch=0,
                grid=grid,
                in_specs=[
                    const_spec((np_, HIDDEN1)),      # XW1 (resident)
                    a_spec,                           # A_hat (resident/streamed)
                    const_spec((HIDDEN1, nw)),        # W2
                    const_spec((nw, nw)),             # W3
                    const_spec((1, HIDDEN1)),         # b1
                    const_spec((1, nw)),              # b2
                    const_spec((1, nw)),              # b3
                ],
                out_specs=pl.BlockSpec((tile, nw), lambda l, i, k: (i, 0)),
                scratch_shapes=[
                    pltpu.VMEM((np_, HIDDEN1), jnp.bfloat16),          # H1
                    pltpu.VMEM((np_, nw), jnp.bfloat16),               # H2
                    pltpu.VMEM((np_, nw), jnp.bfloat16),               # XW_l, l>=1
                    pltpu.VMEM((tile, max(HIDDEN1, nw)), jnp.float32),  # accumulator
                ],
            ),
            compiler_params=pltpu.CompilerParams(
                # All axes "arbitrary": the layer axis and the VMEM-resident
                # intermediates carry state across grid iterations.
                dimension_semantics=("arbitrary", "arbitrary", "arbitrary"),
                vmem_limit_bytes=int(vmem_limit),
            ),
        )(xw1_p, a_arg, w2p, w3p, b1p, b2p, b3p)

    try:
        out_p = _run(single_buffer_consts=True)
    except Exception:
        # pipeline_mode=pl.Buffered(1) is only a VMEM-footprint hint; fall back
        # to default double buffering if this jax build rejects it.
        out_p = _run(single_buffer_consts=False)

    return out_p[:n, :num_classes]


def init_params(key, num_features, num_classes):
    dims = [(num_features, HIDDEN1), (HIDDEN1, HIDDEN2), (HIDDEN2, num_classes)]
    params = {}
    keys = jax.random.split(key, len(dims))
    for i, ((fi, fo), k) in enumerate(zip(dims, keys), start=1):
        limit = jnp.sqrt(6.0 / (fi + fo))        # glorot-uniform, zero bias
        params[f"w{i}"] = jax.random.uniform(
            k, (fi, fo), jnp.float32, minval=-limit, maxval=limit)
        params[f"b{i}"] = jnp.zeros((fo,), jnp.float32)
    return params


def _reference_forward(x, edge_index, params):
    a = build_normalized_adjacency(edge_index, x.shape[0])
    h = jnp.maximum(a @ (x @ params["w1"]) + params["b1"], 0.0)
    h = jnp.maximum(a @ (h @ params["w2"]) + params["b2"], 0.0)
    return a @ (h @ params["w3"]) + params["b3"]


if __name__ == "__main__":
    key = jax.random.PRNGKey(0)
    k_x, k_e, k_p = jax.random.split(key, 3)

    num_nodes = 16
    num_features = 8
    num_classes = 4
    num_edges = 32

    x = jax.random.normal(k_x, (num_nodes, num_features), jnp.float32)
    edge_index = jax.random.randint(
        k_e, (2, num_edges), minval=0, maxval=num_nodes, dtype=jnp.int32)

    params = init_params(k_p, num_features, num_classes)

    out = gcn_forward(x, edge_index, params)
    out = jax.block_until_ready(out)

    assert out.shape == (num_nodes, num_classes), out.shape
    assert jnp.all(jnp.isfinite(out))

    ref = _reference_forward(x, edge_index, params)
    assert jnp.allclose(out, ref, rtol=5e-2, atol=5e-2), float(
        jnp.max(jnp.abs(out - ref)))

    print("KERNEL_OK")
</pallas_src>

<mosaic_0001>
module attributes {stable_mosaic.version = 11 : i64} {
  func.func @_gcn_fused_kernel(%arg0: i32, %arg1: i32, %arg2: i32, %arg3: memref<128x256xbf16, #tpu.memory_space<vmem>>, %arg4: memref<1x128x128xbf16, #tpu.memory_space<vmem>>, %arg5: memref<256x128xbf16, #tpu.memory_space<vmem>>, %arg6: memref<128x128xbf16, #tpu.memory_space<vmem>>, %arg7: memref<1x256xf32, #tpu.memory_space<vmem>>, %arg8: memref<1x128xf32, #tpu.memory_space<vmem>>, %arg9: memref<1x128xf32, #tpu.memory_space<vmem>>, %arg10: memref<128x128xf32, #tpu.memory_space<vmem>>, %arg11: memref<128x256xbf16, #tpu.memory_space<vmem>>, %arg12: memref<128x128xbf16, #tpu.memory_space<vmem>>, %arg13: memref<128x128xbf16, #tpu.memory_space<vmem>>, %arg14: memref<128x256xf32, #tpu.memory_space<vmem>>) attributes {dimension_semantics = [#tpu.dimension_semantics<arbitrary>, #tpu.dimension_semantics<arbitrary>, #tpu.dimension_semantics<arbitrary>], iteration_bounds = array<i64: 3, 1, 1>, scalar_prefetch = 0 : i64, scratch_operands = 4 : i64, tpu.core_type = #tpu.core_type<tc>, window_params = [{pipeline_mode = #tpu.pipeline_mode<synchronous>, transform_indices = @transform_0, window_bounds = array<i64: 128, 256>}, {pipeline_mode = #tpu.pipeline_mode<synchronous>, transform_indices = @transform_1, window_bounds = array<i64: 1, 128, 128>}, {pipeline_mode = #tpu.pipeline_mode<synchronous>, transform_indices = @transform_2, window_bounds = array<i64: 256, 128>}, {pipeline_mode = #tpu.pipeline_mode<synchronous>, transform_indices = @transform_3, window_bounds = array<i64: 128, 128>}, {pipeline_mode = #tpu.pipeline_mode<synchronous>, transform_indices = @transform_4, window_bounds = array<i64: 1, 256>}, {pipeline_mode = #tpu.pipeline_mode<synchronous>, transform_indices = @transform_5, window_bounds = array<i64: 1, 128>}, {pipeline_mode = #tpu.pipeline_mode<synchronous>, transform_indices = @transform_6, window_bounds = array<i64: 1, 128>}, {transform_indices = @transform_7, window_bounds = array<i64: 128, 128>}]} {
    %c128_i32 = arith.constant 128 : i32
    %0 = arith.muli %arg1, %c128_i32 : i32
    %1 = tpu.assume_multiple %0, 128 : i32
    %c128_i32_0 = arith.constant 128 : i32
    %2 = arith.muli %arg2, %c128_i32_0 : i32
    %3 = tpu.assume_multiple %2, 128 : i32
    %4 = arith.index_cast %arg2 : i32 to index
    %5 = arith.index_cast %1 : i32 to index
    %c0 = arith.constant 0 : index
    %6 = vector.load %arg4[%4, %5, %c0] : memref<1x128x128xbf16, #tpu.memory_space<vmem>>, vector<1x128x128xbf16>
    %7 = vector.shape_cast %6 : vector<1x128x128xbf16> to vector<128x128xbf16>
    %c0_i32 = arith.constant 0 : i32
    %8 = arith.cmpi eq, %arg1, %c0_i32 : i32
    %9 = arith.extui %8 : i1 to i32
    %c0_i32_1 = arith.constant 0 : i32
    %10 = arith.cmpi ne, %9, %c0_i32_1 : i32
    scf.if %10 {
      %c1_i32 = arith.constant 1 : i32
      %23 = arith.cmpi eq, %arg0, %c1_i32 : i32
      %24 = arith.extui %23 : i1 to i32
      %c0_i32_10 = arith.constant 0 : i32
      %25 = arith.cmpi ne, %24, %c0_i32_10 : i32
      scf.if %25 {
        %29 = arith.index_cast %3 : i32 to index
        %c0_12 = arith.constant 0 : index
        %30 = vector.load %arg11[%29, %c0_12] : memref<128x256xbf16, #tpu.memory_space<vmem>>, vector<128x256xbf16>
        %c0_13 = arith.constant 0 : index
        %c0_14 = arith.constant 0 : index
        %31 = vector.load %arg5[%c0_13, %c0_14] : memref<256x128xbf16, #tpu.memory_space<vmem>>, vector<256x128xbf16>
        %cst = arith.constant dense<0.000000e+00> : vector<128x128xf32>
        %32 = tpu.matmul %30, %31, %cst {dimension_numbers = #tpu.dot_dimension_numbers<[1], [0], [0], [1], [0, 0, 1, 1], [], []>} : vector<128x256xbf16>, vector<256x128xbf16>, vector<128x128xf32> -> vector<128x128xf32>
        %33 = arith.truncf %32 : vector<128x128xf32> to vector<128x128xbf16>
        %34 = arith.index_cast %3 : i32 to index
        %c0_15 = arith.constant 0 : index
        %35 = vector.load %arg13[%34, %c0_15] : memref<128x128xbf16, #tpu.memory_space<vmem>>, vector<128x128xbf16>
        tpu.vector_store %arg13[%34, %c0_15], %33 {strides = array<i32>} : memref<128x128xbf16, #tpu.memory_space<vmem>>, vector<128x128xbf16>,
      } else {
      }
      %c2_i32 = arith.constant 2 : i32
      %26 = arith.cmpi eq, %arg0, %c2_i32 : i32
      %27 = arith.extui %26 : i1 to i32
      %c0_i32_11 = arith.constant 0 : i32
      %28 = arith.cmpi ne, %27, %c0_i32_11 : i32
      scf.if %28 {
        %29 = arith.index_cast %3 : i32 to index
        %c0_12 = arith.constant 0 : index
        %30 = vector.load %arg12[%29, %c0_12] : memref<128x128xbf16, #tpu.memory_space<vmem>>, vector<128x128xbf16>
        %c0_13 = arith.constant 0 : index
        %c0_14 = arith.constant 0 : index
        %31 = vector.load %arg6[%c0_13, %c0_14] : memref<128x128xbf16, #tpu.memory_space<vmem>>, vector<128x128xbf16>
        %cst = arith.constant dense<0.000000e+00> : vector<128x128xf32>
        %32 = tpu.matmul %30, %31, %cst {dimension_numbers = #tpu.dot_dimension_numbers<[1], [0], [0], [1], [0, 0, 1, 1], [], []>} : vector<128x128xbf16>, vector<128x128xbf16>, vector<128x128xf32> -> vector<128x128xf32>
        %33 = arith.truncf %32 : vector<128x128xf32> to vector<128x128xbf16>
        %34 = arith.index_cast %3 : i32 to index
        %c0_15 = arith.constant 0 : index
        %35 = vector.load %arg13[%34, %c0_15] : memref<128x128xbf16, #tpu.memory_space<vmem>>, vector<128x128xbf16>
        tpu.vector_store %arg13[%34, %c0_15], %33 {strides = array<i32>} : memref<128x128xbf16, #tpu.memory_space<vmem>>, vector<128x128xbf16>,
      } else {
      }
    } else {
    }
    %c0_i32_2 = arith.constant 0 : i32
    %11 = arith.cmpi eq, %arg2, %c0_i32_2 : i32
    %12 = arith.extui %11 : i1 to i32
    %c0_i32_3 = arith.constant 0 : i32
    %13 = arith.cmpi ne, %12, %c0_i32_3 : i32
    scf.if %13 {
      %cst = arith.constant 0.000000e+00 : f32
      %23 = vector.broadcast %cst : f32 to vector<128x256xf32>
      %c0_10 = arith.constant 0 : index
      %c0_11 = arith.constant 0 : index
      %24 = vector.load %arg14[%c0_10, %c0_11] : memref<128x256xf32, #tpu.memory_space<vmem>>, vector<128x256xf32>
      tpu.vector_store %arg14[%c0_10, %c0_11], %23 {strides = array<i32>} : memref<128x256xf32, #tpu.memory_space<vmem>>, vector<128x256xf32>,
    } else {
    }
    %c0_i32_4 = arith.constant 0 : i32
    %14 = arith.cmpi eq, %arg0, %c0_i32_4 : i32
    %15 = arith.extui %14 : i1 to i32
    %c0_i32_5 = arith.constant 0 : i32
    %16 = arith.cmpi ne, %15, %c0_i32_5 : i32
    scf.if %16 {
      %c0_10 = arith.constant 0 : index
      %c0_11 = arith.constant 0 : index
      %23 = vector.load %arg14[%c0_10, %c0_11] : memref<128x256xf32, #tpu.memory_space<vmem>>, vector<128x256xf32>
      %24 = arith.index_cast %3 : i32 to index
      %c0_12 = arith.constant 0 : index
      %25 = vector.load %arg3[%24, %c0_12] : memref<128x256xbf16, #tpu.memory_space<vmem>>, vector<128x256xbf16>
      %cst = arith.constant dense<0.000000e+00> : vector<128x256xf32>
      %26 = tpu.matmul %7, %25, %cst {dimension_numbers = #tpu.dot_dimension_numbers<[1], [0], [0], [1], [0, 0, 1, 1], [], []>} : vector<128x128xbf16>, vector<128x256xbf16>, vector<128x256xf32> -> vector<128x256xf32>
      %27 = arith.addf %23, %26 : vector<128x256xf32>
      %c0_13 = arith.constant 0 : index
      %c0_14 = arith.constant 0 : index
      %28 = vector.load %arg14[%c0_13, %c0_14] : memref<128x256xf32, #tpu.memory_space<vmem>>, vector<128x256xf32>
      tpu.vector_store %arg14[%c0_13, %c0_14], %27 {strides = array<i32>} : memref<128x256xf32, #tpu.memory_space<vmem>>, vector<128x256xf32>,
    } else {
    }
    %c0_i32_6 = arith.constant 0 : i32
    %17 = arith.cmpi sgt, %arg0, %c0_i32_6 : i32
    %18 = arith.extui %17 : i1 to i32
    %c0_i32_7 = arith.constant 0 : i32
    %19 = arith.cmpi ne, %18, %c0_i32_7 : i32
    scf.if %19 {
      %c0_10 = arith.constant 0 : index
      %c0_11 = arith.constant 0 : index
      %23 = vector.load %arg14[%c0_10, %c0_11] : memref<128x256xf32, #tpu.memory_space<vmem>>, vector<128x128xf32>
      %24 = arith.index_cast %3 : i32 to index
      %c0_12 = arith.constant 0 : index
      %25 = vector.load %arg13[%24, %c0_12] : memref<128x128xbf16, #tpu.memory_space<vmem>>, vector<128x128xbf16>
      %cst = arith.constant dense<0.000000e+00> : vector<128x128xf32>
      %26 = tpu.matmul %7, %25, %cst {dimension_numbers = #tpu.dot_dimension_numbers<[1], [0], [0], [1], [0, 0, 1, 1], [], []>} : vector<128x128xbf16>, vector<128x128xbf16>, vector<128x128xf32> -> vector<128x128xf32>
      %27 = arith.addf %23, %26 : vector<128x128xf32>
      %c0_13 = arith.constant 0 : index
      %c0_14 = arith.constant 0 : index
      %28 = vector.load %arg14[%c0_13, %c0_14] : memref<128x256xf32, #tpu.memory_space<vmem>>, vector<128x128xf32>
      tpu.vector_store %arg14[%c0_13, %c0_14], %27 {strides = array<i32>} : memref<128x256xf32, #tpu.memory_space<vmem>>, vector<128x128xf32>,
    } else {
    }
    %c0_i32_8 = arith.constant 0 : i32
    %20 = arith.cmpi eq, %arg2, %c0_i32_8 : i32
    %21 = arith.extui %20 : i1 to i32
    %c0_i32_9 = arith.constant 0 : i32
    %22 = arith.cmpi ne, %21, %c0_i32_9 : i32
    scf.if %22 {
      %c0_i32_10 = arith.constant 0 : i32
      %23 = arith.cmpi eq, %arg0, %c0_i32_10 : i32
      %24 = arith.extui %23 : i1 to i32
      %c0_i32_11 = arith.constant 0 : i32
      %25 = arith.cmpi ne, %24, %c0_i32_11 : i32
      scf.if %25 {
        %c0_14 = arith.constant 0 : index
        %c0_15 = arith.constant 0 : index
        %32 = vector.load %arg14[%c0_14, %c0_15] : memref<128x256xf32, #tpu.memory_space<vmem>>, vector<128x256xf32>
        %c0_16 = arith.constant 0 : index
        %c0_17 = arith.constant 0 : index
        %33 = vector.load %arg7[%c0_16, %c0_17] : memref<1x256xf32, #tpu.memory_space<vmem>>, vector<1x256xf32>
        %34 = vector.broadcast %33 : vector<1x256xf32> to vector<128x256xf32>
        %35 = arith.addf %32, %34 : vector<128x256xf32>
        %cst = arith.constant 0.000000e+00 : f32
        %36 = vector.broadcast %cst : f32 to vector<128x256xf32>
        %37 = arith.maximumf %35, %36 : vector<128x256xf32>
        %38 = arith.truncf %37 : vector<128x256xf32> to vector<128x256xbf16>
        %39 = arith.index_cast %1 : i32 to index
        %c0_18 = arith.constant 0 : index
        %40 = vector.load %arg11[%39, %c0_18] : memref<128x256xbf16, #tpu.memory_space<vmem>>, vector<128x256xbf16>
        tpu.vector_store %arg11[%39, %c0_18], %38 {strides = array<i32>} : memref<128x256xbf16, #tpu.memory_space<vmem>>, vector<128x256xbf16>,
        %cst_19 = arith.constant 0.000000e+00 : f32
        %41 = vector.broadcast %cst_19 : f32 to vector<128x128xf32>
        %c0_20 = arith.constant 0 : index
        %c0_21 = arith.constant 0 : index
        %42 = vector.load %arg10[%c0_20, %c0_21] : memref<128x128xf32, #tpu.memory_space<vmem>>, vector<128x128xf32>
        tpu.vector_store %arg10[%c0_20, %c0_21], %41 {strides = array<i32>} : memref<128x128xf32, #tpu.memory_space<vmem>>, vector<128x128xf32>,
      } else {
      }
      %c1_i32 = arith.constant 1 : i32
      %26 = arith.cmpi eq, %arg0, %c1_i32 : i32
      %27 = arith.extui %26 : i1 to i32
      %c0_i32_12 = arith.constant 0 : i32
      %28 = arith.cmpi ne, %27, %c0_i32_12 : i32
      scf.if %28 {
        %c0_14 = arith.constant 0 : index
        %c0_15 = arith.constant 0 : index
        %32 = vector.load %arg14[%c0_14, %c0_15] : memref<128x256xf32, #tpu.memory_space<vmem>>, vector<128x128xf32>
        %c0_16 = arith.constant 0 : index
        %c0_17 = arith.constant 0 : index
        %33 = vector.load %arg8[%c0_16, %c0_17] : memref<1x128xf32, #tpu.memory_space<vmem>>, vector<1x128xf32>
        %34 = vector.broadcast %33 : vector<1x128xf32> to vector<128x128xf32>
        %35 = arith.addf %32, %34 : vector<128x128xf32>
        %cst = arith.constant 0.000000e+00 : f32
        %36 = vector.broadcast %cst : f32 to vector<128x128xf32>
        %37 = arith.maximumf %35, %36 : vector<128x128xf32>
        %38 = arith.truncf %37 : vector<128x128xf32> to vector<128x128xbf16>
        %39 = arith.index_cast %1 : i32 to index
        %c0_18 = arith.constant 0 : index
        %40 = vector.load %arg12[%39, %c0_18] : memref<128x128xbf16, #tpu.memory_space<vmem>>, vector<128x128xbf16>
        tpu.vector_store %arg12[%39, %c0_18], %38 {strides = array<i32>} : memref<128x128xbf16, #tpu.memory_space<vmem>>, vector<128x128xbf16>,
        %cst_19 = arith.constant 0.000000e+00 : f32
        %41 = vector.broadcast %cst_19 : f32 to vector<128x128xf32>
        %c0_20 = arith.constant 0 : index
        %c0_21 = arith.constant 0 : index
        %42 = vector.load %arg10[%c0_20, %c0_21] : memref<128x128xf32, #tpu.memory_space<vmem>>, vector<128x128xf32>
        tpu.vector_store %arg10[%c0_20, %c0_21], %41 {strides = array<i32>} : memref<128x128xf32, #tpu.memory_space<vmem>>, vector<128x128xf32>,
      } else {
      }
      %c2_i32 = arith.constant 2 : i32
      %29 = arith.cmpi eq, %arg0, %c2_i32 : i32
      %30 = arith.extui %29 : i1 to i32
      %c0_i32_13 = arith.constant 0 : i32
      %31 = arith.cmpi ne, %30, %c0_i32_13 : i32
      scf.if %31 {
        %c0_14 = arith.constant 0 : index
        %c0_15 = arith.constant 0 : index
        %32 = vector.load %arg14[%c0_14, %c0_15] : memref<128x256xf32, #tpu.memory_space<vmem>>, vector<128x128xf32>
        %c0_16 = arith.constant 0 : index
        %c0_17 = arith.constant 0 : index
        %33 = vector.load %arg9[%c0_16, %c0_17] : memref<1x128xf32, #tpu.memory_space<vmem>>, vector<1x128xf32>
        %34 = vector.broadcast %33 : vector<1x128xf32> to vector<128x128xf32>
        %35 = arith.addf %32, %34 : vector<128x128xf32>
        %c0_18 = arith.constant 0 : index
        %c0_19 = arith.constant 0 : index
        %36 = vector.load %arg10[%c0_18, %c0_19] : memref<128x128xf32, #tpu.memory_space<vmem>>, vector<128x128xf32>
        tpu.vector_store %arg10[%c0_18, %c0_19], %35 {strides = array<i32>} : memref<128x128xf32, #tpu.memory_space<vmem>>, vector<128x128xf32>,
      } else {
      }
    } else {
    }
    return
  }
  func.func @transform_0(%arg0: i32, %arg1: i32, %arg2: i32) -> (i32, i32) {
    %c0_i32 = arith.constant 0 : i32
    %c0_i32_0 = arith.constant 0 : i32
    %c0_i32_1 = arith.constant 0 : i32
    return %c0_i32, %c0_i32_0 : i32, i32
  }
  func.func @transform_1(%arg0: i32, %arg1: i32, %arg2: i32) -> (i32, i32, i32) {
    %c0_i32 = arith.constant 0 : i32
    %c0_i32_0 = arith.constant 0 : i32
    %c0_i32_1 = arith.constant 0 : i32
    %c0_i32_2 = arith.constant 0 : i32
    return %c0_i32, %c0_i32_0, %c0_i32_1 : i32, i32, i32
  }
  func.func @transform_2(%arg0: i32, %arg1: i32, %arg2: i32) -> (i32, i32) {
    %c0_i32 = arith.constant 0 : i32
    %c0_i32_0 = arith.constant 0 : i32
    %c0_i32_1 = arith.constant 0 : i32
    return %c0_i32, %c0_i32_0 : i32, i32
  }
  func.func @transform_3(%arg0: i32, %arg1: i32, %arg2: i32) -> (i32, i32) {
    %c0_i32 = arith.constant 0 : i32
    %c0_i32_0 = arith.constant 0 : i32
    %c0_i32_1 = arith.constant 0 : i32
    return %c0_i32, %c0_i32_0 : i32, i32
  }
  func.func @transform_4(%arg0: i32, %arg1: i32, %arg2: i32) -> (i32, i32) {
    %c0_i32 = arith.constant 0 : i32
    %c0_i32_0 = arith.constant 0 : i32
    %c0_i32_1 = arith.constant 0 : i32
    return %c0_i32, %c0_i32_0 : i32, i32
  }
  func.func @transform_5(%arg0: i32, %arg1: i32, %arg2: i32) -> (i32, i32) {
    %c0_i32 = arith.constant 0 : i32
    %c0_i32_0 = arith.constant 0 : i32
    %c0_i32_1 = arith.constant 0 : i32
    return %c0_i32, %c0_i32_0 : i32, i32
  }
  func.func @transform_6(%arg0: i32, %arg1: i32, %arg2: i32) -> (i32, i32) {
    %c0_i32 = arith.constant 0 : i32
    %c0_i32_0 = arith.constant 0 : i32
    %c0_i32_1 = arith.constant 0 : i32
    return %c0_i32, %c0_i32_0 : i32, i32
  }
  func.func @transform_7(%arg0: i32, %arg1: i32, %arg2: i32) -> (i32, i32) {
    %c0_i32 = arith.constant 0 : i32
    %c0_i32_0 = arith.constant 0 : i32
    return %arg1, %c0_i32 : i32, i32
  }
}

module attributes {stable_mosaic.version = 11 : i64} {
  func.func @_gcn_fused_kernel(%arg0: i32, %arg1: i32, %arg2: i32, %arg3: memref<128x256xbf16, #tpu.memory_space<vmem>>, %arg4: memref<1x128x128xbf16, #tpu.memory_space<vmem>>, %arg5: memref<256x128xbf16, #tpu.memory_space<vmem>>, %arg6: memref<128x128xbf16, #tpu.memory_space<vmem>>, %arg7: memref<1x256xf32, #tpu.memory_space<vmem>>, %arg8: memref<1x128xf32, #tpu.memory_space<vmem>>, %arg9: memref<1x128xf32, #tpu.memory_space<vmem>>, %arg10: memref<128x128xf32, #tpu.memory_space<vmem>>, %arg11: memref<128x256xbf16, #tpu.memory_space<vmem>>, %arg12: memref<128x128xbf16, #tpu.memory_space<vmem>>, %arg13: memref<128x128xbf16, #tpu.memory_space<vmem>>, %arg14: memref<128x256xf32, #tpu.memory_space<vmem>>) attributes {dimension_semantics = [#tpu.dimension_semantics<arbitrary>, #tpu.dimension_semantics<arbitrary>, #tpu.dimension_semantics<arbitrary>], iteration_bounds = array<i64: 3, 1, 1>, scalar_prefetch = 0 : i64, scratch_operands = 4 : i64, tpu.core_type = #tpu.core_type<tc>, window_params = [{pipeline_mode = #tpu.pipeline_mode<synchronous>, transform_indices = @transform_0, window_bounds = array<i64: 128, 256>}, {pipeline_mode = #tpu.pipeline_mode<synchronous>, transform_indices = @transform_1, window_bounds = array<i64: 1, 128, 128>}, {pipeline_mode = #tpu.pipeline_mode<synchronous>, transform_indices = @transform_2, window_bounds = array<i64: 256, 128>}, {pipeline_mode = #tpu.pipeline_mode<synchronous>, transform_indices = @transform_3, window_bounds = array<i64: 128, 128>}, {pipeline_mode = #tpu.pipeline_mode<synchronous>, transform_indices = @transform_4, window_bounds = array<i64: 1, 256>}, {pipeline_mode = #tpu.pipeline_mode<synchronous>, transform_indices = @transform_5, window_bounds = array<i64: 1, 128>}, {pipeline_mode = #tpu.pipeline_mode<synchronous>, transform_indices = @transform_6, window_bounds = array<i64: 1, 128>}, {transform_indices = @transform_7, window_bounds = array<i64: 128, 128>}]} {
    %c128_i32 = arith.constant 128 : i32
    %0 = arith.muli %arg1, %c128_i32 : i32
    %1 = tpu.assume_multiple %0, 128 : i32
    %c128_i32_0 = arith.constant 128 : i32
    %2 = arith.muli %arg2, %c128_i32_0 : i32
    %3 = tpu.assume_multiple %2, 128 : i32
    %4 = arith.index_cast %arg2 : i32 to index
    %5 = arith.index_cast %1 : i32 to index
    %c0 = arith.constant 0 : index
    %6 = vector.load %arg4[%4, %5, %c0] : memref<1x128x128xbf16, #tpu.memory_space<vmem>>, vector<1x128x128xbf16>
    %7 = vector.shape_cast %6 : vector<1x128x128xbf16> to vector<128x128xbf16>
    %c0_i32 = arith.constant 0 : i32
    %8 = arith.cmpi eq, %arg1, %c0_i32 : i32
    %9 = arith.extui %8 : i1 to i32
    %c0_i32_1 = arith.constant 0 : i32
    %10 = arith.cmpi ne, %9, %c0_i32_1 : i32
    scf.if %10 {
      %c1_i32 = arith.constant 1 : i32
      %23 = arith.cmpi eq, %arg0, %c1_i32 : i32
      %24 = arith.extui %23 : i1 to i32
      %c0_i32_10 = arith.constant 0 : i32
      %25 = arith.cmpi ne, %24, %c0_i32_10 : i32
      scf.if %25 {
        %29 = arith.index_cast %3 : i32 to index
        %c0_12 = arith.constant 0 : index
        %30 = vector.load %arg11[%29, %c0_12] : memref<128x256xbf16, #tpu.memory_space<vmem>>, vector<128x256xbf16>
        %c0_13 = arith.constant 0 : index
        %c0_14 = arith.constant 0 : index
        %31 = vector.load %arg5[%c0_13, %c0_14] : memref<256x128xbf16, #tpu.memory_space<vmem>>, vector<256x128xbf16>
        %cst = arith.constant dense<0.000000e+00> : vector<128x128xf32>
        %32 = tpu.matmul %30, %31, %cst {dimension_numbers = #tpu.dot_dimension_numbers<[1], [0], [0], [1], [0, 0, 1, 1], [], []>} : vector<128x256xbf16>, vector<256x128xbf16>, vector<128x128xf32> -> vector<128x128xf32>
        %33 = arith.truncf %32 : vector<128x128xf32> to vector<128x128xbf16>
        %34 = arith.index_cast %3 : i32 to index
        %c0_15 = arith.constant 0 : index
        %35 = vector.load %arg13[%34, %c0_15] : memref<128x128xbf16, #tpu.memory_space<vmem>>, vector<128x128xbf16>
        tpu.vector_store %arg13[%34, %c0_15], %33 {strides = array<i32>} : memref<128x128xbf16, #tpu.memory_space<vmem>>, vector<128x128xbf16>,
      } else {
      }
      %c2_i32 = arith.constant 2 : i32
      %26 = arith.cmpi eq, %arg0, %c2_i32 : i32
      %27 = arith.extui %26 : i1 to i32
      %c0_i32_11 = arith.constant 0 : i32
      %28 = arith.cmpi ne, %27, %c0_i32_11 : i32
      scf.if %28 {
        %29 = arith.index_cast %3 : i32 to index
        %c0_12 = arith.constant 0 : index
        %30 = vector.load %arg12[%29, %c0_12] : memref<128x128xbf16, #tpu.memory_space<vmem>>, vector<128x128xbf16>
        %c0_13 = arith.constant 0 : index
        %c0_14 = arith.constant 0 : index
        %31 = vector.load %arg6[%c0_13, %c0_14] : memref<128x128xbf16, #tpu.memory_space<vmem>>, vector<128x128xbf16>
        %cst = arith.constant dense<0.000000e+00> : vector<128x128xf32>
        %32 = tpu.matmul %30, %31, %cst {dimension_numbers = #tpu.dot_dimension_numbers<[1], [0], [0], [1], [0, 0, 1, 1], [], []>} : vector<128x128xbf16>, vector<128x128xbf16>, vector<128x128xf32> -> vector<128x128xf32>
        %33 = arith.truncf %32 : vector<128x128xf32> to vector<128x128xbf16>
        %34 = arith.index_cast %3 : i32 to index
        %c0_15 = arith.constant 0 : index
        %35 = vector.load %arg13[%34, %c0_15] : memref<128x128xbf16, #tpu.memory_space<vmem>>, vector<128x128xbf16>
        tpu.vector_store %arg13[%34, %c0_15], %33 {strides = array<i32>} : memref<128x128xbf16, #tpu.memory_space<vmem>>, vector<128x128xbf16>,
      } else {
      }
    } else {
    }
    %c0_i32_2 = arith.constant 0 : i32
    %11 = arith.cmpi eq, %arg2, %c0_i32_2 : i32
    %12 = arith.extui %11 : i1 to i32
    %c0_i32_3 = arith.constant 0 : i32
    %13 = arith.cmpi ne, %12, %c0_i32_3 : i32
    scf.if %13 {
      %cst = arith.constant 0.000000e+00 : f32
      %23 = vector.broadcast %cst : f32 to vector<128x256xf32>
      %c0_10 = arith.constant 0 : index
      %c0_11 = arith.constant 0 : index
      %24 = vector.load %arg14[%c0_10, %c0_11] : memref<128x256xf32, #tpu.memory_space<vmem>>, vector<128x256xf32>
      tpu.vector_store %arg14[%c0_10, %c0_11], %23 {strides = array<i32>} : memref<128x256xf32, #tpu.memory_space<vmem>>, vector<128x256xf32>,
    } else {
    }
    %c0_i32_4 = arith.constant 0 : i32
    %14 = arith.cmpi eq, %arg0, %c0_i32_4 : i32
    %15 = arith.extui %14 : i1 to i32
    %c0_i32_5 = arith.constant 0 : i32
    %16 = arith.cmpi ne, %15, %c0_i32_5 : i32
    scf.if %16 {
      %c0_10 = arith.constant 0 : index
      %c0_11 = arith.constant 0 : index
      %23 = vector.load %arg14[%c0_10, %c0_11] : memref<128x256xf32, #tpu.memory_space<vmem>>, vector<128x256xf32>
      %24 = arith.index_cast %3 : i32 to index
      %c0_12 = arith.constant 0 : index
      %25 = vector.load %arg3[%24, %c0_12] : memref<128x256xbf16, #tpu.memory_space<vmem>>, vector<128x256xbf16>
      %cst = arith.constant dense<0.000000e+00> : vector<128x256xf32>
      %26 = tpu.matmul %7, %25, %cst {dimension_numbers = #tpu.dot_dimension_numbers<[1], [0], [0], [1], [0, 0, 1, 1], [], []>} : vector<128x128xbf16>, vector<128x256xbf16>, vector<128x256xf32> -> vector<128x256xf32>
      %27 = arith.addf %23, %26 : vector<128x256xf32>
      %c0_13 = arith.constant 0 : index
      %c0_14 = arith.constant 0 : index
      %28 = vector.load %arg14[%c0_13, %c0_14] : memref<128x256xf32, #tpu.memory_space<vmem>>, vector<128x256xf32>
      tpu.vector_store %arg14[%c0_13, %c0_14], %27 {strides = array<i32>} : memref<128x256xf32, #tpu.memory_space<vmem>>, vector<128x256xf32>,
    } else {
    }
    %c0_i32_6 = arith.constant 0 : i32
    %17 = arith.cmpi sgt, %arg0, %c0_i32_6 : i32
    %18 = arith.extui %17 : i1 to i32
    %c0_i32_7 = arith.constant 0 : i32
    %19 = arith.cmpi ne, %18, %c0_i32_7 : i32
    scf.if %19 {
      %c0_10 = arith.constant 0 : index
      %c0_11 = arith.constant 0 : index
      %23 = vector.load %arg14[%c0_10, %c0_11] : memref<128x256xf32, #tpu.memory_space<vmem>>, vector<128x128xf32>
      %24 = arith.index_cast %3 : i32 to index
      %c0_12 = arith.constant 0 : index
      %25 = vector.load %arg13[%24, %c0_12] : memref<128x128xbf16, #tpu.memory_space<vmem>>, vector<128x128xbf16>
      %cst = arith.constant dense<0.000000e+00> : vector<128x128xf32>
      %26 = tpu.matmul %7, %25, %cst {dimension_numbers = #tpu.dot_dimension_numbers<[1], [0], [0], [1], [0, 0, 1, 1], [], []>} : vector<128x128xbf16>, vector<128x128xbf16>, vector<128x128xf32> -> vector<128x128xf32>
      %27 = arith.addf %23, %26 : vector<128x128xf32>
      %c0_13 = arith.constant 0 : index
      %c0_14 = arith.constant 0 : index
      %28 = vector.load %arg14[%c0_13, %c0_14] : memref<128x256xf32, #tpu.memory_space<vmem>>, vector<128x128xf32>
      tpu.vector_store %arg14[%c0_13, %c0_14], %27 {strides = array<i32>} : memref<128x256xf32, #tpu.memory_space<vmem>>, vector<128x128xf32>,
    } else {
    }
    %c0_i32_8 = arith.constant 0 : i32
    %20 = arith.cmpi eq, %arg2, %c0_i32_8 : i32
    %21 = arith.extui %20 : i1 to i32
    %c0_i32_9 = arith.constant 0 : i32
    %22 = arith.cmpi ne, %21, %c0_i32_9 : i32
    scf.if %22 {
      %c0_i32_10 = arith.constant 0 : i32
      %23 = arith.cmpi eq, %arg0, %c0_i32_10 : i32
      %24 = arith.extui %23 : i1 to i32
      %c0_i32_11 = arith.constant 0 : i32
      %25 = arith.cmpi ne, %24, %c0_i32_11 : i32
      scf.if %25 {
        %c0_14 = arith.constant 0 : index
        %c0_15 = arith.constant 0 : index
        %32 = vector.load %arg14[%c0_14, %c0_15] : memref<128x256xf32, #tpu.memory_space<vmem>>, vector<128x256xf32>
        %c0_16 = arith.constant 0 : index
        %c0_17 = arith.constant 0 : index
        %33 = vector.load %arg7[%c0_16, %c0_17] : memref<1x256xf32, #tpu.memory_space<vmem>>, vector<1x256xf32>
        %34 = vector.broadcast %33 : vector<1x256xf32> to vector<128x256xf32>
        %35 = arith.addf %32, %34 : vector<128x256xf32>
        %cst = arith.constant 0.000000e+00 : f32
        %36 = vector.broadcast %cst : f32 to vector<128x256xf32>
        %37 = arith.maximumf %35, %36 : vector<128x256xf32>
        %38 = arith.truncf %37 : vector<128x256xf32> to vector<128x256xbf16>
        %39 = arith.index_cast %1 : i32 to index
        %c0_18 = arith.constant 0 : index
        %40 = vector.load %arg11[%39, %c0_18] : memref<128x256xbf16, #tpu.memory_space<vmem>>, vector<128x256xbf16>
        tpu.vector_store %arg11[%39, %c0_18], %38 {strides = array<i32>} : memref<128x256xbf16, #tpu.memory_space<vmem>>, vector<128x256xbf16>,
        %cst_19 = arith.constant 0.000000e+00 : f32
        %41 = vector.broadcast %cst_19 : f32 to vector<128x128xf32>
        %c0_20 = arith.constant 0 : index
        %c0_21 = arith.constant 0 : index
        %42 = vector.load %arg10[%c0_20, %c0_21] : memref<128x128xf32, #tpu.memory_space<vmem>>, vector<128x128xf32>
        tpu.vector_store %arg10[%c0_20, %c0_21], %41 {strides = array<i32>} : memref<128x128xf32, #tpu.memory_space<vmem>>, vector<128x128xf32>,
      } else {
      }
      %c1_i32 = arith.constant 1 : i32
      %26 = arith.cmpi eq, %arg0, %c1_i32 : i32
      %27 = arith.extui %26 : i1 to i32
      %c0_i32_12 = arith.constant 0 : i32
      %28 = arith.cmpi ne, %27, %c0_i32_12 : i32
      scf.if %28 {
        %c0_14 = arith.constant 0 : index
        %c0_15 = arith.constant 0 : index
        %32 = vector.load %arg14[%c0_14, %c0_15] : memref<128x256xf32, #tpu.memory_space<vmem>>, vector<128x128xf32>
        %c0_16 = arith.constant 0 : index
        %c0_17 = arith.constant 0 : index
        %33 = vector.load %arg8[%c0_16, %c0_17] : memref<1x128xf32, #tpu.memory_space<vmem>>, vector<1x128xf32>
        %34 = vector.broadcast %33 : vector<1x128xf32> to vector<128x128xf32>
        %35 = arith.addf %32, %34 : vector<128x128xf32>
        %cst = arith.constant 0.000000e+00 : f32
        %36 = vector.broadcast %cst : f32 to vector<128x128xf32>
        %37 = arith.maximumf %35, %36 : vector<128x128xf32>
        %38 = arith.truncf %37 : vector<128x128xf32> to vector<128x128xbf16>
        %39 = arith.index_cast %1 : i32 to index
        %c0_18 = arith.constant 0 : index
        %40 = vector.load %arg12[%39, %c0_18] : memref<128x128xbf16, #tpu.memory_space<vmem>>, vector<128x128xbf16>
        tpu.vector_store %arg12[%39, %c0_18], %38 {strides = array<i32>} : memref<128x128xbf16, #tpu.memory_space<vmem>>, vector<128x128xbf16>,
        %cst_19 = arith.constant 0.000000e+00 : f32
        %41 = vector.broadcast %cst_19 : f32 to vector<128x128xf32>
        %c0_20 = arith.constant 0 : index
        %c0_21 = arith.constant 0 : index
        %42 = vector.load %arg10[%c0_20, %c0_21] : memref<128x128xf32, #tpu.memory_space<vmem>>, vector<128x128xf32>
        tpu.vector_store %arg10[%c0_20, %c0_21], %41 {strides = array<i32>} : memref<128x128xf32, #tpu.memory_space<vmem>>, vector<128x128xf32>,
      } else {
      }
      %c2_i32 = arith.constant 2 : i32
      %29 = arith.cmpi eq, %arg0, %c2_i32 : i32
      %30 = arith.extui %29 : i1 to i32
      %c0_i32_13 = arith.constant 0 : i32
      %31 = arith.cmpi ne, %30, %c0_i32_13 : i32
      scf.if %31 {
        %c0_14 = arith.constant 0 : index
        %c0_15 = arith.constant 0 : index
        %32 = vector.load %arg14[%c0_14, %c0_15] : memref<128x256xf32, #tpu.memory_space<vmem>>, vector<128x128xf32>
        %c0_16 = arith.constant 0 : index
        %c0_17 = arith.constant 0 : index
        %33 = vector.load %arg9[%c0_16, %c0_17] : memref<1x128xf32, #tpu.memory_space<vmem>>, vector<1x128xf32>
        %34 = vector.broadcast %33 : vector<1x128xf32> to vector<128x128xf32>
        %35 = arith.addf %32, %34 : vector<128x128xf32>
        %c0_18 = arith.constant 0 : index
        %c0_19 = arith.constant 0 : index
        %36 = vector.load %arg10[%c0_18, %c0_19] : memref<128x128xf32, #tpu.memory_space<vmem>>, vector<128x128xf32>
        tpu.vector_store %arg10[%c0_18, %c0_19], %35 {strides = array<i32>} : memref<128x128xf32, #tpu.memory_space<vmem>>, vector<128x128xf32>,
      } else {
      }
    } else {
    }
    return
  }
  func.func @transform_0(%arg0: i32, %arg1: i32, %arg2: i32) -> (i32, i32) {
    %c0_i32 = arith.constant 0 : i32
    %c0_i32_0 = arith.constant 0 : i32
    %c0_i32_1 = arith.constant 0 : i32
    return %c0_i32, %c0_i32_0 : i32, i32
  }
  func.func @transform_1(%arg0: i32, %arg1: i32, %arg2: i32) -> (i32, i32, i32) {
    %c0_i32 = arith.constant 0 : i32
    %c0_i32_0 = arith.constant 0 : i32
    %c0_i32_1 = arith.constant 0 : i32
    %c0_i32_2 = arith.constant 0 : i32
    return %c0_i32, %c0_i32_0, %c0_i32_1 : i32, i32, i32
  }
  func.func @transform_2(%arg0: i32, %arg1: i32, %arg2: i32) -> (i32, i32) {
    %c0_i32 = arith.constant 0 : i32
    %c0_i32_0 = arith.constant 0 : i32
    %c0_i32_1 = arith.constant 0 : i32
    return %c0_i32, %c0_i32_0 : i32, i32
  }
  func.func @transform_3(%arg0: i32, %arg1: i32, %arg2: i32) -> (i32, i32) {
    %c0_i32 = arith.constant 0 : i32
    %c0_i32_0 = arith.constant 0 : i32
    %c0_i32_1 = arith.constant 0 : i32
    return %c0_i32, %c0_i32_0 : i32, i32
  }
  func.func @transform_4(%arg0: i32, %arg1: i32, %arg2: i32) -> (i32, i32) {
    %c0_i32 = arith.constant 0 : i32
    %c0_i32_0 = arith.constant 0 : i32
    %c0_i32_1 = arith.constant 0 : i32
    return %c0_i32, %c0_i32_0 : i32, i32
  }
  func.func @transform_5(%arg0: i32, %arg1: i32, %arg2: i32) -> (i32, i32) {
    %c0_i32 = arith.constant 0 : i32
    %c0_i32_0 = arith.constant 0 : i32
    %c0_i32_1 = arith.constant 0 : i32
    return %c0_i32, %c0_i32_0 : i32, i32
  }
  func.func @transform_6(%arg0: i32, %arg1: i32, %arg2: i32) -> (i32, i32) {
    %c0_i32 = arith.constant 0 : i32
    %c0_i32_0 = arith.constant 0 : i32
    %c0_i32_1 = arith.constant 0 : i32
    return %c0_i32, %c0_i32_0 : i32, i32
  }
  func.func @transform_7(%arg0: i32, %arg1: i32, %arg2: i32) -> (i32, i32) {
    %c0_i32 = arith.constant 0 : i32
    %c0_i32_0 = arith.constant 0 : i32
    return %arg1, %c0_i32 : i32, i32
  }
}

</mosaic_0001>

<bundles_post_ra>
// kernel: tpu_custom_call.1
= control target key start
LH: loop header
LB: loop body
LE: loop exit
PB: predicated region body
PF: predicated region fallthrough
CT: control target
= control target key end

     0   :  { %12 = vsyncpa [#allocation7], 0  ;;  %s3591_s0 = inlined_call_operand.hbm [shape: bf16[128,256], index: 0, kind: input, shape index: {}]   ;;  %s3592_s1 = inlined_call_operand.hbm [shape: bf16[1,128,128], index: 1, kind: input, shape index: {}]   ;;  %s3593_s2 = inlined_call_operand.hbm [shape: bf16[256,128], index: 2, kind: input, shape index: {}]   ;;  %s3594_s3 = inlined_call_operand.hbm [shape: bf16[128,128], index: 3, kind: input, shape index: {}]   ;;  %s3595_s4 = inlined_call_operand.vmem [shape: f32[1,256], index: 4, kind: input, shape index: {}]   ;;  %s3596_s5 = inlined_call_operand.vmem [shape: f32[1,128], index: 5, kind: input, shape index: {}]   ;;  %s3597_s6 = inlined_call_operand.vmem [shape: f32[1,128], index: 6, kind: input, shape index: {}]   ;;  %s3598_s7 = inlined_call_operand.hbm [shape: f32[128,128], index: 7, kind: output, shape index: {}]  }
   0x1   :  { %13 = vsyncpa [#allocation10], 0 }
   0x2   :  { %14 = vsyncpa [#allocation13], 0 }
   0x3   :  { %15 = vsyncpa [#allocation8], 0  ;;  %s3312_s24 = smov 0   ;;  %s3314_s25 = smov 0  }
   0x4   :  { %s3316_s26 = smov 0  }
   0x5 LB: > { %s3257_s27 = smov [#allocation9]   ;;  %s2323_s29 = sadd.s32 4294967295, %s3255_s26   ;;  %s3255_s26 = sphi %s3316_s26, %s21_s26   ;;  %s3251_s25 = sphi %s3314_s25, %s3605_s25   ;;  %s3247_s24 = sphi %s3312_s24, %s3604_s24  }
   0x6   : > { %s243_s28 = sshll.u32 %s3257_s27, 4  ;;  %p2324_p0 = scmp.ge.s32.totalorder %s3255_s26, 1  ;;  %s244_s28 = int_to_ptr.vmem [resolvable:$true] %s243_s28 }
   0x7   : > { %p218_p1 = scmp.lt.s32.totalorder %s3255_s26, 4  ;;  %p3332_p2 = scmp.eq.s32.totalorder %s2323_s29, 0 }
   0x8   : > { %s40_s10 = sadd.s32 1, %s3251_s25  ;;  %s3258_s12 = smov [#allocation6]  }
   0x9   : > { %p3336_p3 = pnand %p2324_p0, %p218_p1  ;;  %p3349_p6 = scmp.ge.s32.totalorder %s40_s10, 3 }
   0xa   : > { %s230_s13 = sshll.u32 %s3258_s12, 4  ;;  %s3100_s14 = scalar_lea.vmem %s244_s28, 1024  ;;  %s231_s13 = int_to_ptr.vmem [resolvable:$true] %s230_s13 }
   0xb   : > { %p2948_p4 = pneg %p3336_p3  ;;  %p3101_p8 = scmp.ne.s32.totalorder %s244_s28, %s3100_s14 }
   0xc   : > { %p3108_p11 = scmp.lt.s32.totalorder %s244_s28, %s244_s28  ;;  %p3109_p12 = scmp.lt.s32.totalorder %s3100_s14, %s3100_s14 }
   0xd   : > { %p3344_p5 = pnand %p3332_p2, %p2948_p4 }
   0xe   : > { %p3110_p13 = por %p3109_p12, %p3108_p11 }
   0xf   : > { %p3091_p7 = pneg %p3344_p5 }
  0x11   : > { %p3103_p9 = pnand %p3101_p8, %p3091_p7 }
  0x13   : > { %p3104_p10 = pneg %p3103_p9 }
  0x15   : > { %p3111_p0 = pnand %p3110_p13, %p3104_p10 }
  0x17   : > { %3114 = shalt.err (!%p3111_p0)
}
  0x18   : > { %s3259_s15 = smov 64   ;;  %s3260_s16 = smov 4  }
  0x19   : > { %2954 = dma.hbm_to_vmem [thread:$0]  (!%p3344_p5), %s3592_s1, 1024, %s244_s28, [#allocation10], %s3259_s15, %s3259_s15, %s3260_s16  }
  0x1a   : > { %s3607_s10 = smov (%p3349_p6, %s40_s10), 0  ;;  %s3126_s19 = scalar_lea.vmem %s231_s13, 2048 }
  0x1b   : > { %p3127_p1 = scmp.ne.s32.totalorder %s231_s13, %s3126_s19  ;;  %p3134_p9 = scmp.lt.s32.totalorder %s231_s13, %s231_s13 }
  0x1c   : > { %p3135_p10 = scmp.lt.s32.totalorder %s3126_s19, %s3126_s19 }
  0x1d   : > { %p3129_p4 = pnand %p3127_p1, %p3091_p7 }
  0x1e   : > { %p3136_p11 = por %p3135_p10, %p3134_p9 }
  0x1f   : > { %p3130_p8 = pneg %p3129_p4 }
  0x21   : > { %p3137_p12 = pnand %p3136_p11, %p3130_p8 }
  0x23   : > { %3140 = shalt.err (!%p3137_p12)
}
  0x24   : > { %s3261_s20 = smov 128   ;;  %s3262_s21 = smov 8  }
  0x25   : > { %2951 = dma.hbm_to_vmem [thread:$0]  (!%p3344_p5), %s3591_s0, 2048, %s231_s13, [#allocation7], %s3261_s20, %s3261_s20, %s3262_s21  }
  0x26   : > { %s3263_s27 = smov [#allocation11]   ;;  %s3264_s11 = smov [#allocation12]  }
  0x27   : > { %s256_s28 = sshll.u32 %s3263_s27, 4  ;;  %s269_s12 = sshll.u32 %s3264_s11, 4  ;;  %s257_s28 = int_to_ptr.vmem [resolvable:$true] %s256_s28  ;;  %s270_s12 = int_to_ptr.vmem [resolvable:$true] %s269_s12 }
  0x28   : > { %s3152_s14 = scalar_lea.vmem %s257_s28, 2048  ;;  %p3160_p1 = scmp.lt.s32.totalorder %s257_s28, %s257_s28 }
  0x29   : > { %p3153_p6 = scmp.ne.s32.totalorder %s257_s28, %s3152_s14  ;;  %p3161_p4 = scmp.lt.s32.totalorder %s3152_s14, %s3152_s14 }
  0x2b   : > { %p3155_p13 = pnand %p3153_p6, %p3091_p7  ;;  %p3162_p8 = por %p3161_p4, %p3160_p1 }
  0x2d   : > { %p3156_p0 = pneg %p3155_p13 }
  0x2f   : > { %p3163_p9 = pnand %p3162_p8, %p3156_p0 }
  0x31   : > { %3166 = shalt.err (!%p3163_p9)
}
  0x32   : > { %2957 = dma.hbm_to_vmem [thread:$0]  (!%p3344_p5), %s3593_s2, 2048, %s257_s28, [#allocation10], %s3259_s15, %s3259_s15, %s3260_s16  }
  0x33   : > { %s3178_s18 = scalar_lea.vmem %s270_s12, 1024  ;;  %p3186_p6 = scmp.lt.s32.totalorder %s270_s12, %s270_s12 }
  0x34   : > { %p3179_p10 = scmp.ne.s32.totalorder %s270_s12, %s3178_s18  ;;  %p3187_p13 = scmp.lt.s32.totalorder %s3178_s18, %s3178_s18 }
  0x36   : > { %p3181_p11 = pnand %p3179_p10, %p3091_p7  ;;  %p3188_p0 = por %p3187_p13, %p3186_p6 }
  0x38   : > { %p3182_p12 = pneg %p3181_p11 }
  0x3a   : > { %p3189_p1 = pnand %p3188_p0, %p3182_p12 }
  0x3c   : > { %3192 = shalt.err (!%p3189_p1)
}
  0x3d   : > { %2960 = dma.hbm_to_vmem [thread:$0]  (!%p3344_p5), %s3594_s3, 1024, %s270_s12, [#allocation13], %s3259_s15, %s3259_s15, %s3260_s16  }
  0x3e   : > { %294 = sbr.rel (%p3336_p3) target bundleno = 1213 (0x4bd), region = 48 }
  0x43   : > { %3230 = dma.done.wait (%p3332_p2), [#allocation7], 2048  }
  0x44   : > { %3232 = vsyncadd (%p3332_p2), [#allocation7], 4294965248 }
  0x45   : > { %3234 = dma.done.wait (%p3332_p2), [#allocation10], 3072  }
  0x46   : > { %3236 = vsyncadd (%p3332_p2), [#allocation10], 4294964224 }
  0x47   : > { %3238 = dma.done.wait (%p3332_p2), [#allocation13], 1024  }
  0x48   : > { %3240 = vsyncadd (%p3332_p2), [#allocation13], 4294966272  ;;  %v3414_v0 = vld [vmem:[#allocation9] sm:$0xf]  ;;  %v3416_v1 = vld [vmem:[#allocation9 + $0x4] sm:$0xf] }
  0x49   : > { %v3418_v2 = vld [vmem:[#allocation9 + $0x8] sm:$0xf]  ;;  %v3420_v3 = vld [vmem:[#allocation9 + $0xc] sm:$0xf]  ;;  %v3422_v4 = vld [vmem:[#allocation9 + $0x10] sm:$0xf] }
  0x4a   : > { %v3424_v5 = vld [vmem:[#allocation9 + $0x14] sm:$0xf]  ;;  %v3426_v6 = vld [vmem:[#allocation9 + $0x18] sm:$0xf]  ;;  %v3428_v7 = vld [vmem:[#allocation9 + $0x1c] sm:$0xf] }
  0x4b   : > { %v3430_v8 = vld [vmem:[#allocation9 + $0x20] sm:$0xf]  ;;  %v3432_v9 = vld [vmem:[#allocation9 + $0x24] sm:$0xf]  ;;  %v3434_v10 = vld [vmem:[#allocation9 + $0x28] sm:$0xf] }
  0x4c   : > { %v3436_v11 = vld [vmem:[#allocation9 + $0x2c] sm:$0xf]  ;;  %v3438_v12 = vld [vmem:[#allocation9 + $0x30] sm:$0xf]  ;;  %v3440_v13 = vld [vmem:[#allocation9 + $0x34] sm:$0xf] }
  0x4d   : > { %v3442_v14 = vld [vmem:[#allocation9 + $0x38] sm:$0xf]  ;;  %v3444_v15 = vld [vmem:[#allocation9 + $0x3c] sm:$0xf]  ;;  %p2334_p2 = scmp.ne.s32.totalorder %s3247_s24, 1 }
  0x4f   : > { %361 = sbr.rel (%p2334_p2) target bundleno = 345 (0x159), region = 72 }
  0x54   : > { %v3010_v16 = vld [vmem:[#allocation11 + $0x78] sm:$0xff]   ;;  %v3012_v18 = vld [vmem:[#allocation11 + $0x70] sm:$0xff]   ;;  %v3014_v20 = vld [vmem:[#allocation11 + $0x68] sm:$0xff]  }
  0x55   : > { %v3011_v17 = vld [vmem:[#allocation11 + $0x38] sm:$0xff]   ;;  %2704 = vmatprep.subr.bf16.mxu0 %v3010_v16  ;;  %2864 = vmatprep.subr.bf16.mxu1 %v3010_v16  ;;  %v3013_v19 = vld [vmem:[#allocation11 + $0x30] sm:$0xff]   ;;  %v3015_v21 = vld [vmem:[#allocation11 + $0x28] sm:$0xff]  }
  0x56   : > { %2705 = vmatpush3.bf16.msra.mxu0 %v3011_v17  ;;  %2872 = vmatpush3.bf16.msra.mxu1 %v3011_v17  ;;  %v3016_v22 = vld [vmem:[#allocation11 + $0x60] sm:$0xff]   ;;  %v3018_v24 = vld [vmem:[#allocation11 + $0x58] sm:$0xff]   ;;  %v3020_v26 = vld [vmem:[#allocation11 + $0x50] sm:$0xff]  }
  0x57   : > { %2706 = vmatprep.subr.bf16.mxu0 %v3012_v18  ;;  %2865 = vmatprep.subr.bf16.mxu1 %v3012_v18  ;;  %v3017_v23 = vld [vmem:[#allocation11 + $0x20] sm:$0xff]   ;;  %v3019_v25 = vld [vmem:[#allocation11 + $0x18] sm:$0xff]   ;;  %v3021_v31 = vld [vmem:[#allocation11 + $0x10] sm:$0xff]  }
  0x58   : > { %v3028_v27 = vld [vmem:[#allocation2 + $0x34] ss:$-48 sps:$4 sm:$0xff]   ;;  %v3022_v32 = vld [vmem:[#allocation11 + $0x48] sm:$0xff]   ;;  %v369_v36 = vld [vmem:[#allocation2 + $0x58] sm:$0xff] }
  0x59   : > { %v375_v28 = vld [vmem:[#allocation2 + $0x40] sm:$0xff]  ;;  %623 = vmatprep.mubr.bf16.mxu0 %v3028_v27  ;;  %v3023_v33 = vld [vmem:[#allocation11 + $0x8] sm:$0xff]   ;;  %v370_v37 = vld [vmem:[#allocation2 + $0x18] sm:$0xff] }
  0x5a   : > { %2707 = vmatpush3.bf16.msra.mxu0 %v3013_v19  ;;  %2873 = vmatpush3.bf16.msra.mxu1 %v3013_v19  ;;  %v376_v29 = vld [vmem:[#allocation2 + $0x20] sm:$0xff]  ;;  %v2338_v40 = vcombine.high %v369_v36, %v370_v37  ;;  %v3029_v41 = vld [vmem:[#allocation2 + $0x14] ss:$40 sps:$4 sm:$0xff]   ;;  %v2337_v42 = vcombine.low %v369_v36, %v370_v37  ;;  %v3031_v43 = vld [vmem:[#allocation2 + $0x10] ss:$40 sps:$4 sm:$0xff]  }
  0x5b   : > { %2708 = vmatprep.subr.bf16.mxu0 %v3014_v20  ;;  %2866 = vmatprep.subr.bf16.mxu1 %v3014_v20  ;;  %v2344_v30 = vcombine.high %v375_v28, %v376_v29  ;;  %v3024_v34 = vld [vmem:[#allocation11 + $0x40] sm:$0xff]   ;;  %v2343_v39 = vcombine.low %v375_v28, %v376_v29  ;;  %v3032_v44 = vld [vmem:[#allocation2 + $0x54] ss:$24 sps:$4 sm:$0xff]   ;;  %v3036_v48 = vld [vmem:[#allocation2 + $0x50] ss:$24 sps:$4 sm:$0xff]  }
  0x5c   : > { %v3025_v35 = vld [vmem:[#allocation11] sm:$0xff]   ;;  %v373_v46 = vld [vmem:[#allocation2 + $0x8] sm:$0xff] }
  0x5d   : > { %655 = vmatprep.mubr.bf16.mxu1 %v2344_v30  ;;  %v3026_v38 = vld [vmem:[#allocation2 + $0x30] ss:$-48 sps:$4 sm:$0xff]   ;;  %v3034_v45 = vld [vmem:[#allocation2 + $0x64] ss:$16 sps:$4 sm:$0xff]   ;;  %v374_v47 = vld [vmem:[#allocation2 + $0x48] sm:$0xff] }
  0x5e   : > { %2709 = vmatpush3.bf16.msra.mxu0 %v3015_v21  ;;  %2874 = vmatpush3.bf16.msra.mxu1 %v3015_v21  ;;  %v3037_v49 = vld [vmem:[#allocation2 + $0x60] ss:$16 sps:$4 sm:$0xff]   ;;  %v2342_v50 = vcombine.high %v373_v46, %v374_v47  ;;  %v3038_v51 = vld [vmem:[#allocation2 + $0x7c] ss:$-80 sps:$4 sm:$0xff]   ;;  %v2341_v52 = vcombine.low %v373_v46, %v374_v47  ;;  %v3040_v53 = vld [vmem:[#allocation2 + $0x78] ss:$-80 sps:$4 sm:$0xff]  }
  0x5f   : > { %2710 = vmatprep.subr.bf16.mxu0 %v3016_v22  ;;  %2867 = vmatprep.subr.bf16.mxu1 %v3016_v22 }
  0x62   : > { %2711 = vmatpush3.bf16.msra.mxu0 %v3017_v23  ;;  %2875 = vmatpush3.bf16.msra.mxu1 %v3017_v23 }
  0x63   : > { %2712 = vmatprep.subr.bf16.mxu0 %v3018_v24  ;;  %2868 = vmatprep.subr.bf16.mxu1 %v3018_v24 }
  0x66   : > { %2713 = vmatpush3.bf16.msra.mxu0 %v3019_v25  ;;  %2876 = vmatpush3.bf16.msra.mxu1 %v3019_v25 }
  0x67   : > { %2714 = vmatprep.subr.bf16.mxu0 %v3020_v26  ;;  %2869 = vmatprep.subr.bf16.mxu1 %v3020_v26 }
  0x6a   : > { %2715 = vmatpush3.bf16.msra.mxu0 %v3021_v31  ;;  %2877 = vmatpush3.bf16.msra.mxu1 %v3021_v31 }
  0x6b   : > { %2716 = vmatprep.subr.bf16.mxu0 %v3022_v32  ;;  %2870 = vmatprep.subr.bf16.mxu1 %v3022_v32 }
  0x6e   : > { %2717 = vmatpush3.bf16.msra.mxu0 %v3023_v33  ;;  %2878 = vmatpush3.bf16.msra.mxu1 %v3023_v33 }
  0x6f   : > { %2718 = vmatprep.subr.bf16.mxu0 %v3024_v34  ;;  %2871 = vmatprep.subr.bf16.mxu1 %v3024_v34 }
  0x72   : > { %2719 = vmatpush3.bf16.msra.mxu0 %v3025_v35  ;;  %2879 = vmatpush3.bf16.msra.mxu1 %v3025_v35 }
  0x75   : > { %624 = vmatmul.mubr.bf16.vlgmr.msra.gmra.mxu0 %v3026_v38  ;;  %656 = vmatmul.mubr.bf16.vlgmr.msra.gmra.mxu1 %v2343_v39 }
  0x76   : > { %631 = vmatprep.mubr.bf16.mxu0 %v2338_v40  ;;  %663 = vmatprep.mubr.bf16.mxu1 %v3029_v41 }
  0x7d   : > { %632 = vmatmul.mubr.bf16.gmra.mxu0 %v2337_v42  ;;  %664 = vmatmul.mubr.bf16.gmra.mxu1 %v3031_v43 }
  0x7e   : > { %639 = vmatprep.mubr.bf16.mxu0 %v3032_v44  ;;  %671 = vmatprep.mubr.bf16.mxu1 %v3034_v45 }
  0x85   : > { %640 = vmatmul.mubr.bf16.gmra.mxu0 %v3036_v48  ;;  %672 = vmatmul.mubr.bf16.gmra.mxu1 %v3037_v49 }
  0x86   : > { %647 = vmatprep.mubr.bf16.mxu0 %v2342_v50  ;;  %679 = vmatprep.mubr.bf16.mxu1 %v3038_v51 }
  0x8d   : > { %648 = vmatmul.mubr.bf16.gmra.mxu0 %v2341_v52  ;;  %680 = vmatmul.mubr.bf16.gmra.mxu1 %v3040_v53 }
 0x135   : > { %v2720_v54 = vpop.f32.mrf.mxu0  ;;  %v2744_v55 = vpop.f32.mrf.mxu1 }
 0x137   : > { %v2721_v56 = vpop.f32.mrf.mxu0  ;;  %v2745_v57 = vpop.f32.mrf.mxu1 }
 0x138   : > { %v2722_v62 = vadd.f32 %v2721_v56, %v2720_v54  ;;  %v2746_v63 = vadd.f32 %v2745_v57, %v2744_v55 }
 0x139   : > { %v2723_v58 = vpop.f32.mrf.mxu0  ;;  %v2747_v59 = vpop.f32.mrf.mxu1 }
 0x13b   : > { %v2724_v60 = vpop.f32.mrf.mxu0  ;;  %v2748_v61 = vpop.f32.mrf.mxu1 }
 0x13c   : > { %v2725_v16 = vadd.f32 %v2724_v60, %v2723_v58  ;;  %v2749_v17 = vadd.f32 %v2748_v61, %v2747_v59 }
 0x13d   : > { %v2726_v18 = vpop.f32.mrf.mxu0  ;;  %v2750_v19 = vpop.f32.mrf.mxu1 }
 0x13e   : > { %v2566_v20 = vpack.c.bf16 %v2725_v16, %v2722_v62  ;;  %v2586_v21 = vpack.c.bf16 %v2749_v17, %v2746_v63 }
 0x13f   : > { %v2727_v22 = vpop.f32.mrf.mxu0  ;;  %v2751_v23 = vpop.f32.mrf.mxu1 }
 0x140   : > { %2567 = vst [vmem:[#allocation4] sm:$0xff] %v2566_v20   ;;  %2686 = vst [vmem:[#allocation4 + $0x20] sm:$0xff] %v2586_v21   ;;  %v2728_v28 = vadd.f32 %v2727_v22, %v2726_v18  ;;  %v2752_v29 = vadd.f32 %v2751_v23, %v2750_v19 }
 0x141   : > { %v2729_v24 = vpop.f32.mrf.mxu0  ;;  %v2753_v25 = vpop.f32.mrf.mxu1 }
 0x143   : > { %v2730_v26 = vpop.f32.mrf.mxu0  ;;  %v2754_v27 = vpop.f32.mrf.mxu1 }
 0x144   : > { %v2731_v30 = vadd.f32 %v2730_v26, %v2729_v24  ;;  %v2755_v31 = vadd.f32 %v2754_v27, %v2753_v25 }
 0x145   : > { %v2732_v32 = vpop.f32.mrf.mxu0  ;;  %v2756_v33 = vpop.f32.mrf.mxu1 }
 0x146   : > { %v2571_v34 = vpack.c.bf16 %v2731_v30, %v2728_v28  ;;  %v2591_v35 = vpack.c.bf16 %v2755_v31, %v2752_v29 }
 0x147   : > { %v2733_v36 = vpop.f32.mrf.mxu0  ;;  %v2757_v37 = vpop.f32.mrf.mxu1 }
 0x148   : > { %2683 = vst [vmem:[#allocation4 + $0x8] sm:$0xff] %v2571_v34   ;;  %2687 = vst [vmem:[#allocation4 + $0x28] sm:$0xff] %v2591_v35   ;;  %v2734_v42 = vadd.f32 %v2733_v36, %v2732_v32  ;;  %v2758_v43 = vadd.f32 %v2757_v37, %v2756_v33 }
 0x149   : > { %v2735_v38 = vpop.f32.mrf.mxu0  ;;  %v2759_v39 = vpop.f32.mrf.mxu1 }
 0x14b   : > { %v2736_v40 = vpop.f32.mrf.mxu0  ;;  %v2760_v41 = vpop.f32.mrf.mxu1 }
 0x14c   : > { %v2737_v44 = vadd.f32 %v2736_v40, %v2735_v38  ;;  %v2761_v45 = vadd.f32 %v2760_v41, %v2759_v39 }
 0x14d   : > { %v2738_v46 = vpop.f32.mrf.mxu0  ;;  %v2762_v47 = vpop.f32.mrf.mxu1 }
 0x14e   : > { %v2576_v48 = vpack.c.bf16 %v2737_v44, %v2734_v42  ;;  %v2596_v49 = vpack.c.bf16 %v2761_v45, %v2758_v43 }
 0x14f   : > { %v2739_v50 = vpop.f32.mrf.mxu0  ;;  %v2763_v51 = vpop.f32.mrf.mxu1 }
 0x150   : > { %2684 = vst [vmem:[#allocation4 + $0x10] sm:$0xff] %v2576_v48   ;;  %2688 = vst [vmem:[#allocation4 + $0x30] sm:$0xff] %v2596_v49   ;;  %v2740_v56 = vadd.f32 %v2739_v50, %v2738_v46  ;;  %v2764_v57 = vadd.f32 %v2763_v51, %v2762_v47 }
 0x151   : > { %v2741_v52 = vpop.f32.mrf.mxu0  ;;  %v2765_v53 = vpop.f32.mrf.mxu1 }
 0x153   : > { %v2742_v54 = vpop.f32.mrf.mxu0  ;;  %v2766_v55 = vpop.f32.mrf.mxu1 }
 0x154   : > { %v2743_v58 = vadd.f32 %v2742_v54, %v2741_v52  ;;  %v2767_v59 = vadd.f32 %v2766_v55, %v2765_v53 }
 0x156   : > { %v2581_v60 = vpack.c.bf16 %v2743_v58, %v2740_v56  ;;  %v2601_v61 = vpack.c.bf16 %v2767_v59, %v2764_v57 }
 0x158   : > { %2685 = vst [vmem:[#allocation4 + $0x18] sm:$0xff] %v2581_v60   ;;  %2689 = vst [vmem:[#allocation4 + $0x38] sm:$0xff] %v2601_v61  }
 0x159 PF: > { %p2383_p3 = scmp.ne.s32.totalorder %s3247_s24, 2 }
 0x15b   : > { %773 = sbr.rel (%p2383_p3) target bundleno = 595 (0x253), region = 76 }
 0x160   : > { %v3041_v62 = vld [vmem:[#allocation12 + $0x38] sm:$0xff]   ;;  %v3042_v63 = vld [vmem:[#allocation12 + $0x30] sm:$0xff]   ;;  %v3043_v16 = vld [vmem:[#allocation12 + $0x28] sm:$0xff]  }
 0x161   : > { %2800 = vmatprep.subr.bf16.mxu0 %v3041_v62  ;;  %2880 = vmatprep.subr.bf16.mxu1 %v3041_v62  ;;  %v3044_v17 = vld [vmem:[#allocation12 + $0x20] sm:$0xff]   ;;  %v3045_v20 = vld [vmem:[#allocation12 + $0x18] sm:$0xff]   ;;  %v3046_v21 = vld [vmem:[#allocation12 + $0x10] sm:$0xff]  }
 0x162   : > { %2801 = vmatpush3.bf16.msra.mxu0 %v3041_v62  ;;  %2888 = vmatpush3.bf16.msra.mxu1 %v3041_v62  ;;  %v3049_v18 = vld [vmem:[#allocation3] sm:$0xff]   ;;  %v3047_v22 = vld [vmem:[#allocation12 + $0x8] sm:$0xff]   ;;  %v3053_v26 = vld [vmem:[#allocation3 + $0x10] sm:$0xff]  }
 0x163   : > { %2802 = vmatprep.subr.bf16.mxu0 %v3042_v63  ;;  %2881 = vmatprep.subr.bf16.mxu1 %v3042_v63  ;;  %v3050_v19 = vld [vmem:[#allocation3 + $0x20] sm:$0xff]   ;;  %v3051_v24 = vld [vmem:[#allocation3 + $0x8] sm:$0xff]   ;;  %v3054_v27 = vld [vmem:[#allocation3 + $0x30] sm:$0xff]  }
 0x164   : > { %2816 = vmatprep.mubr.bf16.mxu0 %v3049_v18  ;;  %2824 = vmatprep.mubr.bf16.mxu1 %v3050_v19  ;;  %v3048_v23 = vld [vmem:[#allocation12] sm:$0xff]   ;;  %v3052_v25 = vld [vmem:[#allocation3 + $0x28] sm:$0xff]   ;;  %v3055_v28 = vld [vmem:[#allocation3 + $0x18] sm:$0xff]  }
 0x165   : > { %v3056_v29 = vld [vmem:[#allocation3 + $0x38] sm:$0xff]  }
 0x166   : > { %2803 = vmatpush3.bf16.msra.mxu0 %v3042_v63  ;;  %2889 = vmatpush3.bf16.msra.mxu1 %v3042_v63 }
 0x167   : > { %2804 = vmatprep.subr.bf16.mxu0 %v3043_v16  ;;  %2882 = vmatprep.subr.bf16.mxu1 %v3043_v16 }
 0x16a   : > { %2805 = vmatpush3.bf16.msra.mxu0 %v3043_v16  ;;  %2890 = vmatpush3.bf16.msra.mxu1 %v3043_v16 }
 0x16b   : > { %2806 = vmatprep.subr.bf16.mxu0 %v3044_v17  ;;  %2883 = vmatprep.subr.bf16.mxu1 %v3044_v17 }
 0x16e   : > { %2807 = vmatpush3.bf16.msra.mxu0 %v3044_v17  ;;  %2891 = vmatpush3.bf16.msra.mxu1 %v3044_v17 }
 0x16f   : > { %2808 = vmatprep.subr.bf16.mxu0 %v3045_v20  ;;  %2884 = vmatprep.subr.bf16.mxu1 %v3045_v20 }
 0x172   : > { %2809 = vmatpush3.bf16.msra.mxu0 %v3045_v20  ;;  %2892 = vmatpush3.bf16.msra.mxu1 %v3045_v20 }
 0x173   : > { %2810 = vmatprep.subr.bf16.mxu0 %v3046_v21  ;;  %2885 = vmatprep.subr.bf16.mxu1 %v3046_v21 }
 0x176   : > { %2811 = vmatpush3.bf16.msra.mxu0 %v3046_v21  ;;  %2893 = vmatpush3.bf16.msra.mxu1 %v3046_v21 }
 0x177   : > { %2812 = vmatprep.subr.bf16.mxu0 %v3047_v22  ;;  %2886 = vmatprep.subr.bf16.mxu1 %v3047_v22 }
 0x17a   : > { %2813 = vmatpush3.bf16.msra.mxu0 %v3047_v22  ;;  %2894 = vmatpush3.bf16.msra.mxu1 %v3047_v22 }
 0x17b   : > { %2814 = vmatprep.subr.bf16.mxu0 %v3048_v23  ;;  %2887 = vmatprep.subr.bf16.mxu1 %v3048_v23 }
 0x17e   : > { %2815 = vmatpush3.bf16.msra.mxu0 %v3048_v23  ;;  %2895 = vmatpush3.bf16.msra.mxu1 %v3048_v23 }
 0x181   : > { %2817 = vmatmul.mubr.bf16.vlgmr.msra.gmra.mxu0 %v3051_v24  ;;  %2825 = vmatmul.mubr.bf16.vlgmr.msra.gmra.mxu1 %v3052_v25 }
 0x182   : > { %2820 = vmatprep.mubr.bf16.mxu0 %v3053_v26  ;;  %2828 = vmatprep.mubr.bf16.mxu1 %v3054_v27 }
 0x189   : > { %2821 = vmatmul.mubr.bf16.gmra.mxu0 %v3055_v28  ;;  %2829 = vmatmul.mubr.bf16.gmra.mxu1 %v3056_v29 }
 0x241   : > { %v2818_v30 = vpop.f32.mrf.mxu0  ;;  %v2826_v31 = vpop.f32.mrf.mxu1 }
 0x243   : > { %v940_v32 = vpop.f32.mrf.mxu0  ;;  %v972_v33 = vpop.f32.mrf.mxu1 }
 0x245   : > { %v2819_v34 = vpop.f32.mrf.mxu0  ;;  %v2827_v35 = vpop.f32.mrf.mxu1 }
 0x246   : > { %v2611_v36 = vpack.c.bf16 %v2819_v34, %v2818_v30  ;;  %v2631_v37 = vpack.c.bf16 %v2827_v35, %v2826_v31 }
 0x247   : > { %v943_v38 = vpop.f32.mrf.mxu0  ;;  %v975_v39 = vpop.f32.mrf.mxu1 }
 0x248   : > { %2690 = vst [vmem:[#allocation4 + $0x8] sm:$0xff] %v2611_v36   ;;  %2694 = vst [vmem:[#allocation4 + $0x28] sm:$0xff] %v2631_v37   ;;  %v2606_v40 = vpack.c.bf16 %v943_v38, %v940_v32  ;;  %v2626_v41 = vpack.c.bf16 %v975_v39, %v972_v33 }
 0x249   : > { %v2822_v42 = vpop.f32.mrf.mxu0  ;;  %v2830_v43 = vpop.f32.mrf.mxu1 }
 0x24a   : > { %2607 = vst [vmem:[#allocation4] sm:$0xff] %v2606_v40   ;;  %2693 = vst [vmem:[#allocation4 + $0x20] sm:$0xff] %v2626_v41  }
 0x24b   : > { %v956_v44 = vpop.f32.mrf.mxu0  ;;  %v988_v45 = vpop.f32.mrf.mxu1 }
 0x24d   : > { %v2823_v46 = vpop.f32.mrf.mxu0  ;;  %v2831_v47 = vpop.f32.mrf.mxu1 }
 0x24e   : > { %v2621_v48 = vpack.c.bf16 %v2823_v46, %v2822_v42  ;;  %v2641_v49 = vpack.c.bf16 %v2831_v47, %v2830_v43 }
 0x24f   : > { %v959_v50 = vpop.f32.mrf.mxu0  ;;  %v991_v51 = vpop.f32.mrf.mxu1 }
 0x250   : > { %2692 = vst [vmem:[#allocation4 + $0x18] sm:$0xff] %v2621_v48   ;;  %2696 = vst [vmem:[#allocation4 + $0x38] sm:$0xff] %v2641_v49   ;;  %v2616_v52 = vpack.c.bf16 %v959_v50, %v956_v44  ;;  %v2636_v53 = vpack.c.bf16 %v991_v51, %v988_v45 }
 0x252   : > { %2691 = vst [vmem:[#allocation4 + $0x10] sm:$0xff] %v2616_v52   ;;  %2695 = vst [vmem:[#allocation4 + $0x30] sm:$0xff] %v2636_v53  }
 0x253 PF: > { %v3265_v54 = vmov 0.0   ;;  %p2416_p5 = scmp.ne.s32.totalorder %s3247_s24, 0 }
 0x254   : > { %1089 = vst [vmem:[#allocation5 + $0xa8] sm:$0xff] %v3265_v54  ;;  %1090 = vst [vmem:[#allocation5 + $0x68] sm:$0xff] %v3265_v54 }
 0x255   : > { %1091 = vst [vmem:[#allocation5 + $0x10] sm:$0xff] %v3265_v54  ;;  %1092 = vst [vmem:[#allocation5 + $0xc0] sm:$0xff] %v3265_v54 }
 0x256   : > { %1093 = vst [vmem:[#allocation5 + $0xc8] sm:$0xff] %v3265_v54  ;;  %1094 = vst [vmem:[#allocation5 + $0xb0] sm:$0xff] %v3265_v54 }
 0x257   : > { %1095 = vst [vmem:[#allocation5 + $0x70] sm:$0xff] %v3265_v54  ;;  %1096 = vst [vmem:[#allocation5 + $0x38] sm:$0xff] %v3265_v54 }
 0x258   : > { %1097 = vst [vmem:[#allocation5 + $0x48] sm:$0xff] %v3265_v54  ;;  %1098 = vst [vmem:[#allocation5 + $0xf8] sm:$0xff] %v3265_v54 }
 0x259   : > { %1099 = vst [vmem:[#allocation5 + $0x78] sm:$0xff] %v3265_v54  ;;  %1100 = vst [vmem:[#allocation5 + $0x88] sm:$0xff] %v3265_v54 }
 0x25a   : > { %1101 = vst [vmem:[#allocation5 + $0xf0] sm:$0xff] %v3265_v54  ;;  %1102 = vst [vmem:[#allocation5 + $0x18] sm:$0xff] %v3265_v54 }
 0x25b   : > { %1103 = vst [vmem:[#allocation5 + $0x30] sm:$0xff] %v3265_v54  ;;  %1104 = vst [vmem:[#allocation5 + $0x50] sm:$0xff] %v3265_v54 }
 0x25c   : > { %1105 = vst [vmem:[#allocation5 + $0xb8] sm:$0xff] %v3265_v54  ;;  %1106 = vst [vmem:[#allocation5 + $0xd0] sm:$0xff] %v3265_v54 }
 0x25d   : > { %1107 = vst [vmem:[#allocation5 + $0xd8] sm:$0xff] %v3265_v54  ;;  %1108 = vst [vmem:[#allocation5 + $0x58] sm:$0xff] %v3265_v54 }
 0x25e   : > { %1109 = vst [vmem:[#allocation5 + $0x80] sm:$0xff] %v3265_v54  ;;  %1110 = vst [vmem:[#allocation5 + $0x40] sm:$0xff] %v3265_v54 }
 0x25f   : > { %1111 = vst [vmem:[#allocation5 + $0x28] sm:$0xff] %v3265_v54  ;;  %1112 = vst [vmem:[#allocation5] sm:$0xff] %v3265_v54  ;;  %1124 = sbr.rel (%p2416_p5) target bundleno = 872 (0x368), region = 84 }
 0x260   : > { %1113 = vst [vmem:[#allocation5 + $0x90] sm:$0xff] %v3265_v54  ;;  %1114 = vst [vmem:[#allocation5 + $0xe8] sm:$0xff] %v3265_v54 }
 0x261   : > { %1115 = vst [vmem:[#allocation5 + $0xa0] sm:$0xff] %v3265_v54  ;;  %1116 = vst [vmem:[#allocation5 + $0x20] sm:$0xff] %v3265_v54 }
 0x262   : > { %1117 = vst [vmem:[#allocation5 + $0x8] sm:$0xff] %v3265_v54  ;;  %1118 = vst [vmem:[#allocation5 + $0xe0] sm:$0xff] %v3265_v54 }
 0x263   : > { %1119 = vst [vmem:[#allocation5 + $0x60] sm:$0xff] %v3265_v54  ;;  %1120 = vst [vmem:[#allocation5 + $0x98] sm:$0xff] %v3265_v54 }
 0x264   : > { %v3057_v55 = vld [vmem:[#allocation6 + $0x74] ss:$8 sps:$4 sm:$0xff]   ;;  %v3059_v56 = vld [vmem:[#allocation6 + $0x70] ss:$8 sps:$4 sm:$0xff]   ;;  %v3266_v57 = vmov 0   ;;  %v2417_v24 = vcombine.low %v3414_v0, %v3416_v1  ;;  %v2421_v25 = vcombine.low %v3430_v8, %v3432_v9  ;;  %v2418_v26 = vcombine.low %v3418_v2, %v3420_v3  ;;  %v1125_v32 = vld [vmem:[#allocation5 + $0xa8] sm:$0xff] }
 0x265   : > { %1338 = vmatprep.mubr.bf16.mxu0 %v3266_v57  ;;  %1378 = vmatprep.mubr.bf16.mxu1 %v3266_v57  ;;  %v3060_v58 = vld [vmem:[#allocation6 + $0x64] ss:$8 sps:$4 sm:$0xff]   ;;  %v3062_v59 = vld [vmem:[#allocation6 + $0x60] ss:$8 sps:$4 sm:$0xff]   ;;  %v3063_v60 = vld [vmem:[#allocation6 + $0x54] ss:$8 sps:$4 sm:$0xff]   ;;  %v2422_v27 = vcombine.low %v3434_v10, %v3436_v11  ;;  %v2419_v28 = vcombine.low %v3422_v4, %v3424_v5  ;;  %v2423_v29 = vcombine.low %v3438_v12, %v3440_v13 }
 0x266   : > { %1306 = vmatprep.subr.bf16.mxu0 %v3057_v55  ;;  %2896 = vmatprep.subr.bf16.mxu1 %v3057_v55  ;;  %v3065_v61 = vld [vmem:[#allocation6 + $0x50] ss:$8 sps:$4 sm:$0xff]   ;;  %v3066_v62 = vld [vmem:[#allocation6 + $0x44] ss:$8 sps:$4 sm:$0xff]   ;;  %v3068_v63 = vld [vmem:[#allocation6 + $0x40] ss:$8 sps:$4 sm:$0xff]   ;;  %v2420_v30 = vcombine.low %v3426_v6, %v3428_v7  ;;  %v2424_v31 = vcombine.low %v3442_v14, %v3444_v15 }
 0x267   : > { %1307 = vmatpush1.bf16.msra.mxu0 %v3059_v56  ;;  %2904 = vmatpush1.bf16.msra.mxu1 %v3059_v56  ;;  %v3069_v16 = vld [vmem:[#allocation6 + $0x34] ss:$8 sps:$4 sm:$0xff]   ;;  %v3071_v17 = vld [vmem:[#allocation6 + $0x30] ss:$8 sps:$4 sm:$0xff]   ;;  %v3072_v18 = vld [vmem:[#allocation6 + $0x24] ss:$8 sps:$4 sm:$0xff]  }
 0x268   : > { %1308 = vmatprep.subr.bf16.mxu0 %v3060_v58  ;;  %2897 = vmatprep.subr.bf16.mxu1 %v3060_v58  ;;  %v3074_v19 = vld [vmem:[#allocation6 + $0x20] ss:$8 sps:$4 sm:$0xff]   ;;  %v3075_v20 = vld [vmem:[#allocation6 + $0x14] ss:$8 sps:$4 sm:$0xff]   ;;  %v3077_v21 = vld [vmem:[#allocation6 + $0x10] ss:$8 sps:$4 sm:$0xff]  }
 0x269   : > { %v3078_v22 = vld [vmem:[#allocation6 + $0x4] ss:$8 sps:$4 sm:$0xff]   ;;  %v3080_v23 = vld [vmem:[#allocation6] ss:$8 sps:$4 sm:$0xff]   ;;  %v1141_v33 = vld [vmem:[#allocation5 + $0xb8] sm:$0xff] }
 0x26a   : > { %v1126_v36 = vld [vmem:[#allocation5 + $0x68] sm:$0xff]  ;;  %v1142_v37 = vld [vmem:[#allocation5 + $0xd0] sm:$0xff]  ;;  %v1143_v43 = vld [vmem:[#allocation5 + $0xd8] sm:$0xff] }
 0x26b   : > { %1309 = vmatpush1.bf16.msra.mxu0 %v3062_v59  ;;  %2905 = vmatpush1.bf16.msra.mxu1 %v3062_v59  ;;  %v1127_v42 = vld [vmem:[#allocation5 + $0x10] sm:$0xff]  ;;  %v1128_v48 = vld [vmem:[#allocation5 + $0xc0] sm:$0xff]  ;;  %v1144_v49 = vld [vmem:[#allocation5 + $0x58] sm:$0xff] }
 0x26c   : > { %1310 = vmatprep.subr.bf16.mxu0 %v3063_v60  ;;  %2898 = vmatprep.subr.bf16.mxu1 %v3063_v60  ;;  %v1129_v54 = vld [vmem:[#allocation5 + $0xc8] sm:$0xff]  ;;  %v1145_v55 = vld [vmem:[#allocation5 + $0x80] sm:$0xff]  ;;  %v1130_v60 = vld [vmem:[#allocation5 + $0xb0] sm:$0xff] }
 0x26f   : > { %1311 = vmatpush1.bf16.msra.mxu0 %v3065_v61  ;;  %2906 = vmatpush1.bf16.msra.mxu1 %v3065_v61  ;;  %v1146_v61 = vld [vmem:[#allocation5 + $0x40] sm:$0xff] }
 0x270   : > { %1312 = vmatprep.subr.bf16.mxu0 %v3066_v62  ;;  %2899 = vmatprep.subr.bf16.mxu1 %v3066_v62 }
 0x273   : > { %1313 = vmatpush1.bf16.msra.mxu0 %v3068_v63  ;;  %2907 = vmatpush1.bf16.msra.mxu1 %v3068_v63 }
 0x274   : > { %1314 = vmatprep.subr.bf16.mxu0 %v3069_v16  ;;  %2900 = vmatprep.subr.bf16.mxu1 %v3069_v16 }
 0x277   : > { %1315 = vmatpush1.bf16.msra.mxu0 %v3071_v17  ;;  %2908 = vmatpush1.bf16.msra.mxu1 %v3071_v17 }
 0x278   : > { %1316 = vmatprep.subr.bf16.mxu0 %v3072_v18  ;;  %2901 = vmatprep.subr.bf16.mxu1 %v3072_v18  ;;  %v1131_v18 = vld [vmem:[#allocation5 + $0x70] sm:$0xff] }
 0x27b   : > { %1317 = vmatpush1.bf16.msra.mxu0 %v3074_v19  ;;  %2909 = vmatpush1.bf16.msra.mxu1 %v3074_v19  ;;  %v1147_v19 = vld [vmem:[#allocation5 + $0x28] sm:$0xff] }
 0x27c   : > { %1318 = vmatprep.subr.bf16.mxu0 %v3075_v20  ;;  %2902 = vmatprep.subr.bf16.mxu1 %v3075_v20 }
 0x27f   : > { %1319 = vmatpush1.bf16.msra.mxu0 %v3077_v21  ;;  %2910 = vmatpush1.bf16.msra.mxu1 %v3077_v21 }
 0x280   : > { %1320 = vmatprep.subr.bf16.mxu0 %v3078_v22  ;;  %2903 = vmatprep.subr.bf16.mxu1 %v3078_v22 }
 0x283   : > { %1321 = vmatpush1.bf16.msra.mxu0 %v3080_v23  ;;  %2911 = vmatpush1.bf16.msra.mxu1 %v3080_v23 }
 0x286   : > { %1339 = vmatmul.mubr.bf16.vlgmr.msra.gmra.mxu0 %v2417_v24  ;;  %1379 = vmatmul.mubr.bf16.vlgmr.msra.gmra.mxu1 %v2421_v25  ;;  %v1132_v24 = vld [vmem:[#allocation5 + $0x38] sm:$0xff]  ;;  %v1148_v25 = vld [vmem:[#allocation5] sm:$0xff] }
 0x287   : > { %1348 = vmatprep.mubr.bf16.mxu0 %v3266_v57  ;;  %1388 = vmatprep.mubr.bf16.mxu1 %v3266_v57 }
 0x28e   : > { %1349 = vmatmul.mubr.bf16.gmra.mxu0 %v2418_v26  ;;  %1389 = vmatmul.mubr.bf16.gmra.mxu1 %v2422_v27 }
 0x28f   : > { %1358 = vmatprep.mubr.bf16.mxu0 %v3266_v57  ;;  %1398 = vmatprep.mubr.bf16.mxu1 %v3266_v57 }
 0x296   : > { %1359 = vmatmul.mubr.bf16.gmra.mxu0 %v2419_v28  ;;  %1399 = vmatmul.mubr.bf16.gmra.mxu1 %v2423_v29 }
 0x297   : > { %1368 = vmatprep.mubr.bf16.mxu0 %v3266_v57  ;;  %1408 = vmatprep.mubr.bf16.mxu1 %v3266_v57 }
 0x29e   : > { %1369 = vmatmul.mubr.bf16.gmra.mxu0 %v2420_v30  ;;  %1409 = vmatmul.mubr.bf16.gmra.mxu1 %v2424_v31  ;;  %v1133_v30 = vld [vmem:[#allocation5 + $0x48] sm:$0xff]  ;;  %v1149_v31 = vld [vmem:[#allocation5 + $0x90] sm:$0xff] }
 0x346   : > { %v1340_v34 = vpop.f32.mrf.mxu0  ;;  %v1380_v35 = vpop.f32.mrf.mxu1 }
 0x347   : > { %v1419_v38 = vadd.f32 %v1340_v34, %v1125_v32  ;;  %v1435_v39 = vadd.f32 %v1380_v35, %v1141_v33 }
 0x348   : > { %v1342_v40 = vpop.f32.mrf.mxu0  ;;  %v1382_v41 = vpop.f32.mrf.mxu1 }
 0x349   : > { %1451 = vst [vmem:[#allocation5 + $0xa8] sm:$0xff] %v1419_v38  ;;  %1467 = vst [vmem:[#allocation5 + $0xb8] sm:$0xff] %v1435_v39  ;;  %v1420_v44 = vadd.f32 %v1342_v40, %v1126_v36  ;;  %v1436_v45 = vadd.f32 %v1382_v41, %v1142_v37  ;;  %v1134_v36 = vld [vmem:[#allocation5 + $0xf8] sm:$0xff]  ;;  %v1150_v37 = vld [vmem:[#allocation5 + $0xe8] sm:$0xff] }
 0x34a   : > { %v1344_v46 = vpop.f32.mrf.mxu0  ;;  %v1384_v47 = vpop.f32.mrf.mxu1 }
 0x34b   : > { %1452 = vst [vmem:[#allocation5 + $0x68] sm:$0xff] %v1420_v44  ;;  %1468 = vst [vmem:[#allocation5 + $0xd0] sm:$0xff] %v1436_v45  ;;  %v1421_v50 = vadd.f32 %v1344_v46, %v1127_v42  ;;  %v1437_v51 = vadd.f32 %v1384_v47, %v1143_v43  ;;  %v1135_v42 = vld [vmem:[#allocation5 + $0x78] sm:$0xff]  ;;  %v1151_v43 = vld [vmem:[#allocation5 + $0xa0] sm:$0xff] }
 0x34c   : > { %v1346_v52 = vpop.f32.mrf.mxu0  ;;  %v1386_v53 = vpop.f32.mrf.mxu1 }
 0x34d   : > { %1453 = vst [vmem:[#allocation5 + $0x10] sm:$0xff] %v1421_v50  ;;  %1469 = vst [vmem:[#allocation5 + $0xd8] sm:$0xff] %v1437_v51  ;;  %v1422_v56 = vadd.f32 %v1346_v52, %v1128_v48  ;;  %v1438_v57 = vadd.f32 %v1386_v53, %v1144_v49  ;;  %v1136_v48 = vld [vmem:[#allocation5 + $0x88] sm:$0xff]  ;;  %v1152_v49 = vld [vmem:[#allocation5 + $0x20] sm:$0xff] }
 0x34e   : > { %v1350_v58 = vpop.f32.mrf.mxu0  ;;  %v1390_v59 = vpop.f32.mrf.mxu1 }
 0x34f   : > { %1454 = vst [vmem:[#allocation5 + $0xc0] sm:$0xff] %v1422_v56  ;;  %1470 = vst [vmem:[#allocation5 + $0x58] sm:$0xff] %v1438_v57  ;;  %v1423_v62 = vadd.f32 %v1350_v58, %v1129_v54  ;;  %v1439_v63 = vadd.f32 %v1390_v59, %v1145_v55  ;;  %v1137_v54 = vld [vmem:[#allocation5 + $0xf0] sm:$0xff]  ;;  %v1153_v55 = vld [vmem:[#allocation5 + $0x8] sm:$0xff] }
 0x350   : > { %v1352_v16 = vpop.f32.mrf.mxu0  ;;  %v1392_v17 = vpop.f32.mrf.mxu1 }
 0x351   : > { %1455 = vst [vmem:[#allocation5 + $0xc8] sm:$0xff] %v1423_v62  ;;  %1471 = vst [vmem:[#allocation5 + $0x80] sm:$0xff] %v1439_v63  ;;  %v1424_v20 = vadd.f32 %v1352_v16, %v1130_v60  ;;  %v1440_v21 = vadd.f32 %v1392_v17, %v1146_v61  ;;  %v1138_v60 = vld [vmem:[#allocation5 + $0x18] sm:$0xff]  ;;  %v1154_v61 = vld [vmem:[#allocation5 + $0xe0] sm:$0xff] }
 0x352   : > { %v1354_v22 = vpop.f32.mrf.mxu0  ;;  %v1394_v23 = vpop.f32.mrf.mxu1 }
 0x353   : > { %1456 = vst [vmem:[#allocation5 + $0xb0] sm:$0xff] %v1424_v20  ;;  %1472 = vst [vmem:[#allocation5 + $0x40] sm:$0xff] %v1440_v21  ;;  %v1425_v26 = vadd.f32 %v1354_v22, %v1131_v18  ;;  %v1441_v27 = vadd.f32 %v1394_v23, %v1147_v19  ;;  %v1139_v18 = vld [vmem:[#allocation5 + $0x30] sm:$0xff]  ;;  %v1155_v19 = vld [vmem:[#allocation5 + $0x60] sm:$0xff] }
 0x354   : > { %v1356_v28 = vpop.f32.mrf.mxu0  ;;  %v1396_v29 = vpop.f32.mrf.mxu1 }
 0x355   : > { %1457 = vst [vmem:[#allocation5 + $0x70] sm:$0xff] %v1425_v26  ;;  %1473 = vst [vmem:[#allocation5 + $0x28] sm:$0xff] %v1441_v27  ;;  %v1426_v32 = vadd.f32 %v1356_v28, %v1132_v24  ;;  %v1442_v33 = vadd.f32 %v1396_v29, %v1148_v25  ;;  %v1140_v24 = vld [vmem:[#allocation5 + $0x50] sm:$0xff]  ;;  %v1156_v25 = vld [vmem:[#allocation5 + $0x98] sm:$0xff] }
 0x356   : > { %v1360_v34 = vpop.f32.mrf.mxu0  ;;  %v1400_v35 = vpop.f32.mrf.mxu1 }
 0x357   : > { %1458 = vst [vmem:[#allocation5 + $0x38] sm:$0xff] %v1426_v32  ;;  %1474 = vst [vmem:[#allocation5] sm:$0xff] %v1442_v33  ;;  %v1427_v38 = vadd.f32 %v1360_v34, %v1133_v30  ;;  %v1443_v39 = vadd.f32 %v1400_v35, %v1149_v31 }
 0x358   : > { %v1362_v40 = vpop.f32.mrf.mxu0  ;;  %v1402_v41 = vpop.f32.mrf.mxu1 }
 0x359   : > { %1459 = vst [vmem:[#allocation5 + $0x48] sm:$0xff] %v1427_v38  ;;  %1475 = vst [vmem:[#allocation5 + $0x90] sm:$0xff] %v1443_v39  ;;  %v1428_v44 = vadd.f32 %v1362_v40, %v1134_v36  ;;  %v1444_v45 = vadd.f32 %v1402_v41, %v1150_v37 }
 0x35a   : > { %v1364_v46 = vpop.f32.mrf.mxu0  ;;  %v1404_v47 = vpop.f32.mrf.mxu1 }
 0x35b   : > { %1460 = vst [vmem:[#allocation5 + $0xf8] sm:$0xff] %v1428_v44  ;;  %1476 = vst [vmem:[#allocation5 + $0xe8] sm:$0xff] %v1444_v45  ;;  %v1429_v50 = vadd.f32 %v1364_v46, %v1135_v42  ;;  %v1445_v51 = vadd.f32 %v1404_v47, %v1151_v43 }
 0x35c   : > { %v1366_v52 = vpop.f32.mrf.mxu0  ;;  %v1406_v53 = vpop.f32.mrf.mxu1 }
 0x35d   : > { %1461 = vst [vmem:[#allocation5 + $0x78] sm:$0xff] %v1429_v50  ;;  %1477 = vst [vmem:[#allocation5 + $0xa0] sm:$0xff] %v1445_v51  ;;  %v1430_v56 = vadd.f32 %v1366_v52, %v1136_v48  ;;  %v1446_v57 = vadd.f32 %v1406_v53, %v1152_v49 }
 0x35e   : > { %v1370_v58 = vpop.f32.mrf.mxu0  ;;  %v1410_v59 = vpop.f32.mrf.mxu1 }
 0x35f   : > { %1462 = vst [vmem:[#allocation5 + $0x88] sm:$0xff] %v1430_v56  ;;  %1478 = vst [vmem:[#allocation5 + $0x20] sm:$0xff] %v1446_v57  ;;  %v1431_v62 = vadd.f32 %v1370_v58, %v1137_v54  ;;  %v1447_v63 = vadd.f32 %v1410_v59, %v1153_v55 }
 0x360   : > { %v1372_v16 = vpop.f32.mrf.mxu0  ;;  %v1412_v17 = vpop.f32.mrf.mxu1 }
 0x361   : > { %1463 = vst [vmem:[#allocation5 + $0xf0] sm:$0xff] %v1431_v62  ;;  %1479 = vst [vmem:[#allocation5 + $0x8] sm:$0xff] %v1447_v63  ;;  %v1432_v20 = vadd.f32 %v1372_v16, %v1138_v60  ;;  %v1448_v21 = vadd.f32 %v1412_v17, %v1154_v61 }
 0x362   : > { %v1374_v22 = vpop.f32.mrf.mxu0  ;;  %v1414_v23 = vpop.f32.mrf.mxu1 }
 0x363   : > { %1464 = vst [vmem:[#allocation5 + $0x18] sm:$0xff] %v1432_v20  ;;  %1480 = vst [vmem:[#allocation5 + $0xe0] sm:$0xff] %v1448_v21  ;;  %v1433_v26 = vadd.f32 %v1374_v22, %v1139_v18  ;;  %v1449_v27 = vadd.f32 %v1414_v23, %v1155_v19 }
 0x364   : > { %v1376_v28 = vpop.f32.mrf.mxu0  ;;  %v1416_v29 = vpop.f32.mrf.mxu1 }
 0x365   : > { %1465 = vst [vmem:[#allocation5 + $0x30] sm:$0xff] %v1433_v26  ;;  %1481 = vst [vmem:[#allocation5 + $0x60] sm:$0xff] %v1449_v27  ;;  %v1434_v30 = vadd.f32 %v1376_v28, %v1140_v24  ;;  %v1450_v31 = vadd.f32 %v1416_v29, %v1156_v25 }
 0x367   : > { %1466 = vst [vmem:[#allocation5 + $0x50] sm:$0xff] %v1434_v30  ;;  %1482 = vst [vmem:[#allocation5 + $0x98] sm:$0xff] %v1450_v31 }
 0x368 PF: > { %p2441_p7 = scmp.le.s32.totalorder %s3247_s24, 0 }
 0x36a   : > { %1486 = sbr.rel (%p2441_p7) target bundleno = 1122 (0x462), region = 88 }
 0x36f   : > { %v3081_v32 = vld [vmem:[#allocation4 + $0x38] sm:$0xff]   ;;  %v3082_v33 = vld [vmem:[#allocation4 + $0x30] sm:$0xff]   ;;  %v2442_v34 = vcombine.low %v3414_v0, %v3416_v1  ;;  %v2446_v35 = vcombine.low %v3430_v8, %v3432_v9  ;;  %v3083_v36 = vld [vmem:[#allocation4 + $0x28] sm:$0xff]   ;;  %v2443_v38 = vcombine.low %v3418_v2, %v3420_v3  ;;  %v2447_v39 = vcombine.low %v3434_v10, %v3436_v11 }
 0x370   : > { %2832 = vmatprep.subr.bf16.mxu0 %v3081_v32  ;;  %2912 = vmatprep.subr.bf16.mxu1 %v3081_v32  ;;  %v3084_v37 = vld [vmem:[#allocation4 + $0x20] sm:$0xff]   ;;  %v3085_v0 = vld [vmem:[#allocation4 + $0x18] sm:$0xff]   ;;  %v3086_v1 = vld [vmem:[#allocation4 + $0x10] sm:$0xff]   ;;  %v2444_v40 = vcombine.low %v3422_v4, %v3424_v5  ;;  %v2448_v41 = vcombine.low %v3438_v12, %v3440_v13  ;;  %v2445_v42 = vcombine.low %v3426_v6, %v3428_v7 }
 0x371   : > { %2833 = vmatpush3.bf16.msra.mxu0 %v3081_v32  ;;  %2920 = vmatpush3.bf16.msra.mxu1 %v3081_v32  ;;  %v3087_v8 = vld [vmem:[#allocation4 + $0x8] sm:$0xff]   ;;  %v3088_v9 = vld [vmem:[#allocation4] sm:$0xff]   ;;  %v2449_v2 = vcombine.low %v3442_v14, %v3444_v15  ;;  %v1495_v5 = vld [vmem:[#allocation5 + $0xb8] sm:$0xff] }
 0x372   : > { %2834 = vmatprep.subr.bf16.mxu0 %v3082_v33  ;;  %2913 = vmatprep.subr.bf16.mxu1 %v3082_v33  ;;  %v1489_v3 = vld [vmem:[#allocation5 + $0xc8] sm:$0xff]  ;;  %v1497_v10 = vld [vmem:[#allocation5 + $0x80] sm:$0xff]  ;;  %v1490_v46 = vld [vmem:[#allocation5 + $0x70] sm:$0xff] }
 0x373   : > { %2848 = vmatprep.mubr.bf16.mxu0 %v2442_v34  ;;  %2856 = vmatprep.mubr.bf16.mxu1 %v2446_v35  ;;  %v1487_v4 = vld [vmem:[#allocation5 + $0xa8] sm:$0xff]  ;;  %v1488_v15 = vld [vmem:[#allocation5 + $0x10] sm:$0xff]  ;;  %v1496_v49 = vld [vmem:[#allocation5 + $0xd8] sm:$0xff] }
 0x374   : > { %v1498_v47 = vld [vmem:[#allocation5 + $0x28] sm:$0xff]  ;;  %v1493_v54 = vld [vmem:[#allocation5 + $0xf0] sm:$0xff]  ;;  %v1502_v19 = vld [vmem:[#allocation5 + $0x60] sm:$0xff] }
 0x375   : > { %2835 = vmatpush3.bf16.msra.mxu0 %v3082_v33  ;;  %2921 = vmatpush3.bf16.msra.mxu1 %v3082_v33  ;;  %v1501_v55 = vld [vmem:[#allocation5 + $0x8] sm:$0xff]  ;;  %v1499_v61 = vld [vmem:[#allocation5 + $0x90] sm:$0xff]  ;;  %v1492_v24 = vld [vmem:[#allocation5 + $0x78] sm:$0xff] }
 0x376   : > { %2836 = vmatprep.subr.bf16.mxu0 %v3083_v36  ;;  %2914 = vmatprep.subr.bf16.mxu1 %v3083_v36  ;;  %v1491_v60 = vld [vmem:[#allocation5 + $0x48] sm:$0xff]  ;;  %v1494_v18 = vld [vmem:[#allocation5 + $0x30] sm:$0xff]  ;;  %v1500_v25 = vld [vmem:[#allocation5 + $0xa0] sm:$0xff] }
 0x379   : > { %2837 = vmatpush3.bf16.msra.mxu0 %v3083_v36  ;;  %2922 = vmatpush3.bf16.msra.mxu1 %v3083_v36 }
 0x37a   : > { %2838 = vmatprep.subr.bf16.mxu0 %v3084_v37  ;;  %2915 = vmatprep.subr.bf16.mxu1 %v3084_v37 }
 0x37d   : > { %2839 = vmatpush3.bf16.msra.mxu0 %v3084_v37  ;;  %2923 = vmatpush3.bf16.msra.mxu1 %v3084_v37 }
 0x37e   : > { %2840 = vmatprep.subr.bf16.mxu0 %v3085_v0  ;;  %2916 = vmatprep.subr.bf16.mxu1 %v3085_v0 }
 0x381   : > { %2841 = vmatpush3.bf16.msra.mxu0 %v3085_v0  ;;  %2924 = vmatpush3.bf16.msra.mxu1 %v3085_v0 }
 0x382   : > { %2842 = vmatprep.subr.bf16.mxu0 %v3086_v1  ;;  %2917 = vmatprep.subr.bf16.mxu1 %v3086_v1 }
 0x385   : > { %2843 = vmatpush3.bf16.msra.mxu0 %v3086_v1  ;;  %2925 = vmatpush3.bf16.msra.mxu1 %v3086_v1 }
 0x386   : > { %2844 = vmatprep.subr.bf16.mxu0 %v3087_v8  ;;  %2918 = vmatprep.subr.bf16.mxu1 %v3087_v8 }
 0x389   : > { %2845 = vmatpush3.bf16.msra.mxu0 %v3087_v8  ;;  %2926 = vmatpush3.bf16.msra.mxu1 %v3087_v8 }
 0x38a   : > { %2846 = vmatprep.subr.bf16.mxu0 %v3088_v9  ;;  %2919 = vmatprep.subr.bf16.mxu1 %v3088_v9 }
 0x38d   : > { %2847 = vmatpush3.bf16.msra.mxu0 %v3088_v9  ;;  %2927 = vmatpush3.bf16.msra.mxu1 %v3088_v9 }
 0x390   : > { %2849 = vmatmul.mubr.bf16.vlgmr.msra.gmra.mxu0 %v2443_v38  ;;  %2857 = vmatmul.mubr.bf16.vlgmr.msra.gmra.mxu1 %v2447_v39 }
 0x391   : > { %2852 = vmatprep.mubr.bf16.mxu0 %v2444_v40  ;;  %2860 = vmatprep.mubr.bf16.mxu1 %v2448_v41 }
 0x398   : > { %2853 = vmatmul.mubr.bf16.gmra.mxu0 %v2445_v42  ;;  %2861 = vmatmul.mubr.bf16.gmra.mxu1 %v2449_v2 }
 0x450   : > { %v2850_v11 = vpop.f32.mrf.mxu0  ;;  %v2858_v43 = vpop.f32.mrf.mxu1 }
 0x451   : > { %v1718_v44 = vadd.f32 %v2850_v11, %v1489_v3  ;;  %v1726_v12 = vadd.f32 %v2858_v43, %v1497_v10 }
 0x452   : > { %v1653_v13 = vpop.f32.mrf.mxu0  ;;  %v1685_v45 = vpop.f32.mrf.mxu1 }
 0x453   : > { %1734 = vst [vmem:[#allocation5 + $0xc8] sm:$0xff] %v1718_v44  ;;  %1742 = vst [vmem:[#allocation5 + $0x80] sm:$0xff] %v1726_v12  ;;  %v1716_v6 = vadd.f32 %v1653_v13, %v1487_v4  ;;  %v1724_v7 = vadd.f32 %v1685_v45, %v1495_v5 }
 0x454   : > { %v2851_v48 = vpop.f32.mrf.mxu0  ;;  %v2859_v14 = vpop.f32.mrf.mxu1 }
 0x455   : > { %1732 = vst [vmem:[#allocation5 + $0xa8] sm:$0xff] %v1716_v6  ;;  %1740 = vst [vmem:[#allocation5 + $0xb8] sm:$0xff] %v1724_v7  ;;  %v1719_v50 = vadd.f32 %v2851_v48, %v1490_v46  ;;  %v1727_v51 = vadd.f32 %v2859_v14, %v1498_v47 }
 0x456   : > { %v1656_v52 = vpop.f32.mrf.mxu0  ;;  %v1688_v53 = vpop.f32.mrf.mxu1 }
 0x457   : > { %1735 = vst [vmem:[#allocation5 + $0x70] sm:$0xff] %v1719_v50  ;;  %1743 = vst [vmem:[#allocation5 + $0x28] sm:$0xff] %v1727_v51  ;;  %v1717_v56 = vadd.f32 %v1656_v52, %v1488_v15  ;;  %v1725_v57 = vadd.f32 %v1688_v53, %v1496_v49 }
 0x458   : > { %v2854_v58 = vpop.f32.mrf.mxu0  ;;  %v2862_v59 = vpop.f32.mrf.mxu1 }
 0x459   : > { %1733 = vst [vmem:[#allocation5 + $0x10] sm:$0xff] %v1717_v56  ;;  %1741 = vst [vmem:[#allocation5 + $0xd8] sm:$0xff] %v1725_v57  ;;  %v1722_v62 = vadd.f32 %v2854_v58, %v1493_v54  ;;  %v1730_v63 = vadd.f32 %v2862_v59, %v1501_v55 }
 0x45a   : > { %v1669_v16 = vpop.f32.mrf.mxu0  ;;  %v1701_v17 = vpop.f32.mrf.mxu1 }
 0x45b   : > { %1738 = vst [vmem:[#allocation5 + $0xf0] sm:$0xff] %v1722_v62  ;;  %1746 = vst [vmem:[#allocation5 + $0x8] sm:$0xff] %v1730_v63  ;;  %v1720_v20 = vadd.f32 %v1669_v16, %v1491_v60  ;;  %v1728_v21 = vadd.f32 %v1701_v17, %v1499_v61 }
 0x45c   : > { %v2855_v22 = vpop.f32.mrf.mxu0  ;;  %v2863_v23 = vpop.f32.mrf.mxu1 }
 0x45d   : > { %1736 = vst [vmem:[#allocation5 + $0x48] sm:$0xff] %v1720_v20  ;;  %1744 = vst [vmem:[#allocation5 + $0x90] sm:$0xff] %v1728_v21  ;;  %v1723_v26 = vadd.f32 %v2855_v22, %v1494_v18  ;;  %v1731_v27 = vadd.f32 %v2863_v23, %v1502_v19 }
 0x45e   : > { %v1672_v28 = vpop.f32.mrf.mxu0  ;;  %v1704_v29 = vpop.f32.mrf.mxu1 }
 0x45f   : > { %1739 = vst [vmem:[#allocation5 + $0x30] sm:$0xff] %v1723_v26  ;;  %1747 = vst [vmem:[#allocation5 + $0x60] sm:$0xff] %v1731_v27  ;;  %v1721_v30 = vadd.f32 %v1672_v28, %v1492_v24  ;;  %v1729_v31 = vadd.f32 %v1704_v29, %v1500_v25 }
 0x461   : > { %1737 = vst [vmem:[#allocation5 + $0x78] sm:$0xff] %v1721_v30  ;;  %1745 = vst [vmem:[#allocation5 + $0xa0] sm:$0xff] %v1729_v31 }
 0x462 PF: > { %1753 = sbr.rel (%p2416_p5) target bundleno = 1160 (0x488), region = 96 }
 0x467   : > { %v1788_v32 = vlaneseq  ;;  %v3267_v33 = vmov 0.0   ;;  %v1786_v35 = vld [vmem:[%s3595_s4] sm:$0x3]  ;;  %v1754_v36 = vld [vmem:[#allocation5 + $0xa8] sm:$0xff]  ;;  %v1756_v8 = vld [vmem:[#allocation5 + $0x10] sm:$0xff] }
 0x468   : > { %1977 = vst [vmem:[#allocation14] sm:$0xff] %v3267_v33  ;;  %1978 = vst [vmem:[#allocation14 + $0x8] sm:$0xff] %v3267_v33  ;;  %v1755_v37 = vld [vmem:[#allocation5 + $0x68] sm:$0xff]  ;;  %v1757_v9 = vld [vmem:[#allocation5 + $0xc0] sm:$0xff] }
 0x469   : > { %1979 = vst [vmem:[#allocation14 + $0x10] sm:$0xff] %v3267_v33  ;;  %1980 = vst [vmem:[#allocation14 + $0x18] sm:$0xff] %v3267_v33  ;;  %v1789_v34 = vshrl.u32 %v1788_v32, 7  ;;  %v1758_v38 = vld [vmem:[#allocation5 + $0xc8] sm:$0xff]  ;;  %v1759_v41 = vld [vmem:[#allocation5 + $0xb0] sm:$0xff] }
 0x46a   : > { %1981 = vst [vmem:[#allocation14 + $0x20] sm:$0xff] %v3267_v33  ;;  %1982 = vst [vmem:[#allocation14 + $0x28] sm:$0xff] %v3267_v33  ;;  %v1760_v42 = vld [vmem:[#allocation5 + $0x70] sm:$0xff]  ;;  %v1761_v2 = vld [vmem:[#allocation5 + $0x38] sm:$0xff] }
 0x46b   : > { %1983 = vst [vmem:[#allocation14 + $0x30] sm:$0xff] %v3267_v33  ;;  %1984 = vst [vmem:[#allocation14 + $0x38] sm:$0xff] %v3267_v33  ;;  %v1790_v0 = vsub.s32 0, %v1789_v34  ;;  %v1794_v1 = vsub.s32 1, %v1789_v34  ;;  %v1762_v13 = vld [vmem:[#allocation5 + $0x48] sm:$0xff]  ;;  %v1763_v45 = vld [vmem:[#allocation5 + $0xf8] sm:$0xff] }
 0x46c   : > { %1985 = vst [vmem:[#allocation14 + $0x40] sm:$0xff] %v3267_v33  ;;  %1986 = vst [vmem:[#allocation14 + $0x48] sm:$0xff] %v3267_v33  ;;  %v1764_v48 = vld [vmem:[#allocation5 + $0x78] sm:$0xff]  ;;  %v1765_v14 = vld [vmem:[#allocation5 + $0x88] sm:$0xff] }
 0x46d   : > { %1987 = vst [vmem:[#allocation14 + $0x50] sm:$0xff] %v3267_v33  ;;  %1988 = vst [vmem:[#allocation14 + $0x58] sm:$0xff] %v3267_v33  ;;  %v3501_v39 = vrot.slane %v1786_v35, %v1790_v0  ;;  %v3503_v40 = vrot.slane %v1786_v35, %v1794_v1  ;;  %v1766_v52 = vld [vmem:[#allocation5 + $0xf0] sm:$0xff]  ;;  %v1767_v53 = vld [vmem:[#allocation5 + $0x18] sm:$0xff] }
 0x46e   : > { %1989 = vst [vmem:[#allocation14 + $0x60] sm:$0xff] %v3267_v33  ;;  %1990 = vst [vmem:[#allocation14 + $0x68] sm:$0xff] %v3267_v33  ;;  %v1768_v58 = vld [vmem:[#allocation5 + $0x30] sm:$0xff]  ;;  %v1770_v16 = vld [vmem:[#allocation5 + $0xb8] sm:$0xff] }
 0x46f   : > { %1991 = vst [vmem:[#allocation14 + $0x70] sm:$0xff] %v3267_v33  ;;  %1992 = vst [vmem:[#allocation14 + $0x78] sm:$0xff] %v3267_v33  ;;  %v1798_v3 = vadd.f32 %v3501_v39, %v1754_v36  ;;  %v1799_v10 = vadd.f32 %v3503_v40, %v1755_v37  ;;  %v1800_v11 = vadd.f32 %v3501_v39, %v1756_v8  ;;  %v1769_v59 = vld [vmem:[#allocation5 + $0x50] sm:$0xff]  ;;  %v1772_v26 = vld [vmem:[#allocation5 + $0xd8] sm:$0xff] }
 0x470   : > { %v1801_v43 = vadd.f32 %v3503_v40, %v1757_v9  ;;  %v1802_v4 = vadd.f32 %v3501_v39, %v1758_v38  ;;  %v1803_v5 = vadd.f32 %v3503_v40, %v1759_v41  ;;  %v1804_v44 = vadd.f32 %v3501_v39, %v1760_v42  ;;  %v1771_v21 = vld [vmem:[#allocation5 + $0xd0] sm:$0xff]  ;;  %v1773_v27 = vld [vmem:[#allocation5 + $0x58] sm:$0xff]  ;;  %v1774_v32 = vld [vmem:[#allocation5 + $0x80] sm:$0xff] }
 0x471   : > { %v1805_v12 = vadd.f32 %v3503_v40, %v1761_v2  ;;  %v1830_v46 = vmax.f32 %v1798_v3, 0.0  ;;  %v1831_v47 = vmax.f32 %v1799_v10, 0.0  ;;  %v1832_v6 = vmax.f32 %v1800_v11, 0.0  ;;  %v1775_v33 = vld [vmem:[#allocation5 + $0x40] sm:$0xff]  ;;  %v1776_v0 = vld [vmem:[#allocation5 + $0x28] sm:$0xff]  ;;  %v1778_v42 = vld [vmem:[#allocation5 + $0x90] sm:$0xff] }
 0x472   : > { %v1833_v7 = vmax.f32 %v1801_v43, 0.0  ;;  %v1834_v15 = vmax.f32 %v1802_v4, 0.0  ;;  %v1835_v49 = vmax.f32 %v1803_v5, 0.0  ;;  %v1836_v50 = vmax.f32 %v1804_v44, 0.0  ;;  %v1777_v1 = vld [vmem:[#allocation5] sm:$0xff]  ;;  %v1779_v43 = vld [vmem:[#allocation5 + $0xe8] sm:$0xff] }
 0x473   : > { %v1837_v51 = vmax.f32 %v1805_v12, 0.0  ;;  %v2531_v54 = vpack.c.bf16 %v1831_v47, %v1830_v46  ;;  %v1806_v56 = vadd.f32 %v3501_v39, %v1762_v13  ;;  %v1807_v57 = vadd.f32 %v3503_v40, %v1763_v45  ;;  %v1780_v13 = vld [vmem:[#allocation5 + $0xa0] sm:$0xff] }
 0x474   : > { %v2532_v55 = vpack.c.bf16 %v1833_v7, %v1832_v6  ;;  %v2533_v60 = vpack.c.bf16 %v1835_v49, %v1834_v15  ;;  %v1808_v62 = vadd.f32 %v3501_v39, %v1764_v48  ;;  %v1809_v63 = vadd.f32 %v3503_v40, %v1765_v14  ;;  %v1781_v45 = vld [vmem:[#allocation5 + $0x20] sm:$0xff]  ;;  %v1782_v48 = vld [vmem:[#allocation5 + $0x8] sm:$0xff] }
 0x475   : > { %v2534_v61 = vpack.c.bf16 %v1837_v51, %v1836_v50  ;;  %1961 = vst [vmem:[#allocation2 + $0x30] sm:$0xff] %v2531_v54  ;;  %v1838_v17 = vmax.f32 %v1806_v56, 0.0  ;;  %v1839_v18 = vmax.f32 %v1807_v57, 0.0  ;;  %v1810_v19 = vadd.f32 %v3501_v39, %v1766_v52  ;;  %v1783_v14 = vld [vmem:[#allocation5 + $0xe0] sm:$0xff] }
 0x476   : > { %1962 = vst [vmem:[#allocation2] sm:$0xff] %v2532_v55  ;;  %v1811_v20 = vadd.f32 %v3503_v40, %v1767_v53  ;;  %1963 = vst [vmem:[#allocation2 + $0x58] sm:$0xff] %v2533_v60  ;;  %v1840_v22 = vmax.f32 %v1808_v62, 0.0  ;;  %v1841_v23 = vmax.f32 %v1809_v63, 0.0  ;;  %v1812_v24 = vadd.f32 %v3501_v39, %v1768_v58  ;;  %v1784_v52 = vld [vmem:[#allocation5 + $0x60] sm:$0xff]  ;;  %v1785_v53 = vld [vmem:[#allocation5 + $0x98] sm:$0xff] }
 0x477   : > { %1964 = vst [vmem:[#allocation2 + $0x18] sm:$0xff] %v2534_v61  ;;  %v1813_v25 = vadd.f32 %v3503_v40, %v1769_v59  ;;  %v2535_v28 = vpack.c.bf16 %v1839_v18, %v1838_v17  ;;  %v1842_v29 = vmax.f32 %v1810_v19, 0.0  ;;  %v1814_v31 = vadd.f32 %v3501_v39, %v1770_v16 }
 0x478   : > { %v1843_v30 = vmax.f32 %v1811_v20, 0.0  ;;  %v2536_v34 = vpack.c.bf16 %v1841_v23, %v1840_v22  ;;  %v1844_v35 = vmax.f32 %v1812_v24, 0.0  ;;  %v1815_v37 = vadd.f32 %v3503_v40, %v1771_v21 }
 0x479   : > { %v1845_v36 = vmax.f32 %v1813_v25, 0.0  ;;  %1965 = vst [vmem:[#allocation2 + $0x50] sm:$0xff] %v2535_v28  ;;  %v1846_v9 = vmax.f32 %v1814_v31, 0.0  ;;  %v1816_v38 = vadd.f32 %v3501_v39, %v1772_v26  ;;  %v1817_v41 = vadd.f32 %v3503_v40, %v1773_v27 }
 0x47a   : > { %v2537_v8 = vpack.c.bf16 %v1843_v30, %v1842_v29  ;;  %1966 = vst [vmem:[#allocation2 + $0x68] sm:$0xff] %v2536_v34  ;;  %v1847_v3 = vmax.f32 %v1815_v37, 0.0  ;;  %v1818_v10 = vadd.f32 %v3501_v39, %v1774_v32  ;;  %v1819_v11 = vadd.f32 %v3503_v40, %v1775_v33 }
 0x47b   : > { %v2538_v2 = vpack.c.bf16 %v1845_v36, %v1844_v35  ;;  %v1848_v4 = vmax.f32 %v1816_v38, 0.0  ;;  %v1849_v5 = vmax.f32 %v1817_v41, 0.0  ;;  %v1820_v44 = vadd.f32 %v3501_v39, %v1776_v0 }
 0x47c   : > { %1967 = vst [vmem:[#allocation2 + $0x8] sm:$0xff] %v2537_v8  ;;  %v1821_v12 = vadd.f32 %v3503_v40, %v1777_v1  ;;  %v2539_v46 = vpack.c.bf16 %v1847_v3, %v1846_v9  ;;  %v1850_v47 = vmax.f32 %v1818_v10, 0.0  ;;  %v1851_v6 = vmax.f32 %v1819_v11, 0.0 }
 0x47d   : > { %1968 = vst [vmem:[#allocation2 + $0x48] sm:$0xff] %v2538_v2  ;;  %v1822_v7 = vadd.f32 %v3501_v39, %v1778_v42  ;;  %v2540_v15 = vpack.c.bf16 %v1849_v5, %v1848_v4  ;;  %v1852_v49 = vmax.f32 %v1820_v44, 0.0  ;;  %v1823_v51 = vadd.f32 %v3503_v40, %v1779_v43 }
 0x47e   : > { %v1853_v50 = vmax.f32 %v1821_v12, 0.0  ;;  %1969 = vst [vmem:[#allocation2 + $0x40] sm:$0xff] %v2539_v46  ;;  %v2541_v54 = vpack.c.bf16 %v1851_v6, %v1850_v47  ;;  %v1824_v56 = vadd.f32 %v3501_v39, %v1780_v13  ;;  %v1825_v57 = vadd.f32 %v3503_v40, %v1781_v45 }
 0x47f   : > { %v1854_v55 = vmax.f32 %v1822_v7, 0.0  ;;  %1970 = vst [vmem:[#allocation2 + $0x20] sm:$0xff] %v2540_v15  ;;  %v1855_v59 = vmax.f32 %v1823_v51, 0.0  ;;  %v1826_v60 = vadd.f32 %v3501_v39, %v1782_v48  ;;  %v1827_v61 = vadd.f32 %v3503_v40, %v1783_v14 }
 0x480   : > { %v2542_v58 = vpack.c.bf16 %v1853_v50, %v1852_v49  ;;  %1971 = vst [vmem:[#allocation2 + $0x10] sm:$0xff] %v2541_v54  ;;  %v1856_v62 = vmax.f32 %v1824_v56, 0.0  ;;  %v1857_v63 = vmax.f32 %v1825_v57, 0.0  ;;  %v1828_v16 = vadd.f32 %v3501_v39, %v1784_v52 }
 0x481   : > { %v1829_v17 = vadd.f32 %v3503_v40, %v1785_v53  ;;  %v2543_v18 = vpack.c.bf16 %v1855_v59, %v1854_v55  ;;  %v1858_v19 = vmax.f32 %v1826_v60, 0.0  ;;  %v1859_v20 = vmax.f32 %v1827_v61, 0.0 }
 0x482   : > { %1972 = vst [vmem:[#allocation2 + $0x38] sm:$0xff] %v2542_v58  ;;  %v2544_v21 = vpack.c.bf16 %v1857_v63, %v1856_v62  ;;  %v1860_v22 = vmax.f32 %v1828_v16, 0.0 }
 0x483   : > { %v1861_v23 = vmax.f32 %v1829_v17, 0.0  ;;  %1973 = vst [vmem:[#allocation2 + $0x60] sm:$0xff] %v2543_v18  ;;  %v2545_v24 = vpack.c.bf16 %v1859_v20, %v1858_v19 }
 0x484   : > { %1974 = vst [vmem:[#allocation2 + $0x70] sm:$0xff] %v2544_v21 }
 0x485   : > { %v2546_v25 = vpack.c.bf16 %v1861_v23, %v1860_v22  ;;  %1975 = vst [vmem:[#allocation2 + $0x78] sm:$0xff] %v2545_v24 }
 0x487   : > { %1976 = vst [vmem:[#allocation2 + $0x28] sm:$0xff] %v2546_v25 }
 0x488 PF: > { %1996 = sbr.rel (%p2334_p2) target bundleno = 1181 (0x49d), region = 100 }
 0x48d   : > { %v1997_v39 = vld [vmem:[#allocation5 + $0xa8] sm:$0xff]  ;;  %v1998_v26 = vld [vmem:[#allocation5 + $0x10] sm:$0xff]  ;;  %v3542_v40 = vld [vmem:[%s3596_s5] ss:$0 sm:$0xff]  ;;  %v3268_v32 = vmov 0.0  }
 0x48e   : > { %v2020_v27 = vadd.f32 %v3542_v40, %v1997_v39  ;;  %v2021_v28 = vadd.f32 %v3542_v40, %v1998_v26  ;;  %v1999_v29 = vld [vmem:[#allocation5 + $0xc8] sm:$0xff]  ;;  %v2000_v30 = vld [vmem:[#allocation5 + $0x70] sm:$0xff]  ;;  %2134 = vst [vmem:[#allocation14] sm:$0xff] %v3268_v32  ;;  %2135 = vst [vmem:[#allocation14 + $0x8] sm:$0xff] %v3268_v32 }
 0x48f   : > { %v2001_v31 = vld [vmem:[#allocation5 + $0x48] sm:$0xff]  ;;  %2136 = vst [vmem:[#allocation14 + $0x10] sm:$0xff] %v3268_v32  ;;  %2137 = vst [vmem:[#allocation14 + $0x18] sm:$0xff] %v3268_v32  ;;  %v2022_v33 = vadd.f32 %v3542_v40, %v1999_v29  ;;  %v2023_v34 = vadd.f32 %v3542_v40, %v2000_v30  ;;  %v2002_v35 = vld [vmem:[#allocation5 + $0x78] sm:$0xff] }
 0x490   : > { %2138 = vst [vmem:[#allocation14 + $0x20] sm:$0xff] %v3268_v32  ;;  %2139 = vst [vmem:[#allocation14 + $0x28] sm:$0xff] %v3268_v32  ;;  %v2024_v36 = vadd.f32 %v3542_v40, %v2001_v31  ;;  %v2003_v37 = vld [vmem:[#allocation5 + $0xf0] sm:$0xff]  ;;  %v2036_v1 = vmax.f32 %v2020_v27, 0.0  ;;  %v2037_v8 = vmax.f32 %v2021_v28, 0.0  ;;  %v2025_v9 = vadd.f32 %v3542_v40, %v2002_v35  ;;  %v2005_v41 = vld [vmem:[#allocation5 + $0xb8] sm:$0xff] }
 0x491   : > { %2140 = vst [vmem:[#allocation14 + $0x30] sm:$0xff] %v3268_v32  ;;  %2141 = vst [vmem:[#allocation14 + $0x38] sm:$0xff] %v3268_v32  ;;  %v2004_v0 = vld [vmem:[#allocation5 + $0x30] sm:$0xff]  ;;  %v2026_v38 = vadd.f32 %v3542_v40, %v2003_v37  ;;  %v2006_v42 = vld [vmem:[#allocation5 + $0xd8] sm:$0xff]  ;;  %v2038_v3 = vmax.f32 %v2022_v33, 0.0  ;;  %v2039_v10 = vmax.f32 %v2023_v34, 0.0  ;;  %v2028_v45 = vadd.f32 %v3542_v40, %v2005_v41 }
 0x492   : > { %2142 = vst [vmem:[#allocation14 + $0x40] sm:$0xff] %v3268_v32  ;;  %2143 = vst [vmem:[#allocation14 + $0x48] sm:$0xff] %v3268_v32  ;;  %v2007_v2 = vld [vmem:[#allocation5 + $0x80] sm:$0xff]  ;;  %v2040_v11 = vmax.f32 %v2024_v36, 0.0  ;;  %v2027_v43 = vadd.f32 %v3542_v40, %v2004_v0  ;;  %v2008_v4 = vld [vmem:[#allocation5 + $0x28] sm:$0xff]  ;;  %v2646_v44 = vpack.c.bf16 %v2037_v8, %v2036_v1  ;;  %v2041_v12 = vmax.f32 %v2025_v9, 0.0 }
 0x493   : > { %2144 = vst [vmem:[#allocation14 + $0x50] sm:$0xff] %v3268_v32  ;;  %2145 = vst [vmem:[#allocation14 + $0x58] sm:$0xff] %v3268_v32  ;;  %v2009_v5 = vld [vmem:[#allocation5 + $0x90] sm:$0xff]  ;;  %v2042_v13 = vmax.f32 %v2026_v38, 0.0  ;;  %v2010_v46 = vld [vmem:[#allocation5 + $0xa0] sm:$0xff]  ;;  %v2651_v47 = vpack.c.bf16 %v2039_v10, %v2038_v3  ;;  %v2029_v7 = vadd.f32 %v3542_v40, %v2006_v42  ;;  %v2030_v48 = vadd.f32 %v3542_v40, %v2007_v2 }
 0x494   : > { %2146 = vst [vmem:[#allocation14 + $0x60] sm:$0xff] %v3268_v32  ;;  %2147 = vst [vmem:[#allocation14 + $0x68] sm:$0xff] %v3268_v32  ;;  %v2043_v6 = vmax.f32 %v2027_v43, 0.0  ;;  %v2011_v14 = vld [vmem:[#allocation5 + $0x8] sm:$0xff]  ;;  %v2012_v15 = vld [vmem:[#allocation5 + $0x60] sm:$0xff]  ;;  %v2656_v49 = vpack.c.bf16 %v2041_v12, %v2040_v11  ;;  %v2044_v50 = vmax.f32 %v2028_v45, 0.0  ;;  %v2031_v51 = vadd.f32 %v3542_v40, %v2008_v4 }
 0x495   : > { %2148 = vst [vmem:[#allocation14 + $0x70] sm:$0xff] %v3268_v32  ;;  %2149 = vst [vmem:[#allocation14 + $0x78] sm:$0xff] %v3268_v32  ;;  %v2032_v52 = vadd.f32 %v3542_v40, %v2009_v5  ;;  %v2045_v54 = vmax.f32 %v2029_v7, 0.0  ;;  %v2046_v55 = vmax.f32 %v2030_v48, 0.0  ;;  %v2033_v56 = vadd.f32 %v3542_v40, %v2010_v46 }
 0x496   : > { %2647 = vst [vmem:[#allocation3] sm:$0xff] %v2646_v44   ;;  %2697 = vst [vmem:[#allocation3 + $0x8] sm:$0xff] %v2651_v47   ;;  %v2661_v53 = vpack.c.bf16 %v2043_v6, %v2042_v13  ;;  %v2047_v57 = vmax.f32 %v2031_v51, 0.0  ;;  %v2034_v59 = vadd.f32 %v3542_v40, %v2011_v14  ;;  %v2035_v60 = vadd.f32 %v3542_v40, %v2012_v15 }
 0x497   : > { %2698 = vst [vmem:[#allocation3 + $0x10] sm:$0xff] %v2656_v49   ;;  %v2048_v58 = vmax.f32 %v2032_v52, 0.0  ;;  %v2666_v61 = vpack.c.bf16 %v2045_v54, %v2044_v50  ;;  %v2049_v62 = vmax.f32 %v2033_v56, 0.0 }
 0x498   : > { %2699 = vst [vmem:[#allocation3 + $0x18] sm:$0xff] %v2661_v53   ;;  %v2671_v63 = vpack.c.bf16 %v2047_v57, %v2046_v55  ;;  %v2050_v16 = vmax.f32 %v2034_v59, 0.0  ;;  %v2051_v17 = vmax.f32 %v2035_v60, 0.0 }
 0x499   : > { %2700 = vst [vmem:[#allocation3 + $0x20] sm:$0xff] %v2666_v61   ;;  %v2676_v18 = vpack.c.bf16 %v2049_v62, %v2048_v58 }
 0x49a   : > { %2701 = vst [vmem:[#allocation3 + $0x28] sm:$0xff] %v2671_v63   ;;  %v2681_v19 = vpack.c.bf16 %v2051_v17, %v2050_v16 }
 0x49b   : > { %2702 = vst [vmem:[#allocation3 + $0x30] sm:$0xff] %v2676_v18  }
 0x49c   : > { %2703 = vst [vmem:[#allocation3 + $0x38] sm:$0xff] %v2681_v19  }
 0x49d PF: > { %2153 = sbr.rel (%p2383_p3) target bundleno = 1197 (0x4ad), region = 104 }
 0x4a2   : > { %v2154_v20 = vld [vmem:[#allocation5 + $0xa8] sm:$0xff]  ;;  %v2494_v21 = vld [vmem:[%s3597_s6] ss:$0 sm:$0xff]  ;;  %v2155_v22 = vld [vmem:[#allocation5 + $0x10] sm:$0xff] }
 0x4a3   : > { %v2177_v23 = vadd.f32 %v2494_v21, %v2154_v20  ;;  %v2178_v24 = vadd.f32 %v2494_v21, %v2155_v22  ;;  %v2156_v25 = vld [vmem:[#allocation5 + $0xc8] sm:$0xff]  ;;  %v2157_v39 = vld [vmem:[#allocation5 + $0x70] sm:$0xff]  ;;  %v2159_v29 = vld [vmem:[#allocation5 + $0x78] sm:$0xff] }
 0x4a4   : > { %v2158_v26 = vld [vmem:[#allocation5 + $0x48] sm:$0xff]  ;;  %v2179_v40 = vadd.f32 %v2494_v21, %v2156_v25  ;;  %v2180_v27 = vadd.f32 %v2494_v21, %v2157_v39  ;;  %v2160_v30 = vld [vmem:[#allocation5 + $0xf0] sm:$0xff]  ;;  %v2182_v32 = vadd.f32 %v2494_v21, %v2159_v29  ;;  %v2162_v35 = vld [vmem:[#allocation5 + $0xb8] sm:$0xff] }
 0x4a5   : > { %v2181_v28 = vadd.f32 %v2494_v21, %v2158_v26  ;;  %v2161_v31 = vld [vmem:[#allocation5 + $0x30] sm:$0xff]  ;;  %2193 = vst [vmem:[#allocation14] sm:$0xff] %v2177_v23  ;;  %2194 = vst [vmem:[#allocation14 + $0x8] sm:$0xff] %v2178_v24  ;;  %v2183_v33 = vadd.f32 %v2494_v21, %v2160_v30  ;;  %v2163_v36 = vld [vmem:[#allocation5 + $0xd8] sm:$0xff]  ;;  %v2185_v0 = vadd.f32 %v2494_v21, %v2162_v35 }
 0x4a6   : > { %v2184_v34 = vadd.f32 %v2494_v21, %v2161_v31  ;;  %v2164_v37 = vld [vmem:[#allocation5 + $0x80] sm:$0xff]  ;;  %2195 = vst [vmem:[#allocation14 + $0x10] sm:$0xff] %v2179_v40  ;;  %2196 = vst [vmem:[#allocation14 + $0x18] sm:$0xff] %v2180_v27  ;;  %v2186_v1 = vadd.f32 %v2494_v21, %v2163_v36  ;;  %v2165_v9 = vld [vmem:[#allocation5 + $0x28] sm:$0xff] }
 0x4a7   : > { %2197 = vst [vmem:[#allocation14 + $0x20] sm:$0xff] %v2181_v28  ;;  %v2187_v8 = vadd.f32 %v2494_v21, %v2164_v37  ;;  %v2166_v38 = vld [vmem:[#allocation5 + $0x90] sm:$0xff]  ;;  %v2167_v41 = vld [vmem:[#allocation5 + $0xa0] sm:$0xff]  ;;  %2198 = vst [vmem:[#allocation14 + $0x28] sm:$0xff] %v2182_v32  ;;  %v2188_v42 = vadd.f32 %v2494_v21, %v2165_v9 }
 0x4a8   : > { %2199 = vst [vmem:[#allocation14 + $0x30] sm:$0xff] %v2183_v33  ;;  %2200 = vst [vmem:[#allocation14 + $0x38] sm:$0xff] %v2184_v34  ;;  %v2189_v2 = vadd.f32 %v2494_v21, %v2166_v38  ;;  %v2190_v3 = vadd.f32 %v2494_v21, %v2167_v41  ;;  %v2168_v10 = vld [vmem:[#allocation5 + $0x8] sm:$0xff]  ;;  %v2169_v11 = vld [vmem:[#allocation5 + $0x60] sm:$0xff] }
 0x4a9   : > { %2201 = vst [vmem:[#allocation14 + $0x40] sm:$0xff] %v2185_v0  ;;  %2202 = vst [vmem:[#allocation14 + $0x48] sm:$0xff] %v2186_v1  ;;  %v2191_v43 = vadd.f32 %v2494_v21, %v2168_v10  ;;  %v2192_v4 = vadd.f32 %v2494_v21, %v2169_v11 }
 0x4aa   : > { %2203 = vst [vmem:[#allocation14 + $0x50] sm:$0xff] %v2187_v8  ;;  %2204 = vst [vmem:[#allocation14 + $0x58] sm:$0xff] %v2188_v42 }
 0x4ab   : > { %2205 = vst [vmem:[#allocation14 + $0x60] sm:$0xff] %v2189_v2  ;;  %2206 = vst [vmem:[#allocation14 + $0x68] sm:$0xff] %v2190_v3 }
 0x4ac   : > { %2207 = vst [vmem:[#allocation14 + $0x70] sm:$0xff] %v2191_v43  ;;  %2208 = vst [vmem:[#allocation14 + $0x78] sm:$0xff] %v2192_v4 }
 0x4ad PF: > { %p3567_p4 = scmp.eq.s32.totalorder %s2323_s29, 2  ;;  %s3269_s22 = smov [#allocation14]  }
 0x4ae   : > { %s2218_s23 = sshll.u32 %s3269_s22, 4  ;;  %s2219_s23 = int_to_ptr.vmem [resolvable:$true] %s2218_s23 }
 0x4af   : > { %s3193_s27 = scalar_lea.vmem %s2219_s23, 2048  ;;  %p3200_p11 = scmp.lt.s32.totalorder %s2219_s23, %s2219_s23 }
 0x4b0   : > { %p3194_p8 = scmp.ne.s32.totalorder %s2219_s23, %s3193_s27  ;;  %p3201_p12 = scmp.lt.s32.totalorder %s3193_s27, %s3193_s27 }
 0x4b2   : > { %p3195_p9 = pnand %p3194_p8, %p3567_p4  ;;  %p3202_p6 = por %p3201_p12, %p3200_p11 }
 0x4b4   : > { %p3196_p10 = pneg %p3195_p9 }
 0x4b6   : > { %p3203_p13 = pnand %p3202_p6, %p3196_p10 }
 0x4b8   : > { %3206 = shalt.err (!%p3203_p13)
}
 0x4b9   : > { %s3270_s28 = smov 128   ;;  %s3271_s29 = smov 8  }
 0x4ba   : > { %2945 = dma.vmem_to_hbm [thread:$0]  (%p3567_p4), %s2219_s23, 2048, %s3598_s7, [#allocation8], %s3270_s28, %s3270_s28, %s3271_s29  }
 0x4bb   : > { %3242 = dma.done.wait (%p3567_p4), [#allocation8], 2048  }
 0x4bc   : > { %3244 = vsyncadd (%p3567_p4), [#allocation8], 4294965248 }
 0x4bd PF: > { %s21_s26 = sadd.s32 1, %s3255_s26   ;;  %s3604_s24 = smov %s3251_s25 }
 0x4be   : > { %p18_p0 = scmp.ge.s32.totalorder %s21_s26, 5   ;;  %s3605_s25 = smov %s3607_s10 }
 0x4c0   :  { %20 = sbr.rel (!%p18_p0) target bundleno = 5 (0x5), region = 139 }
 0x4c5   :  { %2234 = vsyncpa [#allocation7], 1 }
 0x4c6   :  { %2236 = vsyncpa [#allocation7 + $0x1], 1 }
 0x4c7   :  { %2237 = vsyncpa [#allocation10], 1 }
 0x4c8   :  { %2238 = vsyncpa [#allocation13], 1 }
 0x4c9   :  { %2239 = vsyncpa [#allocation8], 1 }
 0x4ca   :  { %2241 = vsyncpa [#allocation8 + $0x1], 1 }

// kernel: tpu_custom_call.1
= control target key start
LH: loop header
LB: loop body
LE: loop exit
PB: predicated region body
PF: predicated region fallthrough
CT: control target
= control target key end

     0   :  { %12 = vsyncpa [#allocation7], 0  ;;  %s3591_s0 = inlined_call_operand.hbm [shape: bf16[128,256], index: 0, kind: input, shape index: {}]   ;;  %s3592_s1 = inlined_call_operand.hbm [shape: bf16[1,128,128], index: 1, kind: input, shape index: {}]   ;;  %s3593_s2 = inlined_call_operand.hbm [shape: bf16[256,128], index: 2, kind: input, shape index: {}]   ;;  %s3594_s3 = inlined_call_operand.hbm [shape: bf16[128,128], index: 3, kind: input, shape index: {}]   ;;  %s3595_s4 = inlined_call_operand.vmem [shape: f32[1,256], index: 4, kind: input, shape index: {}]   ;;  %s3596_s5 = inlined_call_operand.vmem [shape: f32[1,128], index: 5, kind: input, shape index: {}]   ;;  %s3597_s6 = inlined_call_operand.vmem [shape: f32[1,128], index: 6, kind: input, shape index: {}]   ;;  %s3598_s7 = inlined_call_operand.hbm [shape: f32[128,128], index: 7, kind: output, shape index: {}]  }
   0x1   :  { %13 = vsyncpa [#allocation10], 0 }
   0x2   :  { %14 = vsyncpa [#allocation13], 0 }
   0x3   :  { %15 = vsyncpa [#allocation8], 0  ;;  %s3312_s24 = smov 0   ;;  %s3314_s25 = smov 0  }
   0x4   :  { %s3316_s26 = smov 0  }
   0x5 LB: > { %s3257_s27 = smov [#allocation9]   ;;  %s2323_s29 = sadd.s32 4294967295, %s3255_s26   ;;  %s3255_s26 = sphi %s3316_s26, %s21_s26   ;;  %s3251_s25 = sphi %s3314_s25, %s3605_s25   ;;  %s3247_s24 = sphi %s3312_s24, %s3604_s24  }
   0x6   : > { %s243_s28 = sshll.u32 %s3257_s27, 4  ;;  %p2324_p0 = scmp.ge.s32.totalorder %s3255_s26, 1  ;;  %s244_s28 = int_to_ptr.vmem [resolvable:$true] %s243_s28 }
   0x7   : > { %p218_p1 = scmp.lt.s32.totalorder %s3255_s26, 4  ;;  %p3332_p2 = scmp.eq.s32.totalorder %s2323_s29, 0 }
   0x8   : > { %s40_s10 = sadd.s32 1, %s3251_s25  ;;  %s3258_s12 = smov [#allocation6]  }
   0x9   : > { %p3336_p3 = pnand %p2324_p0, %p218_p1  ;;  %p3349_p6 = scmp.ge.s32.totalorder %s40_s10, 3 }
   0xa   : > { %s230_s13 = sshll.u32 %s3258_s12, 4  ;;  %s3100_s14 = scalar_lea.vmem %s244_s28, 1024  ;;  %s231_s13 = int_to_ptr.vmem [resolvable:$true] %s230_s13 }
   0xb   : > { %p2948_p4 = pneg %p3336_p3  ;;  %p3101_p8 = scmp.ne.s32.totalorder %s244_s28, %s3100_s14 }
   0xc   : > { %p3108_p11 = scmp.lt.s32.totalorder %s244_s28, %s244_s28  ;;  %p3109_p12 = scmp.lt.s32.totalorder %s3100_s14, %s3100_s14 }
   0xd   : > { %p3344_p5 = pnand %p3332_p2, %p2948_p4 }
   0xe   : > { %p3110_p13 = por %p3109_p12, %p3108_p11 }
   0xf   : > { %p3091_p7 = pneg %p3344_p5 }
  0x11   : > { %p3103_p9 = pnand %p3101_p8, %p3091_p7 }
  0x13   : > { %p3104_p10 = pneg %p3103_p9 }
  0x15   : > { %p3111_p0 = pnand %p3110_p13, %p3104_p10 }
  0x17   : > { %3114 = shalt.err (!%p3111_p0)
}
  0x18   : > { %s3259_s15 = smov 64   ;;  %s3260_s16 = smov 4  }
  0x19   : > { %2954 = dma.hbm_to_vmem [thread:$0]  (!%p3344_p5), %s3592_s1, 1024, %s244_s28, [#allocation10], %s3259_s15, %s3259_s15, %s3260_s16  }
  0x1a   : > { %s3607_s10 = smov (%p3349_p6, %s40_s10), 0  ;;  %s3126_s19 = scalar_lea.vmem %s231_s13, 2048 }
  0x1b   : > { %p3127_p1 = scmp.ne.s32.totalorder %s231_s13, %s3126_s19  ;;  %p3134_p9 = scmp.lt.s32.totalorder %s231_s13, %s231_s13 }
  0x1c   : > { %p3135_p10 = scmp.lt.s32.totalorder %s3126_s19, %s3126_s19 }
  0x1d   : > { %p3129_p4 = pnand %p3127_p1, %p3091_p7 }
  0x1e   : > { %p3136_p11 = por %p3135_p10, %p3134_p9 }
  0x1f   : > { %p3130_p8 = pneg %p3129_p4 }
  0x21   : > { %p3137_p12 = pnand %p3136_p11, %p3130_p8 }
  0x23   : > { %3140 = shalt.err (!%p3137_p12)
}
  0x24   : > { %s3261_s20 = smov 128   ;;  %s3262_s21 = smov 8  }
  0x25   : > { %2951 = dma.hbm_to_vmem [thread:$0]  (!%p3344_p5), %s3591_s0, 2048, %s231_s13, [#allocation7], %s3261_s20, %s3261_s20, %s3262_s21  }
  0x26   : > { %s3263_s27 = smov [#allocation11]   ;;  %s3264_s11 = smov [#allocation12]  }
  0x27   : > { %s256_s28 = sshll.u32 %s3263_s27, 4  ;;  %s269_s12 = sshll.u32 %s3264_s11, 4  ;;  %s257_s28 = int_to_ptr.vmem [resolvable:$true] %s256_s28  ;;  %s270_s12 = int_to_ptr.vmem [resolvable:$true] %s269_s12 }
  0x28   : > { %s3152_s14 = scalar_lea.vmem %s257_s28, 2048  ;;  %p3160_p1 = scmp.lt.s32.totalorder %s257_s28, %s257_s28 }
  0x29   : > { %p3153_p6 = scmp.ne.s32.totalorder %s257_s28, %s3152_s14  ;;  %p3161_p4 = scmp.lt.s32.totalorder %s3152_s14, %s3152_s14 }
  0x2b   : > { %p3155_p13 = pnand %p3153_p6, %p3091_p7  ;;  %p3162_p8 = por %p3161_p4, %p3160_p1 }
  0x2d   : > { %p3156_p0 = pneg %p3155_p13 }
  0x2f   : > { %p3163_p9 = pnand %p3162_p8, %p3156_p0 }
  0x31   : > { %3166 = shalt.err (!%p3163_p9)
}
  0x32   : > { %2957 = dma.hbm_to_vmem [thread:$0]  (!%p3344_p5), %s3593_s2, 2048, %s257_s28, [#allocation10], %s3259_s15, %s3259_s15, %s3260_s16  }
  0x33   : > { %s3178_s18 = scalar_lea.vmem %s270_s12, 1024  ;;  %p3186_p6 = scmp.lt.s32.totalorder %s270_s12, %s270_s12 }
  0x34   : > { %p3179_p10 = scmp.ne.s32.totalorder %s270_s12, %s3178_s18  ;;  %p3187_p13 = scmp.lt.s32.totalorder %s3178_s18, %s3178_s18 }
  0x36   : > { %p3181_p11 = pnand %p3179_p10, %p3091_p7  ;;  %p3188_p0 = por %p3187_p13, %p3186_p6 }
  0x38   : > { %p3182_p12 = pneg %p3181_p11 }
  0x3a   : > { %p3189_p1 = pnand %p3188_p0, %p3182_p12 }
  0x3c   : > { %3192 = shalt.err (!%p3189_p1)
}
  0x3d   : > { %2960 = dma.hbm_to_vmem [thread:$0]  (!%p3344_p5), %s3594_s3, 1024, %s270_s12, [#allocation13], %s3259_s15, %s3259_s15, %s3260_s16  }
  0x3e   : > { %294 = sbr.rel (%p3336_p3) target bundleno = 1213 (0x4bd), region = 48 }
  0x43   : > { %3230 = dma.done.wait (%p3332_p2), [#allocation7], 2048  }
  0x44   : > { %3232 = vsyncadd (%p3332_p2), [#allocation7], 4294965248 }
  0x45   : > { %3234 = dma.done.wait (%p3332_p2), [#allocation10], 3072  }
  0x46   : > { %3236 = vsyncadd (%p3332_p2), [#allocation10], 4294964224 }
  0x47   : > { %3238 = dma.done.wait (%p3332_p2), [#allocation13], 1024  }
  0x48   : > { %3240 = vsyncadd (%p3332_p2), [#allocation13], 4294966272  ;;  %v3414_v0 = vld [vmem:[#allocation9] sm:$0xf]  ;;  %v3416_v1 = vld [vmem:[#allocation9 + $0x4] sm:$0xf] }
  0x49   : > { %v3418_v2 = vld [vmem:[#allocation9 + $0x8] sm:$0xf]  ;;  %v3420_v3 = vld [vmem:[#allocation9 + $0xc] sm:$0xf]  ;;  %v3422_v4 = vld [vmem:[#allocation9 + $0x10] sm:$0xf] }
  0x4a   : > { %v3424_v5 = vld [vmem:[#allocation9 + $0x14] sm:$0xf]  ;;  %v3426_v6 = vld [vmem:[#allocation9 + $0x18] sm:$0xf]  ;;  %v3428_v7 = vld [vmem:[#allocation9 + $0x1c] sm:$0xf] }
  0x4b   : > { %v3430_v8 = vld [vmem:[#allocation9 + $0x20] sm:$0xf]  ;;  %v3432_v9 = vld [vmem:[#allocation9 + $0x24] sm:$0xf]  ;;  %v3434_v10 = vld [vmem:[#allocation9 + $0x28] sm:$0xf] }
  0x4c   : > { %v3436_v11 = vld [vmem:[#allocation9 + $0x2c] sm:$0xf]  ;;  %v3438_v12 = vld [vmem:[#allocation9 + $0x30] sm:$0xf]  ;;  %v3440_v13 = vld [vmem:[#allocation9 + $0x34] sm:$0xf] }
  0x4d   : > { %v3442_v14 = vld [vmem:[#allocation9 + $0x38] sm:$0xf]  ;;  %v3444_v15 = vld [vmem:[#allocation9 + $0x3c] sm:$0xf]  ;;  %p2334_p2 = scmp.ne.s32.totalorder %s3247_s24, 1 }
  0x4f   : > { %361 = sbr.rel (%p2334_p2) target bundleno = 345 (0x159), region = 72 }
  0x54   : > { %v3010_v16 = vld [vmem:[#allocation11 + $0x78] sm:$0xff]   ;;  %v3012_v18 = vld [vmem:[#allocation11 + $0x70] sm:$0xff]   ;;  %v3014_v20 = vld [vmem:[#allocation11 + $0x68] sm:$0xff]  }
  0x55   : > { %v3011_v17 = vld [vmem:[#allocation11 + $0x38] sm:$0xff]   ;;  %2704 = vmatprep.subr.bf16.mxu0 %v3010_v16  ;;  %2864 = vmatprep.subr.bf16.mxu1 %v3010_v16  ;;  %v3013_v19 = vld [vmem:[#allocation11 + $0x30] sm:$0xff]   ;;  %v3015_v21 = vld [vmem:[#allocation11 + $0x28] sm:$0xff]  }
  0x56   : > { %2705 = vmatpush3.bf16.msra.mxu0 %v3011_v17  ;;  %2872 = vmatpush3.bf16.msra.mxu1 %v3011_v17  ;;  %v3016_v22 = vld [vmem:[#allocation11 + $0x60] sm:$0xff]   ;;  %v3018_v24 = vld [vmem:[#allocation11 + $0x58] sm:$0xff]   ;;  %v3020_v26 = vld [vmem:[#allocation11 + $0x50] sm:$0xff]  }
  0x57   : > { %2706 = vmatprep.subr.bf16.mxu0 %v3012_v18  ;;  %2865 = vmatprep.subr.bf16.mxu1 %v3012_v18  ;;  %v3017_v23 = vld [vmem:[#allocation11 + $0x20] sm:$0xff]   ;;  %v3019_v25 = vld [vmem:[#allocation11 + $0x18] sm:$0xff]   ;;  %v3021_v31 = vld [vmem:[#allocation11 + $0x10] sm:$0xff]  }
  0x58   : > { %v3028_v27 = vld [vmem:[#allocation2 + $0x34] ss:$-48 sps:$4 sm:$0xff]   ;;  %v3022_v32 = vld [vmem:[#allocation11 + $0x48] sm:$0xff]   ;;  %v369_v36 = vld [vmem:[#allocation2 + $0x58] sm:$0xff] }
  0x59   : > { %v375_v28 = vld [vmem:[#allocation2 + $0x40] sm:$0xff]  ;;  %623 = vmatprep.mubr.bf16.mxu0 %v3028_v27  ;;  %v3023_v33 = vld [vmem:[#allocation11 + $0x8] sm:$0xff]   ;;  %v370_v37 = vld [vmem:[#allocation2 + $0x18] sm:$0xff] }
  0x5a   : > { %2707 = vmatpush3.bf16.msra.mxu0 %v3013_v19  ;;  %2873 = vmatpush3.bf16.msra.mxu1 %v3013_v19  ;;  %v376_v29 = vld [vmem:[#allocation2 + $0x20] sm:$0xff]  ;;  %v2338_v40 = vcombine.high %v369_v36, %v370_v37  ;;  %v3029_v41 = vld [vmem:[#allocation2 + $0x14] ss:$40 sps:$4 sm:$0xff]   ;;  %v2337_v42 = vcombine.low %v369_v36, %v370_v37  ;;  %v3031_v43 = vld [vmem:[#allocation2 + $0x10] ss:$40 sps:$4 sm:$0xff]  }
  0x5b   : > { %2708 = vmatprep.subr.bf16.mxu0 %v3014_v20  ;;  %2866 = vmatprep.subr.bf16.mxu1 %v3014_v20  ;;  %v2344_v30 = vcombine.high %v375_v28, %v376_v29  ;;  %v3024_v34 = vld [vmem:[#allocation11 + $0x40] sm:$0xff]   ;;  %v2343_v39 = vcombine.low %v375_v28, %v376_v29  ;;  %v3032_v44 = vld [vmem:[#allocation2 + $0x54] ss:$24 sps:$4 sm:$0xff]   ;;  %v3036_v48 = vld [vmem:[#allocation2 + $0x50] ss:$24 sps:$4 sm:$0xff]  }
  0x5c   : > { %v3025_v35 = vld [vmem:[#allocation11] sm:$0xff]   ;;  %v373_v46 = vld [vmem:[#allocation2 + $0x8] sm:$0xff] }
  0x5d   : > { %655 = vmatprep.mubr.bf16.mxu1 %v2344_v30  ;;  %v3026_v38 = vld [vmem:[#allocation2 + $0x30] ss:$-48 sps:$4 sm:$0xff]   ;;  %v3034_v45 = vld [vmem:[#allocation2 + $0x64] ss:$16 sps:$4 sm:$0xff]   ;;  %v374_v47 = vld [vmem:[#allocation2 + $0x48] sm:$0xff] }
  0x5e   : > { %2709 = vmatpush3.bf16.msra.mxu0 %v3015_v21  ;;  %2874 = vmatpush3.bf16.msra.mxu1 %v3015_v21  ;;  %v3037_v49 = vld [vmem:[#allocation2 + $0x60] ss:$16 sps:$4 sm:$0xff]   ;;  %v2342_v50 = vcombine.high %v373_v46, %v374_v47  ;;  %v3038_v51 = vld [vmem:[#allocation2 + $0x7c] ss:$-80 sps:$4 sm:$0xff]   ;;  %v2341_v52 = vcombine.low %v373_v46, %v374_v47  ;;  %v3040_v53 = vld [vmem:[#allocation2 + $0x78] ss:$-80 sps:$4 sm:$0xff]  }
  0x5f   : > { %2710 = vmatprep.subr.bf16.mxu0 %v3016_v22  ;;  %2867 = vmatprep.subr.bf16.mxu1 %v3016_v22 }
  0x62   : > { %2711 = vmatpush3.bf16.msra.mxu0 %v3017_v23  ;;  %2875 = vmatpush3.bf16.msra.mxu1 %v3017_v23 }
  0x63   : > { %2712 = vmatprep.subr.bf16.mxu0 %v3018_v24  ;;  %2868 = vmatprep.subr.bf16.mxu1 %v3018_v24 }
  0x66   : > { %2713 = vmatpush3.bf16.msra.mxu0 %v3019_v25  ;;  %2876 = vmatpush3.bf16.msra.mxu1 %v3019_v25 }
  0x67   : > { %2714 = vmatprep.subr.bf16.mxu0 %v3020_v26  ;;  %2869 = vmatprep.subr.bf16.mxu1 %v3020_v26 }
  0x6a   : > { %2715 = vmatpush3.bf16.msra.mxu0 %v3021_v31  ;;  %2877 = vmatpush3.bf16.msra.mxu1 %v3021_v31 }
  0x6b   : > { %2716 = vmatprep.subr.bf16.mxu0 %v3022_v32  ;;  %2870 = vmatprep.subr.bf16.mxu1 %v3022_v32 }
  0x6e   : > { %2717 = vmatpush3.bf16.msra.mxu0 %v3023_v33  ;;  %2878 = vmatpush3.bf16.msra.mxu1 %v3023_v33 }
  0x6f   : > { %2718 = vmatprep.subr.bf16.mxu0 %v3024_v34  ;;  %2871 = vmatprep.subr.bf16.mxu1 %v3024_v34 }
  0x72   : > { %2719 = vmatpush3.bf16.msra.mxu0 %v3025_v35  ;;  %2879 = vmatpush3.bf16.msra.mxu1 %v3025_v35 }
  0x75   : > { %624 = vmatmul.mubr.bf16.vlgmr.msra.gmra.mxu0 %v3026_v38  ;;  %656 = vmatmul.mubr.bf16.vlgmr.msra.gmra.mxu1 %v2343_v39 }
  0x76   : > { %631 = vmatprep.mubr.bf16.mxu0 %v2338_v40  ;;  %663 = vmatprep.mubr.bf16.mxu1 %v3029_v41 }
  0x7d   : > { %632 = vmatmul.mubr.bf16.gmra.mxu0 %v2337_v42  ;;  %664 = vmatmul.mubr.bf16.gmra.mxu1 %v3031_v43 }
  0x7e   : > { %639 = vmatprep.mubr.bf16.mxu0 %v3032_v44  ;;  %671 = vmatprep.mubr.bf16.mxu1 %v3034_v45 }
  0x85   : > { %640 = vmatmul.mubr.bf16.gmra.mxu0 %v3036_v48  ;;  %672 = vmatmul.mubr.bf16.gmra.mxu1 %v3037_v49 }
  0x86   : > { %647 = vmatprep.mubr.bf16.mxu0 %v2342_v50  ;;  %679 = vmatprep.mubr.bf16.mxu1 %v3038_v51 }
  0x8d   : > { %648 = vmatmul.mubr.bf16.gmra.mxu0 %v2341_v52  ;;  %680 = vmatmul.mubr.bf16.gmra.mxu1 %v3040_v53 }
 0x135   : > { %v2720_v54 = vpop.f32.mrf.mxu0  ;;  %v2744_v55 = vpop.f32.mrf.mxu1 }
 0x137   : > { %v2721_v56 = vpop.f32.mrf.mxu0  ;;  %v2745_v57 = vpop.f32.mrf.mxu1 }
 0x138   : > { %v2722_v62 = vadd.f32 %v2721_v56, %v2720_v54  ;;  %v2746_v63 = vadd.f32 %v2745_v57, %v2744_v55 }
 0x139   : > { %v2723_v58 = vpop.f32.mrf.mxu0  ;;  %v2747_v59 = vpop.f32.mrf.mxu1 }
 0x13b   : > { %v2724_v60 = vpop.f32.mrf.mxu0  ;;  %v2748_v61 = vpop.f32.mrf.mxu1 }
 0x13c   : > { %v2725_v16 = vadd.f32 %v2724_v60, %v2723_v58  ;;  %v2749_v17 = vadd.f32 %v2748_v61, %v2747_v59 }
 0x13d   : > { %v2726_v18 = vpop.f32.mrf.mxu0  ;;  %v2750_v19 = vpop.f32.mrf.mxu1 }
 0x13e   : > { %v2566_v20 = vpack.c.bf16 %v2725_v16, %v2722_v62  ;;  %v2586_v21 = vpack.c.bf16 %v2749_v17, %v2746_v63 }
 0x13f   : > { %v2727_v22 = vpop.f32.mrf.mxu0  ;;  %v2751_v23 = vpop.f32.mrf.mxu1 }
 0x140   : > { %2567 = vst [vmem:[#allocation4] sm:$0xff] %v2566_v20   ;;  %2686 = vst [vmem:[#allocation4 + $0x20] sm:$0xff] %v2586_v21   ;;  %v2728_v28 = vadd.f32 %v2727_v22, %v2726_v18  ;;  %v2752_v29 = vadd.f32 %v2751_v23, %v2750_v19 }
 0x141   : > { %v2729_v24 = vpop.f32.mrf.mxu0  ;;  %v2753_v25 = vpop.f32.mrf.mxu1 }
 0x143   : > { %v2730_v26 = vpop.f32.mrf.mxu0  ;;  %v2754_v27 = vpop.f32.mrf.mxu1 }
 0x144   : > { %v2731_v30 = vadd.f32 %v2730_v26, %v2729_v24  ;;  %v2755_v31 = vadd.f32 %v2754_v27, %v2753_v25 }
 0x145   : > { %v2732_v32 = vpop.f32.mrf.mxu0  ;;  %v2756_v33 = vpop.f32.mrf.mxu1 }
 0x146   : > { %v2571_v34 = vpack.c.bf16 %v2731_v30, %v2728_v28  ;;  %v2591_v35 = vpack.c.bf16 %v2755_v31, %v2752_v29 }
 0x147   : > { %v2733_v36 = vpop.f32.mrf.mxu0  ;;  %v2757_v37 = vpop.f32.mrf.mxu1 }
 0x148   : > { %2683 = vst [vmem:[#allocation4 + $0x8] sm:$0xff] %v2571_v34   ;;  %2687 = vst [vmem:[#allocation4 + $0x28] sm:$0xff] %v2591_v35   ;;  %v2734_v42 = vadd.f32 %v2733_v36, %v2732_v32  ;;  %v2758_v43 = vadd.f32 %v2757_v37, %v2756_v33 }
 0x149   : > { %v2735_v38 = vpop.f32.mrf.mxu0  ;;  %v2759_v39 = vpop.f32.mrf.mxu1 }
 0x14b   : > { %v2736_v40 = vpop.f32.mrf.mxu0  ;;  %v2760_v41 = vpop.f32.mrf.mxu1 }
 0x14c   : > { %v2737_v44 = vadd.f32 %v2736_v40, %v2735_v38  ;;  %v2761_v45 = vadd.f32 %v2760_v41, %v2759_v39 }
 0x14d   : > { %v2738_v46 = vpop.f32.mrf.mxu0  ;;  %v2762_v47 = vpop.f32.mrf.mxu1 }
 0x14e   : > { %v2576_v48 = vpack.c.bf16 %v2737_v44, %v2734_v42  ;;  %v2596_v49 = vpack.c.bf16 %v2761_v45, %v2758_v43 }
 0x14f   : > { %v2739_v50 = vpop.f32.mrf.mxu0  ;;  %v2763_v51 = vpop.f32.mrf.mxu1 }
 0x150   : > { %2684 = vst [vmem:[#allocation4 + $0x10] sm:$0xff] %v2576_v48   ;;  %2688 = vst [vmem:[#allocation4 + $0x30] sm:$0xff] %v2596_v49   ;;  %v2740_v56 = vadd.f32 %v2739_v50, %v2738_v46  ;;  %v2764_v57 = vadd.f32 %v2763_v51, %v2762_v47 }
 0x151   : > { %v2741_v52 = vpop.f32.mrf.mxu0  ;;  %v2765_v53 = vpop.f32.mrf.mxu1 }
 0x153   : > { %v2742_v54 = vpop.f32.mrf.mxu0  ;;  %v2766_v55 = vpop.f32.mrf.mxu1 }
 0x154   : > { %v2743_v58 = vadd.f32 %v2742_v54, %v2741_v52  ;;  %v2767_v59 = vadd.f32 %v2766_v55, %v2765_v53 }
 0x156   : > { %v2581_v60 = vpack.c.bf16 %v2743_v58, %v2740_v56  ;;  %v2601_v61 = vpack.c.bf16 %v2767_v59, %v2764_v57 }
 0x158   : > { %2685 = vst [vmem:[#allocation4 + $0x18] sm:$0xff] %v2581_v60   ;;  %2689 = vst [vmem:[#allocation4 + $0x38] sm:$0xff] %v2601_v61  }
 0x159 PF: > { %p2383_p3 = scmp.ne.s32.totalorder %s3247_s24, 2 }
 0x15b   : > { %773 = sbr.rel (%p2383_p3) target bundleno = 595 (0x253), region = 76 }
 0x160   : > { %v3041_v62 = vld [vmem:[#allocation12 + $0x38] sm:$0xff]   ;;  %v3042_v63 = vld [vmem:[#allocation12 + $0x30] sm:$0xff]   ;;  %v3043_v16 = vld [vmem:[#allocation12 + $0x28] sm:$0xff]  }
 0x161   : > { %2800 = vmatprep.subr.bf16.mxu0 %v3041_v62  ;;  %2880 = vmatprep.subr.bf16.mxu1 %v3041_v62  ;;  %v3044_v17 = vld [vmem:[#allocation12 + $0x20] sm:$0xff]   ;;  %v3045_v20 = vld [vmem:[#allocation12 + $0x18] sm:$0xff]   ;;  %v3046_v21 = vld [vmem:[#allocation12 + $0x10] sm:$0xff]  }
 0x162   : > { %2801 = vmatpush3.bf16.msra.mxu0 %v3041_v62  ;;  %2888 = vmatpush3.bf16.msra.mxu1 %v3041_v62  ;;  %v3049_v18 = vld [vmem:[#allocation3] sm:$0xff]   ;;  %v3047_v22 = vld [vmem:[#allocation12 + $0x8] sm:$0xff]   ;;  %v3053_v26 = vld [vmem:[#allocation3 + $0x10] sm:$0xff]  }
 0x163   : > { %2802 = vmatprep.subr.bf16.mxu0 %v3042_v63  ;;  %2881 = vmatprep.subr.bf16.mxu1 %v3042_v63  ;;  %v3050_v19 = vld [vmem:[#allocation3 + $0x20] sm:$0xff]   ;;  %v3051_v24 = vld [vmem:[#allocation3 + $0x8] sm:$0xff]   ;;  %v3054_v27 = vld [vmem:[#allocation3 + $0x30] sm:$0xff]  }
 0x164   : > { %2816 = vmatprep.mubr.bf16.mxu0 %v3049_v18  ;;  %2824 = vmatprep.mubr.bf16.mxu1 %v3050_v19  ;;  %v3048_v23 = vld [vmem:[#allocation12] sm:$0xff]   ;;  %v3052_v25 = vld [vmem:[#allocation3 + $0x28] sm:$0xff]   ;;  %v3055_v28 = vld [vmem:[#allocation3 + $0x18] sm:$0xff]  }
 0x165   : > { %v3056_v29 = vld [vmem:[#allocation3 + $0x38] sm:$0xff]  }
 0x166   : > { %2803 = vmatpush3.bf16.msra.mxu0 %v3042_v63  ;;  %2889 = vmatpush3.bf16.msra.mxu1 %v3042_v63 }
 0x167   : > { %2804 = vmatprep.subr.bf16.mxu0 %v3043_v16  ;;  %2882 = vmatprep.subr.bf16.mxu1 %v3043_v16 }
 0x16a   : > { %2805 = vmatpush3.bf16.msra.mxu0 %v3043_v16  ;;  %2890 = vmatpush3.bf16.msra.mxu1 %v3043_v16 }
 0x16b   : > { %2806 = vmatprep.subr.bf16.mxu0 %v3044_v17  ;;  %2883 = vmatprep.subr.bf16.mxu1 %v3044_v17 }
 0x16e   : > { %2807 = vmatpush3.bf16.msra.mxu0 %v3044_v17  ;;  %2891 = vmatpush3.bf16.msra.mxu1 %v3044_v17 }
 0x16f   : > { %2808 = vmatprep.subr.bf16.mxu0 %v3045_v20  ;;  %2884 = vmatprep.subr.bf16.mxu1 %v3045_v20 }
 0x172   : > { %2809 = vmatpush3.bf16.msra.mxu0 %v3045_v20  ;;  %2892 = vmatpush3.bf16.msra.mxu1 %v3045_v20 }
 0x173   : > { %2810 = vmatprep.subr.bf16.mxu0 %v3046_v21  ;;  %2885 = vmatprep.subr.bf16.mxu1 %v3046_v21 }
 0x176   : > { %2811 = vmatpush3.bf16.msra.mxu0 %v3046_v21  ;;  %2893 = vmatpush3.bf16.msra.mxu1 %v3046_v21 }
 0x177   : > { %2812 = vmatprep.subr.bf16.mxu0 %v3047_v22  ;;  %2886 = vmatprep.subr.bf16.mxu1 %v3047_v22 }
 0x17a   : > { %2813 = vmatpush3.bf16.msra.mxu0 %v3047_v22  ;;  %2894 = vmatpush3.bf16.msra.mxu1 %v3047_v22 }
 0x17b   : > { %2814 = vmatprep.subr.bf16.mxu0 %v3048_v23  ;;  %2887 = vmatprep.subr.bf16.mxu1 %v3048_v23 }
 0x17e   : > { %2815 = vmatpush3.bf16.msra.mxu0 %v3048_v23  ;;  %2895 = vmatpush3.bf16.msra.mxu1 %v3048_v23 }
 0x181   : > { %2817 = vmatmul.mubr.bf16.vlgmr.msra.gmra.mxu0 %v3051_v24  ;;  %2825 = vmatmul.mubr.bf16.vlgmr.msra.gmra.mxu1 %v3052_v25 }
 0x182   : > { %2820 = vmatprep.mubr.bf16.mxu0 %v3053_v26  ;;  %2828 = vmatprep.mubr.bf16.mxu1 %v3054_v27 }
 0x189   : > { %2821 = vmatmul.mubr.bf16.gmra.mxu0 %v3055_v28  ;;  %2829 = vmatmul.mubr.bf16.gmra.mxu1 %v3056_v29 }
 0x241   : > { %v2818_v30 = vpop.f32.mrf.mxu0  ;;  %v2826_v31 = vpop.f32.mrf.mxu1 }
 0x243   : > { %v940_v32 = vpop.f32.mrf.mxu0  ;;  %v972_v33 = vpop.f32.mrf.mxu1 }
 0x245   : > { %v2819_v34 = vpop.f32.mrf.mxu0  ;;  %v2827_v35 = vpop.f32.mrf.mxu1 }
 0x246   : > { %v2611_v36 = vpack.c.bf16 %v2819_v34, %v2818_v30  ;;  %v2631_v37 = vpack.c.bf16 %v2827_v35, %v2826_v31 }
 0x247   : > { %v943_v38 = vpop.f32.mrf.mxu0  ;;  %v975_v39 = vpop.f32.mrf.mxu1 }
 0x248   : > { %2690 = vst [vmem:[#allocation4 + $0x8] sm:$0xff] %v2611_v36   ;;  %2694 = vst [vmem:[#allocation4 + $0x28] sm:$0xff] %v2631_v37   ;;  %v2606_v40 = vpack.c.bf16 %v943_v38, %v940_v32  ;;  %v2626_v41 = vpack.c.bf16 %v975_v39, %v972_v33 }
 0x249   : > { %v2822_v42 = vpop.f32.mrf.mxu0  ;;  %v2830_v43 = vpop.f32.mrf.mxu1 }
 0x24a   : > { %2607 = vst [vmem:[#allocation4] sm:$0xff] %v2606_v40   ;;  %2693 = vst [vmem:[#allocation4 + $0x20] sm:$0xff] %v2626_v41  }
 0x24b   : > { %v956_v44 = vpop.f32.mrf.mxu0  ;;  %v988_v45 = vpop.f32.mrf.mxu1 }
 0x24d   : > { %v2823_v46 = vpop.f32.mrf.mxu0  ;;  %v2831_v47 = vpop.f32.mrf.mxu1 }
 0x24e   : > { %v2621_v48 = vpack.c.bf16 %v2823_v46, %v2822_v42  ;;  %v2641_v49 = vpack.c.bf16 %v2831_v47, %v2830_v43 }
 0x24f   : > { %v959_v50 = vpop.f32.mrf.mxu0  ;;  %v991_v51 = vpop.f32.mrf.mxu1 }
 0x250   : > { %2692 = vst [vmem:[#allocation4 + $0x18] sm:$0xff] %v2621_v48   ;;  %2696 = vst [vmem:[#allocation4 + $0x38] sm:$0xff] %v2641_v49   ;;  %v2616_v52 = vpack.c.bf16 %v959_v50, %v956_v44  ;;  %v2636_v53 = vpack.c.bf16 %v991_v51, %v988_v45 }
 0x252   : > { %2691 = vst [vmem:[#allocation4 + $0x10] sm:$0xff] %v2616_v52   ;;  %2695 = vst [vmem:[#allocation4 + $0x30] sm:$0xff] %v2636_v53  }
 0x253 PF: > { %v3265_v54 = vmov 0.0   ;;  %p2416_p5 = scmp.ne.s32.totalorder %s3247_s24, 0 }
 0x254   : > { %1089 = vst [vmem:[#allocation5 + $0xa8] sm:$0xff] %v3265_v54  ;;  %1090 = vst [vmem:[#allocation5 + $0x68] sm:$0xff] %v3265_v54 }
 0x255   : > { %1091 = vst [vmem:[#allocation5 + $0x10] sm:$0xff] %v3265_v54  ;;  %1092 = vst [vmem:[#allocation5 + $0xc0] sm:$0xff] %v3265_v54 }
 0x256   : > { %1093 = vst [vmem:[#allocation5 + $0xc8] sm:$0xff] %v3265_v54  ;;  %1094 = vst [vmem:[#allocation5 + $0xb0] sm:$0xff] %v3265_v54 }
 0x257   : > { %1095 = vst [vmem:[#allocation5 + $0x70] sm:$0xff] %v3265_v54  ;;  %1096 = vst [vmem:[#allocation5 + $0x38] sm:$0xff] %v3265_v54 }
 0x258   : > { %1097 = vst [vmem:[#allocation5 + $0x48] sm:$0xff] %v3265_v54  ;;  %1098 = vst [vmem:[#allocation5 + $0xf8] sm:$0xff] %v3265_v54 }
 0x259   : > { %1099 = vst [vmem:[#allocation5 + $0x78] sm:$0xff] %v3265_v54  ;;  %1100 = vst [vmem:[#allocation5 + $0x88] sm:$0xff] %v3265_v54 }
 0x25a   : > { %1101 = vst [vmem:[#allocation5 + $0xf0] sm:$0xff] %v3265_v54  ;;  %1102 = vst [vmem:[#allocation5 + $0x18] sm:$0xff] %v3265_v54 }
 0x25b   : > { %1103 = vst [vmem:[#allocation5 + $0x30] sm:$0xff] %v3265_v54  ;;  %1104 = vst [vmem:[#allocation5 + $0x50] sm:$0xff] %v3265_v54 }
 0x25c   : > { %1105 = vst [vmem:[#allocation5 + $0xb8] sm:$0xff] %v3265_v54  ;;  %1106 = vst [vmem:[#allocation5 + $0xd0] sm:$0xff] %v3265_v54 }
 0x25d   : > { %1107 = vst [vmem:[#allocation5 + $0xd8] sm:$0xff] %v3265_v54  ;;  %1108 = vst [vmem:[#allocation5 + $0x58] sm:$0xff] %v3265_v54 }
 0x25e   : > { %1109 = vst [vmem:[#allocation5 + $0x80] sm:$0xff] %v3265_v54  ;;  %1110 = vst [vmem:[#allocation5 + $0x40] sm:$0xff] %v3265_v54 }
 0x25f   : > { %1111 = vst [vmem:[#allocation5 + $0x28] sm:$0xff] %v3265_v54  ;;  %1112 = vst [vmem:[#allocation5] sm:$0xff] %v3265_v54  ;;  %1124 = sbr.rel (%p2416_p5) target bundleno = 872 (0x368), region = 84 }
 0x260   : > { %1113 = vst [vmem:[#allocation5 + $0x90] sm:$0xff] %v3265_v54  ;;  %1114 = vst [vmem:[#allocation5 + $0xe8] sm:$0xff] %v3265_v54 }
 0x261   : > { %1115 = vst [vmem:[#allocation5 + $0xa0] sm:$0xff] %v3265_v54  ;;  %1116 = vst [vmem:[#allocation5 + $0x20] sm:$0xff] %v3265_v54 }
 0x262   : > { %1117 = vst [vmem:[#allocation5 + $0x8] sm:$0xff] %v3265_v54  ;;  %1118 = vst [vmem:[#allocation5 + $0xe0] sm:$0xff] %v3265_v54 }
 0x263   : > { %1119 = vst [vmem:[#allocation5 + $0x60] sm:$0xff] %v3265_v54  ;;  %1120 = vst [vmem:[#allocation5 + $0x98] sm:$0xff] %v3265_v54 }
 0x264   : > { %v3057_v55 = vld [vmem:[#allocation6 + $0x74] ss:$8 sps:$4 sm:$0xff]   ;;  %v3059_v56 = vld [vmem:[#allocation6 + $0x70] ss:$8 sps:$4 sm:$0xff]   ;;  %v3266_v57 = vmov 0   ;;  %v2417_v24 = vcombine.low %v3414_v0, %v3416_v1  ;;  %v2421_v25 = vcombine.low %v3430_v8, %v3432_v9  ;;  %v2418_v26 = vcombine.low %v3418_v2, %v3420_v3  ;;  %v1125_v32 = vld [vmem:[#allocation5 + $0xa8] sm:$0xff] }
 0x265   : > { %1338 = vmatprep.mubr.bf16.mxu0 %v3266_v57  ;;  %1378 = vmatprep.mubr.bf16.mxu1 %v3266_v57  ;;  %v3060_v58 = vld [vmem:[#allocation6 + $0x64] ss:$8 sps:$4 sm:$0xff]   ;;  %v3062_v59 = vld [vmem:[#allocation6 + $0x60] ss:$8 sps:$4 sm:$0xff]   ;;  %v3063_v60 = vld [vmem:[#allocation6 + $0x54] ss:$8 sps:$4 sm:$0xff]   ;;  %v2422_v27 = vcombine.low %v3434_v10, %v3436_v11  ;;  %v2419_v28 = vcombine.low %v3422_v4, %v3424_v5  ;;  %v2423_v29 = vcombine.low %v3438_v12, %v3440_v13 }
 0x266   : > { %1306 = vmatprep.subr.bf16.mxu0 %v3057_v55  ;;  %2896 = vmatprep.subr.bf16.mxu1 %v3057_v55  ;;  %v3065_v61 = vld [vmem:[#allocation6 + $0x50] ss:$8 sps:$4 sm:$0xff]   ;;  %v3066_v62 = vld [vmem:[#allocation6 + $0x44] ss:$8 sps:$4 sm:$0xff]   ;;  %v3068_v63 = vld [vmem:[#allocation6 + $0x40] ss:$8 sps:$4 sm:$0xff]   ;;  %v2420_v30 = vcombine.low %v3426_v6, %v3428_v7  ;;  %v2424_v31 = vcombine.low %v3442_v14, %v3444_v15 }
 0x267   : > { %1307 = vmatpush1.bf16.msra.mxu0 %v3059_v56  ;;  %2904 = vmatpush1.bf16.msra.mxu1 %v3059_v56  ;;  %v3069_v16 = vld [vmem:[#allocation6 + $0x34] ss:$8 sps:$4 sm:$0xff]   ;;  %v3071_v17 = vld [vmem:[#allocation6 + $0x30] ss:$8 sps:$4 sm:$0xff]   ;;  %v3072_v18 = vld [vmem:[#allocation6 + $0x24] ss:$8 sps:$4 sm:$0xff]  }
 0x268   : > { %1308 = vmatprep.subr.bf16.mxu0 %v3060_v58  ;;  %2897 = vmatprep.subr.bf16.mxu1 %v3060_v58  ;;  %v3074_v19 = vld [vmem:[#allocation6 + $0x20] ss:$8 sps:$4 sm:$0xff]   ;;  %v3075_v20 = vld [vmem:[#allocation6 + $0x14] ss:$8 sps:$4 sm:$0xff]   ;;  %v3077_v21 = vld [vmem:[#allocation6 + $0x10] ss:$8 sps:$4 sm:$0xff]  }
 0x269   : > { %v3078_v22 = vld [vmem:[#allocation6 + $0x4] ss:$8 sps:$4 sm:$0xff]   ;;  %v3080_v23 = vld [vmem:[#allocation6] ss:$8 sps:$4 sm:$0xff]   ;;  %v1141_v33 = vld [vmem:[#allocation5 + $0xb8] sm:$0xff] }
 0x26a   : > { %v1126_v36 = vld [vmem:[#allocation5 + $0x68] sm:$0xff]  ;;  %v1142_v37 = vld [vmem:[#allocation5 + $0xd0] sm:$0xff]  ;;  %v1143_v43 = vld [vmem:[#allocation5 + $0xd8] sm:$0xff] }
 0x26b   : > { %1309 = vmatpush1.bf16.msra.mxu0 %v3062_v59  ;;  %2905 = vmatpush1.bf16.msra.mxu1 %v3062_v59  ;;  %v1127_v42 = vld [vmem:[#allocation5 + $0x10] sm:$0xff]  ;;  %v1128_v48 = vld [vmem:[#allocation5 + $0xc0] sm:$0xff]  ;;  %v1144_v49 = vld [vmem:[#allocation5 + $0x58] sm:$0xff] }
 0x26c   : > { %1310 = vmatprep.subr.bf16.mxu0 %v3063_v60  ;;  %2898 = vmatprep.subr.bf16.mxu1 %v3063_v60  ;;  %v1129_v54 = vld [vmem:[#allocation5 + $0xc8] sm:$0xff]  ;;  %v1145_v55 = vld [vmem:[#allocation5 + $0x80] sm:$0xff]  ;;  %v1130_v60 = vld [vmem:[#allocation5 + $0xb0] sm:$0xff] }
 0x26f   : > { %1311 = vmatpush1.bf16.msra.mxu0 %v3065_v61  ;;  %2906 = vmatpush1.bf16.msra.mxu1 %v3065_v61  ;;  %v1146_v61 = vld [vmem:[#allocation5 + $0x40] sm:$0xff] }
 0x270   : > { %1312 = vmatprep.subr.bf16.mxu0 %v3066_v62  ;;  %2899 = vmatprep.subr.bf16.mxu1 %v3066_v62 }
 0x273   : > { %1313 = vmatpush1.bf16.msra.mxu0 %v3068_v63  ;;  %2907 = vmatpush1.bf16.msra.mxu1 %v3068_v63 }
 0x274   : > { %1314 = vmatprep.subr.bf16.mxu0 %v3069_v16  ;;  %2900 = vmatprep.subr.bf16.mxu1 %v3069_v16 }
 0x277   : > { %1315 = vmatpush1.bf16.msra.mxu0 %v3071_v17  ;;  %2908 = vmatpush1.bf16.msra.mxu1 %v3071_v17 }
 0x278   : > { %1316 = vmatprep.subr.bf16.mxu0 %v3072_v18  ;;  %2901 = vmatprep.subr.bf16.mxu1 %v3072_v18  ;;  %v1131_v18 = vld [vmem:[#allocation5 + $0x70] sm:$0xff] }
 0x27b   : > { %1317 = vmatpush1.bf16.msra.mxu0 %v3074_v19  ;;  %2909 = vmatpush1.bf16.msra.mxu1 %v3074_v19  ;;  %v1147_v19 = vld [vmem:[#allocation5 + $0x28] sm:$0xff] }
 0x27c   : > { %1318 = vmatprep.subr.bf16.mxu0 %v3075_v20  ;;  %2902 = vmatprep.subr.bf16.mxu1 %v3075_v20 }
 0x27f   : > { %1319 = vmatpush1.bf16.msra.mxu0 %v3077_v21  ;;  %2910 = vmatpush1.bf16.msra.mxu1 %v3077_v21 }
 0x280   : > { %1320 = vmatprep.subr.bf16.mxu0 %v3078_v22  ;;  %2903 = vmatprep.subr.bf16.mxu1 %v3078_v22 }
 0x283   : > { %1321 = vmatpush1.bf16.msra.mxu0 %v3080_v23  ;;  %2911 = vmatpush1.bf16.msra.mxu1 %v3080_v23 }
 0x286   : > { %1339 = vmatmul.mubr.bf16.vlgmr.msra.gmra.mxu0 %v2417_v24  ;;  %1379 = vmatmul.mubr.bf16.vlgmr.msra.gmra.mxu1 %v2421_v25  ;;  %v1132_v24 = vld [vmem:[#allocation5 + $0x38] sm:$0xff]  ;;  %v1148_v25 = vld [vmem:[#allocation5] sm:$0xff] }
 0x287   : > { %1348 = vmatprep.mubr.bf16.mxu0 %v3266_v57  ;;  %1388 = vmatprep.mubr.bf16.mxu1 %v3266_v57 }
 0x28e   : > { %1349 = vmatmul.mubr.bf16.gmra.mxu0 %v2418_v26  ;;  %1389 = vmatmul.mubr.bf16.gmra.mxu1 %v2422_v27 }
 0x28f   : > { %1358 = vmatprep.mubr.bf16.mxu0 %v3266_v57  ;;  %1398 = vmatprep.mubr.bf16.mxu1 %v3266_v57 }
 0x296   : > { %1359 = vmatmul.mubr.bf16.gmra.mxu0 %v2419_v28  ;;  %1399 = vmatmul.mubr.bf16.gmra.mxu1 %v2423_v29 }
 0x297   : > { %1368 = vmatprep.mubr.bf16.mxu0 %v3266_v57  ;;  %1408 = vmatprep.mubr.bf16.mxu1 %v3266_v57 }
 0x29e   : > { %1369 = vmatmul.mubr.bf16.gmra.mxu0 %v2420_v30  ;;  %1409 = vmatmul.mubr.bf16.gmra.mxu1 %v2424_v31  ;;  %v1133_v30 = vld [vmem:[#allocation5 + $0x48] sm:$0xff]  ;;  %v1149_v31 = vld [vmem:[#allocation5 + $0x90] sm:$0xff] }
 0x346   : > { %v1340_v34 = vpop.f32.mrf.mxu0  ;;  %v1380_v35 = vpop.f32.mrf.mxu1 }
 0x347   : > { %v1419_v38 = vadd.f32 %v1340_v34, %v1125_v32  ;;  %v1435_v39 = vadd.f32 %v1380_v35, %v1141_v33 }
 0x348   : > { %v1342_v40 = vpop.f32.mrf.mxu0  ;;  %v1382_v41 = vpop.f32.mrf.mxu1 }
 0x349   : > { %1451 = vst [vmem:[#allocation5 + $0xa8] sm:$0xff] %v1419_v38  ;;  %1467 = vst [vmem:[#allocation5 + $0xb8] sm:$0xff] %v1435_v39  ;;  %v1420_v44 = vadd.f32 %v1342_v40, %v1126_v36  ;;  %v1436_v45 = vadd.f32 %v1382_v41, %v1142_v37  ;;  %v1134_v36 = vld [vmem:[#allocation5 + $0xf8] sm:$0xff]  ;;  %v1150_v37 = vld [vmem:[#allocation5 + $0xe8] sm:$0xff] }
 0x34a   : > { %v1344_v46 = vpop.f32.mrf.mxu0  ;;  %v1384_v47 = vpop.f32.mrf.mxu1 }
 0x34b   : > { %1452 = vst [vmem:[#allocation5 + $0x68] sm:$0xff] %v1420_v44  ;;  %1468 = vst [vmem:[#allocation5 + $0xd0] sm:$0xff] %v1436_v45  ;;  %v1421_v50 = vadd.f32 %v1344_v46, %v1127_v42  ;;  %v1437_v51 = vadd.f32 %v1384_v47, %v1143_v43  ;;  %v1135_v42 = vld [vmem:[#allocation5 + $0x78] sm:$0xff]  ;;  %v1151_v43 = vld [vmem:[#allocation5 + $0xa0] sm:$0xff] }
 0x34c   : > { %v1346_v52 = vpop.f32.mrf.mxu0  ;;  %v1386_v53 = vpop.f32.mrf.mxu1 }
 0x34d   : > { %1453 = vst [vmem:[#allocation5 + $0x10] sm:$0xff] %v1421_v50  ;;  %1469 = vst [vmem:[#allocation5 + $0xd8] sm:$0xff] %v1437_v51  ;;  %v1422_v56 = vadd.f32 %v1346_v52, %v1128_v48  ;;  %v1438_v57 = vadd.f32 %v1386_v53, %v1144_v49  ;;  %v1136_v48 = vld [vmem:[#allocation5 + $0x88] sm:$0xff]  ;;  %v1152_v49 = vld [vmem:[#allocation5 + $0x20] sm:$0xff] }
 0x34e   : > { %v1350_v58 = vpop.f32.mrf.mxu0  ;;  %v1390_v59 = vpop.f32.mrf.mxu1 }
 0x34f   : > { %1454 = vst [vmem:[#allocation5 + $0xc0] sm:$0xff] %v1422_v56  ;;  %1470 = vst [vmem:[#allocation5 + $0x58] sm:$0xff] %v1438_v57  ;;  %v1423_v62 = vadd.f32 %v1350_v58, %v1129_v54  ;;  %v1439_v63 = vadd.f32 %v1390_v59, %v1145_v55  ;;  %v1137_v54 = vld [vmem:[#allocation5 + $0xf0] sm:$0xff]  ;;  %v1153_v55 = vld [vmem:[#allocation5 + $0x8] sm:$0xff] }
 0x350   : > { %v1352_v16 = vpop.f32.mrf.mxu0  ;;  %v1392_v17 = vpop.f32.mrf.mxu1 }
 0x351   : > { %1455 = vst [vmem:[#allocation5 + $0xc8] sm:$0xff] %v1423_v62  ;;  %1471 = vst [vmem:[#allocation5 + $0x80] sm:$0xff] %v1439_v63  ;;  %v1424_v20 = vadd.f32 %v1352_v16, %v1130_v60  ;;  %v1440_v21 = vadd.f32 %v1392_v17, %v1146_v61  ;;  %v1138_v60 = vld [vmem:[#allocation5 + $0x18] sm:$0xff]  ;;  %v1154_v61 = vld [vmem:[#allocation5 + $0xe0] sm:$0xff] }
 0x352   : > { %v1354_v22 = vpop.f32.mrf.mxu0  ;;  %v1394_v23 = vpop.f32.mrf.mxu1 }
 0x353   : > { %1456 = vst [vmem:[#allocation5 + $0xb0] sm:$0xff] %v1424_v20  ;;  %1472 = vst [vmem:[#allocation5 + $0x40] sm:$0xff] %v1440_v21  ;;  %v1425_v26 = vadd.f32 %v1354_v22, %v1131_v18  ;;  %v1441_v27 = vadd.f32 %v1394_v23, %v1147_v19  ;;  %v1139_v18 = vld [vmem:[#allocation5 + $0x30] sm:$0xff]  ;;  %v1155_v19 = vld [vmem:[#allocation5 + $0x60] sm:$0xff] }
 0x354   : > { %v1356_v28 = vpop.f32.mrf.mxu0  ;;  %v1396_v29 = vpop.f32.mrf.mxu1 }
 0x355   : > { %1457 = vst [vmem:[#allocation5 + $0x70] sm:$0xff] %v1425_v26  ;;  %1473 = vst [vmem:[#allocation5 + $0x28] sm:$0xff] %v1441_v27  ;;  %v1426_v32 = vadd.f32 %v1356_v28, %v1132_v24  ;;  %v1442_v33 = vadd.f32 %v1396_v29, %v1148_v25  ;;  %v1140_v24 = vld [vmem:[#allocation5 + $0x50] sm:$0xff]  ;;  %v1156_v25 = vld [vmem:[#allocation5 + $0x98] sm:$0xff] }
 0x356   : > { %v1360_v34 = vpop.f32.mrf.mxu0  ;;  %v1400_v35 = vpop.f32.mrf.mxu1 }
 0x357   : > { %1458 = vst [vmem:[#allocation5 + $0x38] sm:$0xff] %v1426_v32  ;;  %1474 = vst [vmem:[#allocation5] sm:$0xff] %v1442_v33  ;;  %v1427_v38 = vadd.f32 %v1360_v34, %v1133_v30  ;;  %v1443_v39 = vadd.f32 %v1400_v35, %v1149_v31 }
 0x358   : > { %v1362_v40 = vpop.f32.mrf.mxu0  ;;  %v1402_v41 = vpop.f32.mrf.mxu1 }
 0x359   : > { %1459 = vst [vmem:[#allocation5 + $0x48] sm:$0xff] %v1427_v38  ;;  %1475 = vst [vmem:[#allocation5 + $0x90] sm:$0xff] %v1443_v39  ;;  %v1428_v44 = vadd.f32 %v1362_v40, %v1134_v36  ;;  %v1444_v45 = vadd.f32 %v1402_v41, %v1150_v37 }
 0x35a   : > { %v1364_v46 = vpop.f32.mrf.mxu0  ;;  %v1404_v47 = vpop.f32.mrf.mxu1 }
 0x35b   : > { %1460 = vst [vmem:[#allocation5 + $0xf8] sm:$0xff] %v1428_v44  ;;  %1476 = vst [vmem:[#allocation5 + $0xe8] sm:$0xff] %v1444_v45  ;;  %v1429_v50 = vadd.f32 %v1364_v46, %v1135_v42  ;;  %v1445_v51 = vadd.f32 %v1404_v47, %v1151_v43 }
 0x35c   : > { %v1366_v52 = vpop.f32.mrf.mxu0  ;;  %v1406_v53 = vpop.f32.mrf.mxu1 }
 0x35d   : > { %1461 = vst [vmem:[#allocation5 + $0x78] sm:$0xff] %v1429_v50  ;;  %1477 = vst [vmem:[#allocation5 + $0xa0] sm:$0xff] %v1445_v51  ;;  %v1430_v56 = vadd.f32 %v1366_v52, %v1136_v48  ;;  %v1446_v57 = vadd.f32 %v1406_v53, %v1152_v49 }
 0x35e   : > { %v1370_v58 = vpop.f32.mrf.mxu0  ;;  %v1410_v59 = vpop.f32.mrf.mxu1 }
 0x35f   : > { %1462 = vst [vmem:[#allocation5 + $0x88] sm:$0xff] %v1430_v56  ;;  %1478 = vst [vmem:[#allocation5 + $0x20] sm:$0xff] %v1446_v57  ;;  %v1431_v62 = vadd.f32 %v1370_v58, %v1137_v54  ;;  %v1447_v63 = vadd.f32 %v1410_v59, %v1153_v55 }
 0x360   : > { %v1372_v16 = vpop.f32.mrf.mxu0  ;;  %v1412_v17 = vpop.f32.mrf.mxu1 }
 0x361   : > { %1463 = vst [vmem:[#allocation5 + $0xf0] sm:$0xff] %v1431_v62  ;;  %1479 = vst [vmem:[#allocation5 + $0x8] sm:$0xff] %v1447_v63  ;;  %v1432_v20 = vadd.f32 %v1372_v16, %v1138_v60  ;;  %v1448_v21 = vadd.f32 %v1412_v17, %v1154_v61 }
 0x362   : > { %v1374_v22 = vpop.f32.mrf.mxu0  ;;  %v1414_v23 = vpop.f32.mrf.mxu1 }
 0x363   : > { %1464 = vst [vmem:[#allocation5 + $0x18] sm:$0xff] %v1432_v20  ;;  %1480 = vst [vmem:[#allocation5 + $0xe0] sm:$0xff] %v1448_v21  ;;  %v1433_v26 = vadd.f32 %v1374_v22, %v1139_v18  ;;  %v1449_v27 = vadd.f32 %v1414_v23, %v1155_v19 }
 0x364   : > { %v1376_v28 = vpop.f32.mrf.mxu0  ;;  %v1416_v29 = vpop.f32.mrf.mxu1 }
 0x365   : > { %1465 = vst [vmem:[#allocation5 + $0x30] sm:$0xff] %v1433_v26  ;;  %1481 = vst [vmem:[#allocation5 + $0x60] sm:$0xff] %v1449_v27  ;;  %v1434_v30 = vadd.f32 %v1376_v28, %v1140_v24  ;;  %v1450_v31 = vadd.f32 %v1416_v29, %v1156_v25 }
 0x367   : > { %1466 = vst [vmem:[#allocation5 + $0x50] sm:$0xff] %v1434_v30  ;;  %1482 = vst [vmem:[#allocation5 + $0x98] sm:$0xff] %v1450_v31 }
 0x368 PF: > { %p2441_p7 = scmp.le.s32.totalorder %s3247_s24, 0 }
 0x36a   : > { %1486 = sbr.rel (%p2441_p7) target bundleno = 1122 (0x462), region = 88 }
 0x36f   : > { %v3081_v32 = vld [vmem:[#allocation4 + $0x38] sm:$0xff]   ;;  %v3082_v33 = vld [vmem:[#allocation4 + $0x30] sm:$0xff]   ;;  %v2442_v34 = vcombine.low %v3414_v0, %v3416_v1  ;;  %v2446_v35 = vcombine.low %v3430_v8, %v3432_v9  ;;  %v3083_v36 = vld [vmem:[#allocation4 + $0x28] sm:$0xff]   ;;  %v2443_v38 = vcombine.low %v3418_v2, %v3420_v3  ;;  %v2447_v39 = vcombine.low %v3434_v10, %v3436_v11 }
 0x370   : > { %2832 = vmatprep.subr.bf16.mxu0 %v3081_v32  ;;  %2912 = vmatprep.subr.bf16.mxu1 %v3081_v32  ;;  %v3084_v37 = vld [vmem:[#allocation4 + $0x20] sm:$0xff]   ;;  %v3085_v0 = vld [vmem:[#allocation4 + $0x18] sm:$0xff]   ;;  %v3086_v1 = vld [vmem:[#allocation4 + $0x10] sm:$0xff]   ;;  %v2444_v40 = vcombine.low %v3422_v4, %v3424_v5  ;;  %v2448_v41 = vcombine.low %v3438_v12, %v3440_v13  ;;  %v2445_v42 = vcombine.low %v3426_v6, %v3428_v7 }
 0x371   : > { %2833 = vmatpush3.bf16.msra.mxu0 %v3081_v32  ;;  %2920 = vmatpush3.bf16.msra.mxu1 %v3081_v32  ;;  %v3087_v8 = vld [vmem:[#allocation4 + $0x8] sm:$0xff]   ;;  %v3088_v9 = vld [vmem:[#allocation4] sm:$0xff]   ;;  %v2449_v2 = vcombine.low %v3442_v14, %v3444_v15  ;;  %v1495_v5 = vld [vmem:[#allocation5 + $0xb8] sm:$0xff] }
 0x372   : > { %2834 = vmatprep.subr.bf16.mxu0 %v3082_v33  ;;  %2913 = vmatprep.subr.bf16.mxu1 %v3082_v33  ;;  %v1489_v3 = vld [vmem:[#allocation5 + $0xc8] sm:$0xff]  ;;  %v1497_v10 = vld [vmem:[#allocation5 + $0x80] sm:$0xff]  ;;  %v1490_v46 = vld [vmem:[#allocation5 + $0x70] sm:$0xff] }
 0x373   : > { %2848 = vmatprep.mubr.bf16.mxu0 %v2442_v34  ;;  %2856 = vmatprep.mubr.bf16.mxu1 %v2446_v35  ;;  %v1487_v4 = vld [vmem:[#allocation5 + $0xa8] sm:$0xff]  ;;  %v1488_v15 = vld [vmem:[#allocation5 + $0x10] sm:$0xff]  ;;  %v1496_v49 = vld [vmem:[#allocation5 + $0xd8] sm:$0xff] }
 0x374   : > { %v1498_v47 = vld [vmem:[#allocation5 + $0x28] sm:$0xff]  ;;  %v1493_v54 = vld [vmem:[#allocation5 + $0xf0] sm:$0xff]  ;;  %v1502_v19 = vld [vmem:[#allocation5 + $0x60] sm:$0xff] }
 0x375   : > { %2835 = vmatpush3.bf16.msra.mxu0 %v3082_v33  ;;  %2921 = vmatpush3.bf16.msra.mxu1 %v3082_v33  ;;  %v1501_v55 = vld [vmem:[#allocation5 + $0x8] sm:$0xff]  ;;  %v1499_v61 = vld [vmem:[#allocation5 + $0x90] sm:$0xff]  ;;  %v1492_v24 = vld [vmem:[#allocation5 + $0x78] sm:$0xff] }
 0x376   : > { %2836 = vmatprep.subr.bf16.mxu0 %v3083_v36  ;;  %2914 = vmatprep.subr.bf16.mxu1 %v3083_v36  ;;  %v1491_v60 = vld [vmem:[#allocation5 + $0x48] sm:$0xff]  ;;  %v1494_v18 = vld [vmem:[#allocation5 + $0x30] sm:$0xff]  ;;  %v1500_v25 = vld [vmem:[#allocation5 + $0xa0] sm:$0xff] }
 0x379   : > { %2837 = vmatpush3.bf16.msra.mxu0 %v3083_v36  ;;  %2922 = vmatpush3.bf16.msra.mxu1 %v3083_v36 }
 0x37a   : > { %2838 = vmatprep.subr.bf16.mxu0 %v3084_v37  ;;  %2915 = vmatprep.subr.bf16.mxu1 %v3084_v37 }
 0x37d   : > { %2839 = vmatpush3.bf16.msra.mxu0 %v3084_v37  ;;  %2923 = vmatpush3.bf16.msra.mxu1 %v3084_v37 }
 0x37e   : > { %2840 = vmatprep.subr.bf16.mxu0 %v3085_v0  ;;  %2916 = vmatprep.subr.bf16.mxu1 %v3085_v0 }
 0x381   : > { %2841 = vmatpush3.bf16.msra.mxu0 %v3085_v0  ;;  %2924 = vmatpush3.bf16.msra.mxu1 %v3085_v0 }
 0x382   : > { %2842 = vmatprep.subr.bf16.mxu0 %v3086_v1  ;;  %2917 = vmatprep.subr.bf16.mxu1 %v3086_v1 }
 0x385   : > { %2843 = vmatpush3.bf16.msra.mxu0 %v3086_v1  ;;  %2925 = vmatpush3.bf16.msra.mxu1 %v3086_v1 }
 0x386   : > { %2844 = vmatprep.subr.bf16.mxu0 %v3087_v8  ;;  %2918 = vmatprep.subr.bf16.mxu1 %v3087_v8 }
 0x389   : > { %2845 = vmatpush3.bf16.msra.mxu0 %v3087_v8  ;;  %2926 = vmatpush3.bf16.msra.mxu1 %v3087_v8 }
 0x38a   : > { %2846 = vmatprep.subr.bf16.mxu0 %v3088_v9  ;;  %2919 = vmatprep.subr.bf16.mxu1 %v3088_v9 }
 0x38d   : > { %2847 = vmatpush3.bf16.msra.mxu0 %v3088_v9  ;;  %2927 = vmatpush3.bf16.msra.mxu1 %v3088_v9 }
 0x390   : > { %2849 = vmatmul.mubr.bf16.vlgmr.msra.gmra.mxu0 %v2443_v38  ;;  %2857 = vmatmul.mubr.bf16.vlgmr.msra.gmra.mxu1 %v2447_v39 }
 0x391   : > { %2852 = vmatprep.mubr.bf16.mxu0 %v2444_v40  ;;  %2860 = vmatprep.mubr.bf16.mxu1 %v2448_v41 }
 0x398   : > { %2853 = vmatmul.mubr.bf16.gmra.mxu0 %v2445_v42  ;;  %2861 = vmatmul.mubr.bf16.gmra.mxu1 %v2449_v2 }
 0x450   : > { %v2850_v11 = vpop.f32.mrf.mxu0  ;;  %v2858_v43 = vpop.f32.mrf.mxu1 }
 0x451   : > { %v1718_v44 = vadd.f32 %v2850_v11, %v1489_v3  ;;  %v1726_v12 = vadd.f32 %v2858_v43, %v1497_v10 }
 0x452   : > { %v1653_v13 = vpop.f32.mrf.mxu0  ;;  %v1685_v45 = vpop.f32.mrf.mxu1 }
 0x453   : > { %1734 = vst [vmem:[#allocation5 + $0xc8] sm:$0xff] %v1718_v44  ;;  %1742 = vst [vmem:[#allocation5 + $0x80] sm:$0xff] %v1726_v12  ;;  %v1716_v6 = vadd.f32 %v1653_v13, %v1487_v4  ;;  %v1724_v7 = vadd.f32 %v1685_v45, %v1495_v5 }
 0x454   : > { %v2851_v48 = vpop.f32.mrf.mxu0  ;;  %v2859_v14 = vpop.f32.mrf.mxu1 }
 0x455   : > { %1732 = vst [vmem:[#allocation5 + $0xa8] sm:$0xff] %v1716_v6  ;;  %1740 = vst [vmem:[#allocation5 + $0xb8] sm:$0xff] %v1724_v7  ;;  %v1719_v50 = vadd.f32 %v2851_v48, %v1490_v46  ;;  %v1727_v51 = vadd.f32 %v2859_v14, %v1498_v47 }
 0x456   : > { %v1656_v52 = vpop.f32.mrf.mxu0  ;;  %v1688_v53 = vpop.f32.mrf.mxu1 }
 0x457   : > { %1735 = vst [vmem:[#allocation5 + $0x70] sm:$0xff] %v1719_v50  ;;  %1743 = vst [vmem:[#allocation5 + $0x28] sm:$0xff] %v1727_v51  ;;  %v1717_v56 = vadd.f32 %v1656_v52, %v1488_v15  ;;  %v1725_v57 = vadd.f32 %v1688_v53, %v1496_v49 }
 0x458   : > { %v2854_v58 = vpop.f32.mrf.mxu0  ;;  %v2862_v59 = vpop.f32.mrf.mxu1 }
 0x459   : > { %1733 = vst [vmem:[#allocation5 + $0x10] sm:$0xff] %v1717_v56  ;;  %1741 = vst [vmem:[#allocation5 + $0xd8] sm:$0xff] %v1725_v57  ;;  %v1722_v62 = vadd.f32 %v2854_v58, %v1493_v54  ;;  %v1730_v63 = vadd.f32 %v2862_v59, %v1501_v55 }
 0x45a   : > { %v1669_v16 = vpop.f32.mrf.mxu0  ;;  %v1701_v17 = vpop.f32.mrf.mxu1 }
 0x45b   : > { %1738 = vst [vmem:[#allocation5 + $0xf0] sm:$0xff] %v1722_v62  ;;  %1746 = vst [vmem:[#allocation5 + $0x8] sm:$0xff] %v1730_v63  ;;  %v1720_v20 = vadd.f32 %v1669_v16, %v1491_v60  ;;  %v1728_v21 = vadd.f32 %v1701_v17, %v1499_v61 }
 0x45c   : > { %v2855_v22 = vpop.f32.mrf.mxu0  ;;  %v2863_v23 = vpop.f32.mrf.mxu1 }
 0x45d   : > { %1736 = vst [vmem:[#allocation5 + $0x48] sm:$0xff] %v1720_v20  ;;  %1744 = vst [vmem:[#allocation5 + $0x90] sm:$0xff] %v1728_v21  ;;  %v1723_v26 = vadd.f32 %v2855_v22, %v1494_v18  ;;  %v1731_v27 = vadd.f32 %v2863_v23, %v1502_v19 }
 0x45e   : > { %v1672_v28 = vpop.f32.mrf.mxu0  ;;  %v1704_v29 = vpop.f32.mrf.mxu1 }
 0x45f   : > { %1739 = vst [vmem:[#allocation5 + $0x30] sm:$0xff] %v1723_v26  ;;  %1747 = vst [vmem:[#allocation5 + $0x60] sm:$0xff] %v1731_v27  ;;  %v1721_v30 = vadd.f32 %v1672_v28, %v1492_v24  ;;  %v1729_v31 = vadd.f32 %v1704_v29, %v1500_v25 }
 0x461   : > { %1737 = vst [vmem:[#allocation5 + $0x78] sm:$0xff] %v1721_v30  ;;  %1745 = vst [vmem:[#allocation5 + $0xa0] sm:$0xff] %v1729_v31 }
 0x462 PF: > { %1753 = sbr.rel (%p2416_p5) target bundleno = 1160 (0x488), region = 96 }
 0x467   : > { %v1788_v32 = vlaneseq  ;;  %v3267_v33 = vmov 0.0   ;;  %v1786_v35 = vld [vmem:[%s3595_s4] sm:$0x3]  ;;  %v1754_v36 = vld [vmem:[#allocation5 + $0xa8] sm:$0xff]  ;;  %v1756_v8 = vld [vmem:[#allocation5 + $0x10] sm:$0xff] }
 0x468   : > { %1977 = vst [vmem:[#allocation14] sm:$0xff] %v3267_v33  ;;  %1978 = vst [vmem:[#allocation14 + $0x8] sm:$0xff] %v3267_v33  ;;  %v1755_v37 = vld [vmem:[#allocation5 + $0x68] sm:$0xff]  ;;  %v1757_v9 = vld [vmem:[#allocation5 + $0xc0] sm:$0xff] }
 0x469   : > { %1979 = vst [vmem:[#allocation14 + $0x10] sm:$0xff] %v3267_v33  ;;  %1980 = vst [vmem:[#allocation14 + $0x18] sm:$0xff] %v3267_v33  ;;  %v1789_v34 = vshrl.u32 %v1788_v32, 7  ;;  %v1758_v38 = vld [vmem:[#allocation5 + $0xc8] sm:$0xff]  ;;  %v1759_v41 = vld [vmem:[#allocation5 + $0xb0] sm:$0xff] }
 0x46a   : > { %1981 = vst [vmem:[#allocation14 + $0x20] sm:$0xff] %v3267_v33  ;;  %1982 = vst [vmem:[#allocation14 + $0x28] sm:$0xff] %v3267_v33  ;;  %v1760_v42 = vld [vmem:[#allocation5 + $0x70] sm:$0xff]  ;;  %v1761_v2 = vld [vmem:[#allocation5 + $0x38] sm:$0xff] }
 0x46b   : > { %1983 = vst [vmem:[#allocation14 + $0x30] sm:$0xff] %v3267_v33  ;;  %1984 = vst [vmem:[#allocation14 + $0x38] sm:$0xff] %v3267_v33  ;;  %v1790_v0 = vsub.s32 0, %v1789_v34  ;;  %v1794_v1 = vsub.s32 1, %v1789_v34  ;;  %v1762_v13 = vld [vmem:[#allocation5 + $0x48] sm:$0xff]  ;;  %v1763_v45 = vld [vmem:[#allocation5 + $0xf8] sm:$0xff] }
 0x46c   : > { %1985 = vst [vmem:[#allocation14 + $0x40] sm:$0xff] %v3267_v33  ;;  %1986 = vst [vmem:[#allocation14 + $0x48] sm:$0xff] %v3267_v33  ;;  %v1764_v48 = vld [vmem:[#allocation5 + $0x78] sm:$0xff]  ;;  %v1765_v14 = vld [vmem:[#allocation5 + $0x88] sm:$0xff] }
 0x46d   : > { %1987 = vst [vmem:[#allocation14 + $0x50] sm:$0xff] %v3267_v33  ;;  %1988 = vst [vmem:[#allocation14 + $0x58] sm:$0xff] %v3267_v33  ;;  %v3501_v39 = vrot.slane %v1786_v35, %v1790_v0  ;;  %v3503_v40 = vrot.slane %v1786_v35, %v1794_v1  ;;  %v1766_v52 = vld [vmem:[#allocation5 + $0xf0] sm:$0xff]  ;;  %v1767_v53 = vld [vmem:[#allocation5 + $0x18] sm:$0xff] }
 0x46e   : > { %1989 = vst [vmem:[#allocation14 + $0x60] sm:$0xff] %v3267_v33  ;;  %1990 = vst [vmem:[#allocation14 + $0x68] sm:$0xff] %v3267_v33  ;;  %v1768_v58 = vld [vmem:[#allocation5 + $0x30] sm:$0xff]  ;;  %v1770_v16 = vld [vmem:[#allocation5 + $0xb8] sm:$0xff] }
 0x46f   : > { %1991 = vst [vmem:[#allocation14 + $0x70] sm:$0xff] %v3267_v33  ;;  %1992 = vst [vmem:[#allocation14 + $0x78] sm:$0xff] %v3267_v33  ;;  %v1798_v3 = vadd.f32 %v3501_v39, %v1754_v36  ;;  %v1799_v10 = vadd.f32 %v3503_v40, %v1755_v37  ;;  %v1800_v11 = vadd.f32 %v3501_v39, %v1756_v8  ;;  %v1769_v59 = vld [vmem:[#allocation5 + $0x50] sm:$0xff]  ;;  %v1772_v26 = vld [vmem:[#allocation5 + $0xd8] sm:$0xff] }
 0x470   : > { %v1801_v43 = vadd.f32 %v3503_v40, %v1757_v9  ;;  %v1802_v4 = vadd.f32 %v3501_v39, %v1758_v38  ;;  %v1803_v5 = vadd.f32 %v3503_v40, %v1759_v41  ;;  %v1804_v44 = vadd.f32 %v3501_v39, %v1760_v42  ;;  %v1771_v21 = vld [vmem:[#allocation5 + $0xd0] sm:$0xff]  ;;  %v1773_v27 = vld [vmem:[#allocation5 + $0x58] sm:$0xff]  ;;  %v1774_v32 = vld [vmem:[#allocation5 + $0x80] sm:$0xff] }
 0x471   : > { %v1805_v12 = vadd.f32 %v3503_v40, %v1761_v2  ;;  %v1830_v46 = vmax.f32 %v1798_v3, 0.0  ;;  %v1831_v47 = vmax.f32 %v1799_v10, 0.0  ;;  %v1832_v6 = vmax.f32 %v1800_v11, 0.0  ;;  %v1775_v33 = vld [vmem:[#allocation5 + $0x40] sm:$0xff]  ;;  %v1776_v0 = vld [vmem:[#allocation5 + $0x28] sm:$0xff]  ;;  %v1778_v42 = vld [vmem:[#allocation5 + $0x90] sm:$0xff] }
 0x472   : > { %v1833_v7 = vmax.f32 %v1801_v43, 0.0  ;;  %v1834_v15 = vmax.f32 %v1802_v4, 0.0  ;;  %v1835_v49 = vmax.f32 %v1803_v5, 0.0  ;;  %v1836_v50 = vmax.f32 %v1804_v44, 0.0  ;;  %v1777_v1 = vld [vmem:[#allocation5] sm:$0xff]  ;;  %v1779_v43 = vld [vmem:[#allocation5 + $0xe8] sm:$0xff] }
 0x473   : > { %v1837_v51 = vmax.f32 %v1805_v12, 0.0  ;;  %v2531_v54 = vpack.c.bf16 %v1831_v47, %v1830_v46  ;;  %v1806_v56 = vadd.f32 %v3501_v39, %v1762_v13  ;;  %v1807_v57 = vadd.f32 %v3503_v40, %v1763_v45  ;;  %v1780_v13 = vld [vmem:[#allocation5 + $0xa0] sm:$0xff] }
 0x474   : > { %v2532_v55 = vpack.c.bf16 %v1833_v7, %v1832_v6  ;;  %v2533_v60 = vpack.c.bf16 %v1835_v49, %v1834_v15  ;;  %v1808_v62 = vadd.f32 %v3501_v39, %v1764_v48  ;;  %v1809_v63 = vadd.f32 %v3503_v40, %v1765_v14  ;;  %v1781_v45 = vld [vmem:[#allocation5 + $0x20] sm:$0xff]  ;;  %v1782_v48 = vld [vmem:[#allocation5 + $0x8] sm:$0xff] }
 0x475   : > { %v2534_v61 = vpack.c.bf16 %v1837_v51, %v1836_v50  ;;  %1961 = vst [vmem:[#allocation2 + $0x30] sm:$0xff] %v2531_v54  ;;  %v1838_v17 = vmax.f32 %v1806_v56, 0.0  ;;  %v1839_v18 = vmax.f32 %v1807_v57, 0.0  ;;  %v1810_v19 = vadd.f32 %v3501_v39, %v1766_v52  ;;  %v1783_v14 = vld [vmem:[#allocation5 + $0xe0] sm:$0xff] }
 0x476   : > { %1962 = vst [vmem:[#allocation2] sm:$0xff] %v2532_v55  ;;  %v1811_v20 = vadd.f32 %v3503_v40, %v1767_v53  ;;  %1963 = vst [vmem:[#allocation2 + $0x58] sm:$0xff] %v2533_v60  ;;  %v1840_v22 = vmax.f32 %v1808_v62, 0.0  ;;  %v1841_v23 = vmax.f32 %v1809_v63, 0.0  ;;  %v1812_v24 = vadd.f32 %v3501_v39, %v1768_v58  ;;  %v1784_v52 = vld [vmem:[#allocation5 + $0x60] sm:$0xff]  ;;  %v1785_v53 = vld [vmem:[#allocation5 + $0x98] sm:$0xff] }
 0x477   : > { %1964 = vst [vmem:[#allocation2 + $0x18] sm:$0xff] %v2534_v61  ;;  %v1813_v25 = vadd.f32 %v3503_v40, %v1769_v59  ;;  %v2535_v28 = vpack.c.bf16 %v1839_v18, %v1838_v17  ;;  %v1842_v29 = vmax.f32 %v1810_v19, 0.0  ;;  %v1814_v31 = vadd.f32 %v3501_v39, %v1770_v16 }
 0x478   : > { %v1843_v30 = vmax.f32 %v1811_v20, 0.0  ;;  %v2536_v34 = vpack.c.bf16 %v1841_v23, %v1840_v22  ;;  %v1844_v35 = vmax.f32 %v1812_v24, 0.0  ;;  %v1815_v37 = vadd.f32 %v3503_v40, %v1771_v21 }
 0x479   : > { %v1845_v36 = vmax.f32 %v1813_v25, 0.0  ;;  %1965 = vst [vmem:[#allocation2 + $0x50] sm:$0xff] %v2535_v28  ;;  %v1846_v9 = vmax.f32 %v1814_v31, 0.0  ;;  %v1816_v38 = vadd.f32 %v3501_v39, %v1772_v26  ;;  %v1817_v41 = vadd.f32 %v3503_v40, %v1773_v27 }
 0x47a   : > { %v2537_v8 = vpack.c.bf16 %v1843_v30, %v1842_v29  ;;  %1966 = vst [vmem:[#allocation2 + $0x68] sm:$0xff] %v2536_v34  ;;  %v1847_v3 = vmax.f32 %v1815_v37, 0.0  ;;  %v1818_v10 = vadd.f32 %v3501_v39, %v1774_v32  ;;  %v1819_v11 = vadd.f32 %v3503_v40, %v1775_v33 }
 0x47b   : > { %v2538_v2 = vpack.c.bf16 %v1845_v36, %v1844_v35  ;;  %v1848_v4 = vmax.f32 %v1816_v38, 0.0  ;;  %v1849_v5 = vmax.f32 %v1817_v41, 0.0  ;;  %v1820_v44 = vadd.f32 %v3501_v39, %v1776_v0 }
 0x47c   : > { %1967 = vst [vmem:[#allocation2 + $0x8] sm:$0xff] %v2537_v8  ;;  %v1821_v12 = vadd.f32 %v3503_v40, %v1777_v1  ;;  %v2539_v46 = vpack.c.bf16 %v1847_v3, %v1846_v9  ;;  %v1850_v47 = vmax.f32 %v1818_v10, 0.0  ;;  %v1851_v6 = vmax.f32 %v1819_v11, 0.0 }
 0x47d   : > { %1968 = vst [vmem:[#allocation2 + $0x48] sm:$0xff] %v2538_v2  ;;  %v1822_v7 = vadd.f32 %v3501_v39, %v1778_v42  ;;  %v2540_v15 = vpack.c.bf16 %v1849_v5, %v1848_v4  ;;  %v1852_v49 = vmax.f32 %v1820_v44, 0.0  ;;  %v1823_v51 = vadd.f32 %v3503_v40, %v1779_v43 }
 0x47e   : > { %v1853_v50 = vmax.f32 %v1821_v12, 0.0  ;;  %1969 = vst [vmem:[#allocation2 + $0x40] sm:$0xff] %v2539_v46  ;;  %v2541_v54 = vpack.c.bf16 %v1851_v6, %v1850_v47  ;;  %v1824_v56 = vadd.f32 %v3501_v39, %v1780_v13  ;;  %v1825_v57 = vadd.f32 %v3503_v40, %v1781_v45 }
 0x47f   : > { %v1854_v55 = vmax.f32 %v1822_v7, 0.0  ;;  %1970 = vst [vmem:[#allocation2 + $0x20] sm:$0xff] %v2540_v15  ;;  %v1855_v59 = vmax.f32 %v1823_v51, 0.0  ;;  %v1826_v60 = vadd.f32 %v3501_v39, %v1782_v48  ;;  %v1827_v61 = vadd.f32 %v3503_v40, %v1783_v14 }
 0x480   : > { %v2542_v58 = vpack.c.bf16 %v1853_v50, %v1852_v49  ;;  %1971 = vst [vmem:[#allocation2 + $0x10] sm:$0xff] %v2541_v54  ;;  %v1856_v62 = vmax.f32 %v1824_v56, 0.0  ;;  %v1857_v63 = vmax.f32 %v1825_v57, 0.0  ;;  %v1828_v16 = vadd.f32 %v3501_v39, %v1784_v52 }
 0x481   : > { %v1829_v17 = vadd.f32 %v3503_v40, %v1785_v53  ;;  %v2543_v18 = vpack.c.bf16 %v1855_v59, %v1854_v55  ;;  %v1858_v19 = vmax.f32 %v1826_v60, 0.0  ;;  %v1859_v20 = vmax.f32 %v1827_v61, 0.0 }
 0x482   : > { %1972 = vst [vmem:[#allocation2 + $0x38] sm:$0xff] %v2542_v58  ;;  %v2544_v21 = vpack.c.bf16 %v1857_v63, %v1856_v62  ;;  %v1860_v22 = vmax.f32 %v1828_v16, 0.0 }
 0x483   : > { %v1861_v23 = vmax.f32 %v1829_v17, 0.0  ;;  %1973 = vst [vmem:[#allocation2 + $0x60] sm:$0xff] %v2543_v18  ;;  %v2545_v24 = vpack.c.bf16 %v1859_v20, %v1858_v19 }
 0x484   : > { %1974 = vst [vmem:[#allocation2 + $0x70] sm:$0xff] %v2544_v21 }
 0x485   : > { %v2546_v25 = vpack.c.bf16 %v1861_v23, %v1860_v22  ;;  %1975 = vst [vmem:[#allocation2 + $0x78] sm:$0xff] %v2545_v24 }
 0x487   : > { %1976 = vst [vmem:[#allocation2 + $0x28] sm:$0xff] %v2546_v25 }
 0x488 PF: > { %1996 = sbr.rel (%p2334_p2) target bundleno = 1181 (0x49d), region = 100 }
 0x48d   : > { %v1997_v39 = vld [vmem:[#allocation5 + $0xa8] sm:$0xff]  ;;  %v1998_v26 = vld [vmem:[#allocation5 + $0x10] sm:$0xff]  ;;  %v3542_v40 = vld [vmem:[%s3596_s5] ss:$0 sm:$0xff]  ;;  %v3268_v32 = vmov 0.0  }
 0x48e   : > { %v2020_v27 = vadd.f32 %v3542_v40, %v1997_v39  ;;  %v2021_v28 = vadd.f32 %v3542_v40, %v1998_v26  ;;  %v1999_v29 = vld [vmem:[#allocation5 + $0xc8] sm:$0xff]  ;;  %v2000_v30 = vld [vmem:[#allocation5 + $0x70] sm:$0xff]  ;;  %2134 = vst [vmem:[#allocation14] sm:$0xff] %v3268_v32  ;;  %2135 = vst [vmem:[#allocation14 + $0x8] sm:$0xff] %v3268_v32 }
 0x48f   : > { %v2001_v31 = vld [vmem:[#allocation5 + $0x48] sm:$0xff]  ;;  %2136 = vst [vmem:[#allocation14 + $0x10] sm:$0xff] %v3268_v32  ;;  %2137 = vst [vmem:[#allocation14 + $0x18] sm:$0xff] %v3268_v32  ;;  %v2022_v33 = vadd.f32 %v3542_v40, %v1999_v29  ;;  %v2023_v34 = vadd.f32 %v3542_v40, %v2000_v30  ;;  %v2002_v35 = vld [vmem:[#allocation5 + $0x78] sm:$0xff] }
 0x490   : > { %2138 = vst [vmem:[#allocation14 + $0x20] sm:$0xff] %v3268_v32  ;;  %2139 = vst [vmem:[#allocation14 + $0x28] sm:$0xff] %v3268_v32  ;;  %v2024_v36 = vadd.f32 %v3542_v40, %v2001_v31  ;;  %v2003_v37 = vld [vmem:[#allocation5 + $0xf0] sm:$0xff]  ;;  %v2036_v1 = vmax.f32 %v2020_v27, 0.0  ;;  %v2037_v8 = vmax.f32 %v2021_v28, 0.0  ;;  %v2025_v9 = vadd.f32 %v3542_v40, %v2002_v35  ;;  %v2005_v41 = vld [vmem:[#allocation5 + $0xb8] sm:$0xff] }
 0x491   : > { %2140 = vst [vmem:[#allocation14 + $0x30] sm:$0xff] %v3268_v32  ;;  %2141 = vst [vmem:[#allocation14 + $0x38] sm:$0xff] %v3268_v32  ;;  %v2004_v0 = vld [vmem:[#allocation5 + $0x30] sm:$0xff]  ;;  %v2026_v38 = vadd.f32 %v3542_v40, %v2003_v37  ;;  %v2006_v42 = vld [vmem:[#allocation5 + $0xd8] sm:$0xff]  ;;  %v2038_v3 = vmax.f32 %v2022_v33, 0.0  ;;  %v2039_v10 = vmax.f32 %v2023_v34, 0.0  ;;  %v2028_v45 = vadd.f32 %v3542_v40, %v2005_v41 }
 0x492   : > { %2142 = vst [vmem:[#allocation14 + $0x40] sm:$0xff] %v3268_v32  ;;  %2143 = vst [vmem:[#allocation14 + $0x48] sm:$0xff] %v3268_v32  ;;  %v2007_v2 = vld [vmem:[#allocation5 + $0x80] sm:$0xff]  ;;  %v2040_v11 = vmax.f32 %v2024_v36, 0.0  ;;  %v2027_v43 = vadd.f32 %v3542_v40, %v2004_v0  ;;  %v2008_v4 = vld [vmem:[#allocation5 + $0x28] sm:$0xff]  ;;  %v2646_v44 = vpack.c.bf16 %v2037_v8, %v2036_v1  ;;  %v2041_v12 = vmax.f32 %v2025_v9, 0.0 }
 0x493   : > { %2144 = vst [vmem:[#allocation14 + $0x50] sm:$0xff] %v3268_v32  ;;  %2145 = vst [vmem:[#allocation14 + $0x58] sm:$0xff] %v3268_v32  ;;  %v2009_v5 = vld [vmem:[#allocation5 + $0x90] sm:$0xff]  ;;  %v2042_v13 = vmax.f32 %v2026_v38, 0.0  ;;  %v2010_v46 = vld [vmem:[#allocation5 + $0xa0] sm:$0xff]  ;;  %v2651_v47 = vpack.c.bf16 %v2039_v10, %v2038_v3  ;;  %v2029_v7 = vadd.f32 %v3542_v40, %v2006_v42  ;;  %v2030_v48 = vadd.f32 %v3542_v40, %v2007_v2 }
 0x494   : > { %2146 = vst [vmem:[#allocation14 + $0x60] sm:$0xff] %v3268_v32  ;;  %2147 = vst [vmem:[#allocation14 + $0x68] sm:$0xff] %v3268_v32  ;;  %v2043_v6 = vmax.f32 %v2027_v43, 0.0  ;;  %v2011_v14 = vld [vmem:[#allocation5 + $0x8] sm:$0xff]  ;;  %v2012_v15 = vld [vmem:[#allocation5 + $0x60] sm:$0xff]  ;;  %v2656_v49 = vpack.c.bf16 %v2041_v12, %v2040_v11  ;;  %v2044_v50 = vmax.f32 %v2028_v45, 0.0  ;;  %v2031_v51 = vadd.f32 %v3542_v40, %v2008_v4 }
 0x495   : > { %2148 = vst [vmem:[#allocation14 + $0x70] sm:$0xff] %v3268_v32  ;;  %2149 = vst [vmem:[#allocation14 + $0x78] sm:$0xff] %v3268_v32  ;;  %v2032_v52 = vadd.f32 %v3542_v40, %v2009_v5  ;;  %v2045_v54 = vmax.f32 %v2029_v7, 0.0  ;;  %v2046_v55 = vmax.f32 %v2030_v48, 0.0  ;;  %v2033_v56 = vadd.f32 %v3542_v40, %v2010_v46 }
 0x496   : > { %2647 = vst [vmem:[#allocation3] sm:$0xff] %v2646_v44   ;;  %2697 = vst [vmem:[#allocation3 + $0x8] sm:$0xff] %v2651_v47   ;;  %v2661_v53 = vpack.c.bf16 %v2043_v6, %v2042_v13  ;;  %v2047_v57 = vmax.f32 %v2031_v51, 0.0  ;;  %v2034_v59 = vadd.f32 %v3542_v40, %v2011_v14  ;;  %v2035_v60 = vadd.f32 %v3542_v40, %v2012_v15 }
 0x497   : > { %2698 = vst [vmem:[#allocation3 + $0x10] sm:$0xff] %v2656_v49   ;;  %v2048_v58 = vmax.f32 %v2032_v52, 0.0  ;;  %v2666_v61 = vpack.c.bf16 %v2045_v54, %v2044_v50  ;;  %v2049_v62 = vmax.f32 %v2033_v56, 0.0 }
 0x498   : > { %2699 = vst [vmem:[#allocation3 + $0x18] sm:$0xff] %v2661_v53   ;;  %v2671_v63 = vpack.c.bf16 %v2047_v57, %v2046_v55  ;;  %v2050_v16 = vmax.f32 %v2034_v59, 0.0  ;;  %v2051_v17 = vmax.f32 %v2035_v60, 0.0 }
 0x499   : > { %2700 = vst [vmem:[#allocation3 + $0x20] sm:$0xff] %v2666_v61   ;;  %v2676_v18 = vpack.c.bf16 %v2049_v62, %v2048_v58 }
 0x49a   : > { %2701 = vst [vmem:[#allocation3 + $0x28] sm:$0xff] %v2671_v63   ;;  %v2681_v19 = vpack.c.bf16 %v2051_v17, %v2050_v16 }
 0x49b   : > { %2702 = vst [vmem:[#allocation3 + $0x30] sm:$0xff] %v2676_v18  }
 0x49c   : > { %2703 = vst [vmem:[#allocation3 + $0x38] sm:$0xff] %v2681_v19  }
 0x49d PF: > { %2153 = sbr.rel (%p2383_p3) target bundleno = 1197 (0x4ad), region = 104 }
 0x4a2   : > { %v2154_v20 = vld [vmem:[#allocation5 + $0xa8] sm:$0xff]  ;;  %v2494_v21 = vld [vmem:[%s3597_s6] ss:$0 sm:$0xff]  ;;  %v2155_v22 = vld [vmem:[#allocation5 + $0x10] sm:$0xff] }
 0x4a3   : > { %v2177_v23 = vadd.f32 %v2494_v21, %v2154_v20  ;;  %v2178_v24 = vadd.f32 %v2494_v21, %v2155_v22  ;;  %v2156_v25 = vld [vmem:[#allocation5 + $0xc8] sm:$0xff]  ;;  %v2157_v39 = vld [vmem:[#allocation5 + $0x70] sm:$0xff]  ;;  %v2159_v29 = vld [vmem:[#allocation5 + $0x78] sm:$0xff] }
 0x4a4   : > { %v2158_v26 = vld [vmem:[#allocation5 + $0x48] sm:$0xff]  ;;  %v2179_v40 = vadd.f32 %v2494_v21, %v2156_v25  ;;  %v2180_v27 = vadd.f32 %v2494_v21, %v2157_v39  ;;  %v2160_v30 = vld [vmem:[#allocation5 + $0xf0] sm:$0xff]  ;;  %v2182_v32 = vadd.f32 %v2494_v21, %v2159_v29  ;;  %v2162_v35 = vld [vmem:[#allocation5 + $0xb8] sm:$0xff] }
 0x4a5   : > { %v2181_v28 = vadd.f32 %v2494_v21, %v2158_v26  ;;  %v2161_v31 = vld [vmem:[#allocation5 + $0x30] sm:$0xff]  ;;  %2193 = vst [vmem:[#allocation14] sm:$0xff] %v2177_v23  ;;  %2194 = vst [vmem:[#allocation14 + $0x8] sm:$0xff] %v2178_v24  ;;  %v2183_v33 = vadd.f32 %v2494_v21, %v2160_v30  ;;  %v2163_v36 = vld [vmem:[#allocation5 + $0xd8] sm:$0xff]  ;;  %v2185_v0 = vadd.f32 %v2494_v21, %v2162_v35 }
 0x4a6   : > { %v2184_v34 = vadd.f32 %v2494_v21, %v2161_v31  ;;  %v2164_v37 = vld [vmem:[#allocation5 + $0x80] sm:$0xff]  ;;  %2195 = vst [vmem:[#allocation14 + $0x10] sm:$0xff] %v2179_v40  ;;  %2196 = vst [vmem:[#allocation14 + $0x18] sm:$0xff] %v2180_v27  ;;  %v2186_v1 = vadd.f32 %v2494_v21, %v2163_v36  ;;  %v2165_v9 = vld [vmem:[#allocation5 + $0x28] sm:$0xff] }
 0x4a7   : > { %2197 = vst [vmem:[#allocation14 + $0x20] sm:$0xff] %v2181_v28  ;;  %v2187_v8 = vadd.f32 %v2494_v21, %v2164_v37  ;;  %v2166_v38 = vld [vmem:[#allocation5 + $0x90] sm:$0xff]  ;;  %v2167_v41 = vld [vmem:[#allocation5 + $0xa0] sm:$0xff]  ;;  %2198 = vst [vmem:[#allocation14 + $0x28] sm:$0xff] %v2182_v32  ;;  %v2188_v42 = vadd.f32 %v2494_v21, %v2165_v9 }
 0x4a8   : > { %2199 = vst [vmem:[#allocation14 + $0x30] sm:$0xff] %v2183_v33  ;;  %2200 = vst [vmem:[#allocation14 + $0x38] sm:$0xff] %v2184_v34  ;;  %v2189_v2 = vadd.f32 %v2494_v21, %v2166_v38  ;;  %v2190_v3 = vadd.f32 %v2494_v21, %v2167_v41  ;;  %v2168_v10 = vld [vmem:[#allocation5 + $0x8] sm:$0xff]  ;;  %v2169_v11 = vld [vmem:[#allocation5 + $0x60] sm:$0xff] }
 0x4a9   : > { %2201 = vst [vmem:[#allocation14 + $0x40] sm:$0xff] %v2185_v0  ;;  %2202 = vst [vmem:[#allocation14 + $0x48] sm:$0xff] %v2186_v1  ;;  %v2191_v43 = vadd.f32 %v2494_v21, %v2168_v10  ;;  %v2192_v4 = vadd.f32 %v2494_v21, %v2169_v11 }
 0x4aa   : > { %2203 = vst [vmem:[#allocation14 + $0x50] sm:$0xff] %v2187_v8  ;;  %2204 = vst [vmem:[#allocation14 + $0x58] sm:$0xff] %v2188_v42 }
 0x4ab   : > { %2205 = vst [vmem:[#allocation14 + $0x60] sm:$0xff] %v2189_v2  ;;  %2206 = vst [vmem:[#allocation14 + $0x68] sm:$0xff] %v2190_v3 }
 0x4ac   : > { %2207 = vst [vmem:[#allocation14 + $0x70] sm:$0xff] %v2191_v43  ;;  %2208 = vst [vmem:[#allocation14 + $0x78] sm:$0xff] %v2192_v4 }
 0x4ad PF: > { %p3567_p4 = scmp.eq.s32.totalorder %s2323_s29, 2  ;;  %s3269_s22 = smov [#allocation14]  }
 0x4ae   : > { %s2218_s23 = sshll.u32 %s3269_s22, 4  ;;  %s2219_s23 = int_to_ptr.vmem [resolvable:$true] %s2218_s23 }
 0x4af   : > { %s3193_s27 = scalar_lea.vmem %s2219_s23, 2048  ;;  %p3200_p11 = scmp.lt.s32.totalorder %s2219_s23, %s2219_s23 }
 0x4b0   : > { %p3194_p8 = scmp.ne.s32.totalorder %s2219_s23, %s3193_s27  ;;  %p3201_p12 = scmp.lt.s32.totalorder %s3193_s27, %s3193_s27 }
 0x4b2   : > { %p3195_p9 = pnand %p3194_p8, %p3567_p4  ;;  %p3202_p6 = por %p3201_p12, %p3200_p11 }
 0x4b4   : > { %p3196_p10 = pneg %p3195_p9 }
 0x4b6   : > { %p3203_p13 = pnand %p3202_p6, %p3196_p10 }
 0x4b8   : > { %3206 = shalt.err (!%p3203_p13)
}
 0x4b9   : > { %s3270_s28 = smov 128   ;;  %s3271_s29 = smov 8  }
 0x4ba   : > { %2945 = dma.vmem_to_hbm [thread:$0]  (%p3567_p4), %s2219_s23, 2048, %s3598_s7, [#allocation8], %s3270_s28, %s3270_s28, %s3271_s29  }
 0x4bb   : > { %3242 = dma.done.wait (%p3567_p4), [#allocation8], 2048  }
 0x4bc   : > { %3244 = vsyncadd (%p3567_p4), [#allocation8], 4294965248 }
 0x4bd PF: > { %s21_s26 = sadd.s32 1, %s3255_s26   ;;  %s3604_s24 = smov %s3251_s25 }
 0x4be   : > { %p18_p0 = scmp.ge.s32.totalorder %s21_s26, 5   ;;  %s3605_s25 = smov %s3607_s10 }
 0x4c0   :  { %20 = sbr.rel (!%p18_p0) target bundleno = 5 (0x5), region = 139 }
 0x4c5   :  { %2234 = vsyncpa [#allocation7], 1 }
 0x4c6   :  { %2236 = vsyncpa [#allocation7 + $0x1], 1 }
 0x4c7   :  { %2237 = vsyncpa [#allocation10], 1 }
 0x4c8   :  { %2238 = vsyncpa [#allocation13], 1 }
 0x4c9   :  { %2239 = vsyncpa [#allocation8], 1 }
 0x4ca   :  { %2241 = vsyncpa [#allocation8 + $0x1], 1 }

</bundles_post_ra>
